<compile_context>
chip_gen: v6e
topology: v6e:2x2x1
jax: 0.10.0
libtpu: 0.0.40
codegen_flags: <defaults>
</compile_context>

<pallas_src>
import functools

import jax
import jax.numpy as jnp
from jax.experimental import pallas as pl
from jax.experimental.pallas import tpu as pltpu

# ---- small synthetic BERT config (bert-base scaled down) --------------------
VOCAB = 100
VOCAB_PAD = 128            # word-emb table padded to a lane-friendly 128 rows
HIDDEN = 32
N_HEADS = 4
HEAD_DIM = HIDDEN // N_HEADS
INTER = 64
N_LAYERS = 2
MAX_POS = 16
LN_EPS = 1e-12
NEG_FILL = -1000000000.0   # matches the PyTorch module's fill value


def _layernorm(x, gamma, beta):
    mu = jnp.mean(x, axis=-1, keepdims=True)
    var = jnp.mean((x - mu) ** 2, axis=-1, keepdims=True)
    return (x - mu) * jax.lax.rsqrt(var + LN_EPS) * gamma + beta


def _softmax_rows(s):
    # manual softmax so the reciprocal lands on the EUP slot
    m = jnp.max(s, axis=-1, keepdims=True)
    e = jnp.exp(s - m)
    return e * pl.reciprocal(jnp.sum(e, axis=-1, keepdims=True), approx=True)


# ---------------- fused embed + encoder + masked max-pool kernel -------------
def _encoder_kernel(ids_ref, amr_ref, amc_ref,
                    wtab_ref, pt_ref, eg_ref, eb_ref,
                    wqkv_ref, bqkv_ref, wo_ref, bo_ref, l1g_ref, l1b_ref,
                    w1_ref, b1_ref, w2_ref, b2_ref, l2g_ref, l2b_ref,
                    o_ref, *, batch, seq):
    rows = batch * seq

    # --- embedding gather as a one-hot MXU matmul (no XLA gather) ----------
    ids = ids_ref[...]                                           # (rows, 1) i32
    vocab_iota = jax.lax.broadcasted_iota(jnp.int32, (rows, VOCAB_PAD), 1)
    onehot = (ids == vocab_iota).astype(jnp.float32)             # (rows, 128)
    emb = jnp.dot(onehot, wtab_ref[...],
                  preferred_element_type=jnp.float32)            # (rows, H)
    pt = pt_ref[...]                                             # (seq, H) pos+type
    emb = emb + jnp.concatenate([pt] * batch, axis=0)

    # --- additive attention-key mask, built in-kernel (f32) ----------------
    key_add = (amr_ref[...].astype(jnp.float32) - 1.0) * (-NEG_FILL)  # (batch, seq)

    # --- embedding LayerNorm ------------------------------------------------
    x = _layernorm(emb, eg_ref[...], eb_ref[...])                # (rows, H) f32

    for l in range(N_LAYERS):  # static unroll; weights stay VMEM-resident
        # fused QKV projection over the whole (batch*seq) row slab
        qkv = jnp.dot(x.astype(jnp.bfloat16), wqkv_ref[l],
                      preferred_element_type=jnp.float32) + bqkv_ref[l]  # (rows, 3H)

        # attention with the output projection folded into the per-head loop
        attn_blocks = []
        for b in range(batch):
            r0 = b * seq
            madd = key_add[b:b + 1, :]                           # (1, seq)
            attn_b = jnp.zeros((seq, HIDDEN), jnp.float32)
            for h in range(N_HEADS):
                lo = h * HEAD_DIM
                qh = qkv[r0:r0 + seq, lo:lo + HEAD_DIM]                       # (seq, d)
                kh = qkv[r0:r0 + seq, HIDDEN + lo:HIDDEN + lo + HEAD_DIM]
                vh = qkv[r0:r0 + seq, 2 * HIDDEN + lo:2 * HIDDEN + lo + HEAD_DIM]
                # scale already folded into the Q columns of wqkv
                s = jnp.dot(qh, kh.T,
                            preferred_element_type=jnp.float32) + madd        # (seq, seq)
                p = _softmax_rows(s)
                ctx = jnp.dot(p, vh, preferred_element_type=jnp.float32)      # (seq, d)
                attn_b = attn_b + jnp.dot(
                    ctx.astype(jnp.bfloat16), wo_ref[l, lo:lo + HEAD_DIM, :],
                    preferred_element_type=jnp.float32)                       # (seq, H)
            attn_blocks.append(attn_b)
        attn_out = jnp.concatenate(attn_blocks, axis=0) + bo_ref[l]           # (rows, H)

        # residual + LN, FFN, residual + LN
        x1 = _layernorm(attn_out + x, l1g_ref[l], l1b_ref[l])
        hmid = jnp.dot(x1.astype(jnp.bfloat16), w1_ref[l],
                       preferred_element_type=jnp.float32) + b1_ref[l]
        # TODO(synk): BERT uses exact (erf) GELU; tanh approximation used here
        # for guaranteed Mosaic lowering.
        hmid = jax.nn.gelu(hmid, approximate=True)
        ffn = jnp.dot(hmid.astype(jnp.bfloat16), w2_ref[l],
                      preferred_element_type=jnp.float32) + b2_ref[l]
        x = _layernorm(ffn + x1, l2g_ref[l], l2b_ref[l])

    # --- masked max-pool: additive mask + per-batch sublane reduce ----------
    pool_add = (amc_ref[...].astype(jnp.float32) - 1.0) * (-NEG_FILL)   # (rows, 1)
    xm = x + pool_add
    pooled = jnp.concatenate(
        [jnp.max(xm[b * seq:(b + 1) * seq, :], axis=0, keepdims=True)
         for b in range(batch)], axis=0)                                 # (batch, H)
    o_ref[...] = pooled


def _encoder_pool(ids_col, mask_row, mask_col, params, *, batch, seq):
    rows = batch * seq
    H = HIDDEN

    def full(arr):
        shp = arr.shape
        return pl.BlockSpec(shp, lambda i, n=len(shp): (0,) * n)

    kernel = functools.partial(_encoder_kernel, batch=batch, seq=seq)

    weight_names = ("wqkv", "bqkv", "wo", "bo", "ln1_g", "ln1_b",
                    "w1", "b1", "w2", "b2", "ln2_g", "ln2_b")
    weights = [params[k] for k in weight_names]

    out = pl.pallas_call(
        kernel,
        out_shape=jax.ShapeDtypeStruct((batch, H), jnp.float32),
        # Whole batch (B*S = 16 rows) in one grid step: amortizes per-step
        # overhead and keeps the output store a dense (B, H) slab.
        grid=(1,),
        in_specs=[
            pl.BlockSpec((rows, 1), lambda i: (0, 0)),        # token ids (col layout)
            pl.BlockSpec((batch, seq), lambda i: (0, 0)),     # attn mask (row layout)
            pl.BlockSpec((rows, 1), lambda i: (0, 0)),        # attn mask (col layout)
            full(params["word_emb"]),                         # padded (128, H) table
            pl.BlockSpec((seq, H), lambda i: (0, 0)),         # pos+type rows [0:S)
            full(params["emb_ln_g"]), full(params["emb_ln_b"]),
        ] + [full(w) for w in weights],
        out_specs=pl.BlockSpec((batch, H), lambda i: (0, 0)),
        compiler_params=pltpu.CompilerParams(
            dimension_semantics=("arbitrary",)),
    )(ids_col, mask_row, mask_col,
      params["word_emb"], params["pos_type"],
      params["emb_ln_g"], params["emb_ln_b"], *weights)
    return out


# ---------------- forward -----------------------------------------------------
def sentence_transformer_forward(input_ids, attention_mask, params):
    B, S = input_ids.shape
    assert S <= MAX_POS
    # Only free metadata reshapes remain outside the kernel; embedding gather,
    # mask arithmetic, all encoder layers and the masked max-pool are fused
    # into a single pallas_call.
    ids_col = input_ids.astype(jnp.int32).reshape(B * S, 1)
    mask_row = attention_mask.astype(jnp.int32)               # (B, S)
    mask_col = mask_row.reshape(B * S, 1)
    return _encoder_pool(ids_col, mask_row, mask_col, params, batch=B, seq=S)


# ---------------- deterministic synthetic parameter init ---------------------
def init_params(key):
    keys = iter(jax.random.split(key, 3 + 6 * N_LAYERS))

    def nrm(shape, scale=0.02):
        return (scale * jax.random.normal(next(keys), shape)).astype(jnp.float32)

    word = nrm((VOCAB, HIDDEN))
    word_pad = jnp.zeros((VOCAB_PAD, HIDDEN), jnp.float32).at[:VOCAB].set(word)
    pos = nrm((MAX_POS, HIDDEN))
    typ = nrm((2, HIDDEN))

    params = {
        "word_emb": word_pad,
        "pos_type": pos + typ[0:1],                 # token_type_ids == 0 everywhere
        "emb_ln_g": jnp.ones((1, HIDDEN), jnp.float32),
        "emb_ln_b": jnp.zeros((1, HIDDEN), jnp.float32),
    }

    scale = 1.0 / (HEAD_DIM ** 0.5)
    wqkv, bqkv, wo, bo = [], [], [], []
    ln1g, ln1b, w1, b1, w2, b2, ln2g, ln2b = ([] for _ in range(8))
    for _ in range(N_LAYERS):
        wq = nrm((HIDDEN, HIDDEN))
        wk = nrm((HIDDEN, HIDDEN))
        wv = nrm((HIDDEN, HIDDEN))
        # fused QKV weight with the attention scale folded into the Q columns
        wqkv.append(jnp.concatenate([wq * scale, wk, wv], axis=1))   # (H, 3H)
        bqkv.append(jnp.zeros((1, 3 * HIDDEN), jnp.float32))
        wo.append(nrm((HIDDEN, HIDDEN)))
        bo.append(jnp.zeros((1, HIDDEN), jnp.float32))
        ln1g.append(jnp.ones((1, HIDDEN), jnp.float32))
        ln1b.append(jnp.zeros((1, HIDDEN), jnp.float32))
        w1.append(nrm((HIDDEN, INTER)))
        b1.append(jnp.zeros((1, INTER), jnp.float32))
        w2.append(nrm((INTER, HIDDEN)))
        b2.append(jnp.zeros((1, HIDDEN), jnp.float32))
        ln2g.append(jnp.ones((1, HIDDEN), jnp.float32))
        ln2b.append(jnp.zeros((1, HIDDEN), jnp.float32))

    params.update({
        # MXU weights in bf16 (f32 accumulation in-kernel); everything else f32
        "wqkv": jnp.stack(wqkv).astype(jnp.bfloat16), "bqkv": jnp.stack(bqkv),
        "wo": jnp.stack(wo).astype(jnp.bfloat16), "bo": jnp.stack(bo),
        "ln1_g": jnp.stack(ln1g), "ln1_b": jnp.stack(ln1b),
        "w1": jnp.stack(w1).astype(jnp.bfloat16), "b1": jnp.stack(b1),
        "w2": jnp.stack(w2).astype(jnp.bfloat16), "b2": jnp.stack(b2),
        "ln2_g": jnp.stack(ln2g), "ln2_b": jnp.stack(ln2b),
    })
    return params


if __name__ == "__main__":
    key = jax.random.PRNGKey(0)
    pkey, ikey = jax.random.split(key)
    params = init_params(pkey)

    B, S = 2, 8
    input_ids = jax.random.randint(ikey, (B, S), 0, VOCAB, dtype=jnp.int32)
    lengths = jnp.array([8, 5], dtype=jnp.int32)
    attention_mask = (jnp.arange(S)[None, :] < lengths[:, None]).astype(jnp.int32)

    fwd = jax.jit(sentence_transformer_forward)
    out = fwd(input_ids, attention_mask, params)
    out = jax.block_until_ready(out)
    assert out.shape == (B, HIDDEN) and out.dtype == jnp.float32
    print("KERNEL_OK")
</pallas_src>

<mosaic_0001>
module attributes {stable_mosaic.version = 11 : i64} {
  func.func @_encoder_kernel(%arg0: i32, %arg1: memref<16x1xi32, #tpu.memory_space<vmem>>, %arg2: memref<2x8xi32, #tpu.memory_space<vmem>>, %arg3: memref<16x1xi32, #tpu.memory_space<vmem>>, %arg4: memref<128x32xf32, #tpu.memory_space<vmem>>, %arg5: memref<8x32xf32, #tpu.memory_space<vmem>>, %arg6: memref<1x32xf32, #tpu.memory_space<vmem>>, %arg7: memref<1x32xf32, #tpu.memory_space<vmem>>, %arg8: memref<2x32x96xbf16, #tpu.memory_space<vmem>>, %arg9: memref<2x1x96xf32, #tpu.memory_space<vmem>>, %arg10: memref<2x32x32xbf16, #tpu.memory_space<vmem>>, %arg11: memref<2x1x32xf32, #tpu.memory_space<vmem>>, %arg12: memref<2x1x32xf32, #tpu.memory_space<vmem>>, %arg13: memref<2x1x32xf32, #tpu.memory_space<vmem>>, %arg14: memref<2x32x64xbf16, #tpu.memory_space<vmem>>, %arg15: memref<2x1x64xf32, #tpu.memory_space<vmem>>, %arg16: memref<2x64x32xbf16, #tpu.memory_space<vmem>>, %arg17: memref<2x1x32xf32, #tpu.memory_space<vmem>>, %arg18: memref<2x1x32xf32, #tpu.memory_space<vmem>>, %arg19: memref<2x1x32xf32, #tpu.memory_space<vmem>>, %arg20: memref<2x32xf32, #tpu.memory_space<vmem>>) attributes {dimension_semantics = [#tpu.dimension_semantics<arbitrary>], iteration_bounds = array<i64: 1>, scalar_prefetch = 0 : i64, scratch_operands = 0 : i64, tpu.core_type = #tpu.core_type<tc>, window_params = [{pipeline_mode = #tpu.pipeline_mode<synchronous>, transform_indices = @transform_0, window_bounds = array<i64: 16, 1>}, {pipeline_mode = #tpu.pipeline_mode<synchronous>, transform_indices = @transform_1, window_bounds = array<i64: 2, 8>}, {pipeline_mode = #tpu.pipeline_mode<synchronous>, transform_indices = @transform_2, window_bounds = array<i64: 16, 1>}, {pipeline_mode = #tpu.pipeline_mode<synchronous>, transform_indices = @transform_3, window_bounds = array<i64: 128, 32>}, {transform_indices = @transform_4, window_bounds = array<i64: 8, 32>}, {pipeline_mode = #tpu.pipeline_mode<synchronous>, transform_indices = @transform_5, window_bounds = array<i64: 1, 32>}, {pipeline_mode = #tpu.pipeline_mode<synchronous>, transform_indices = @transform_6, window_bounds = array<i64: 1, 32>}, {pipeline_mode = #tpu.pipeline_mode<synchronous>, transform_indices = @transform_7, window_bounds = array<i64: 2, 32, 96>}, {pipeline_mode = #tpu.pipeline_mode<synchronous>, transform_indices = @transform_8, window_bounds = array<i64: 2, 1, 96>}, {pipeline_mode = #tpu.pipeline_mode<synchronous>, transform_indices = @transform_9, window_bounds = array<i64: 2, 32, 32>}, {pipeline_mode = #tpu.pipeline_mode<synchronous>, transform_indices = @transform_10, window_bounds = array<i64: 2, 1, 32>}, {pipeline_mode = #tpu.pipeline_mode<synchronous>, transform_indices = @transform_11, window_bounds = array<i64: 2, 1, 32>}, {pipeline_mode = #tpu.pipeline_mode<synchronous>, transform_indices = @transform_12, window_bounds = array<i64: 2, 1, 32>}, {pipeline_mode = #tpu.pipeline_mode<synchronous>, transform_indices = @transform_13, window_bounds = array<i64: 2, 32, 64>}, {pipeline_mode = #tpu.pipeline_mode<synchronous>, transform_indices = @transform_14, window_bounds = array<i64: 2, 1, 64>}, {pipeline_mode = #tpu.pipeline_mode<synchronous>, transform_indices = @transform_15, window_bounds = array<i64: 2, 64, 32>}, {pipeline_mode = #tpu.pipeline_mode<synchronous>, transform_indices = @transform_16, window_bounds = array<i64: 2, 1, 32>}, {pipeline_mode = #tpu.pipeline_mode<synchronous>, transform_indices = @transform_17, window_bounds = array<i64: 2, 1, 32>}, {pipeline_mode = #tpu.pipeline_mode<synchronous>, transform_indices = @transform_18, window_bounds = array<i64: 2, 1, 32>}, {pipeline_mode = #tpu.pipeline_mode<synchronous>, transform_indices = @transform_19, window_bounds = array<i64: 2, 32>}]} {
    %c0 = arith.constant 0 : index
    %c0_0 = arith.constant 0 : index
    %0 = vector.load %arg1[%c0, %c0_0] : memref<16x1xi32, #tpu.memory_space<vmem>>, vector<16x1xi32>
    %1 = tpu.iota {dimensions = array<i32: 1>} : vector<16x128xi32>
    %2 = vector.broadcast %0 : vector<16x1xi32> to vector<16x128xi32>
    %3 = arith.cmpi eq, %2, %1 : vector<16x128xi32>
    %4 = arith.extui %3 : vector<16x128xi1> to vector<16x128xi32>
    %5 = arith.sitofp %4 : vector<16x128xi32> to vector<16x128xf32>
    %c0_1 = arith.constant 0 : index
    %c0_2 = arith.constant 0 : index
    %6 = vector.load %arg4[%c0_1, %c0_2] : memref<128x32xf32, #tpu.memory_space<vmem>>, vector<128x32xf32>
    %cst = arith.constant dense<0.000000e+00> : vector<16x32xf32>
    %7 = tpu.matmul %5, %6, %cst {dimension_numbers = #tpu.dot_dimension_numbers<[1], [0], [0], [1], [0, 0, 1, 1], [], []>} : vector<16x128xf32>, vector<128x32xf32>, vector<16x32xf32> -> vector<16x32xf32>
    %c0_3 = arith.constant 0 : index
    %c0_4 = arith.constant 0 : index
    %8 = vector.load %arg5[%c0_3, %c0_4] : memref<8x32xf32, #tpu.memory_space<vmem>>, vector<8x32xf32>
    %9 = tpu.concatenate %8, %8 in 0 : vector<8x32xf32>, vector<8x32xf32> -> vector<16x32xf32>
    %10 = arith.addf %7, %9 : vector<16x32xf32>
    %c0_5 = arith.constant 0 : index
    %c0_6 = arith.constant 0 : index
    %11 = vector.load %arg2[%c0_5, %c0_6] : memref<2x8xi32, #tpu.memory_space<vmem>>, vector<2x8xi32>
    %12 = arith.sitofp %11 : vector<2x8xi32> to vector<2x8xf32>
    %cst_7 = arith.constant 1.000000e+00 : f32
    %13 = vector.broadcast %cst_7 : f32 to vector<2x8xf32>
    %14 = arith.subf %12, %13 : vector<2x8xf32>
    %cst_8 = arith.constant 1.000000e+09 : f32
    %15 = vector.broadcast %cst_8 : f32 to vector<2x8xf32>
    %16 = arith.mulf %14, %15 : vector<2x8xf32>
    %c0_9 = arith.constant 0 : index
    %c0_10 = arith.constant 0 : index
    %17 = vector.load %arg6[%c0_9, %c0_10] : memref<1x32xf32, #tpu.memory_space<vmem>>, vector<1x32xf32>
    %c0_11 = arith.constant 0 : index
    %c0_12 = arith.constant 0 : index
    %18 = vector.load %arg7[%c0_11, %c0_12] : memref<1x32xf32, #tpu.memory_space<vmem>>, vector<1x32xf32>
    %cst_13 = arith.constant dense<0.000000e+00> : vector<16xf32>
    %19 = vector.multi_reduction <add>, %10, %cst_13 [1] : vector<16x32xf32> to vector<16xf32>
    %20 = vector.shape_cast %19 : vector<16xf32> to vector<16x1xf32>
    %cst_14 = arith.constant 3.200000e+01 : f32
    %21 = vector.broadcast %cst_14 : f32 to vector<16x1xf32>
    %22 = arith.divf %20, %21 : vector<16x1xf32>
    %23 = vector.broadcast %22 : vector<16x1xf32> to vector<16x32xf32>
    %24 = arith.subf %10, %23 : vector<16x32xf32>
    %25 = arith.mulf %24, %24 : vector<16x32xf32>
    %cst_15 = arith.constant dense<0.000000e+00> : vector<16xf32>
    %26 = vector.multi_reduction <add>, %25, %cst_15 [1] : vector<16x32xf32> to vector<16xf32>
    %27 = vector.shape_cast %26 : vector<16xf32> to vector<16x1xf32>
    %cst_16 = arith.constant 3.200000e+01 : f32
    %28 = vector.broadcast %cst_16 : f32 to vector<16x1xf32>
    %29 = arith.divf %27, %28 : vector<16x1xf32>
    %30 = vector.broadcast %22 : vector<16x1xf32> to vector<16x32xf32>
    %31 = arith.subf %10, %30 : vector<16x32xf32>
    %cst_17 = arith.constant 9.99999996E-13 : f32
    %32 = vector.broadcast %cst_17 : f32 to vector<16x1xf32>
    %33 = arith.addf %29, %32 : vector<16x1xf32>
    %34 = math.rsqrt %33 : vector<16x1xf32>
    %35 = vector.broadcast %34 : vector<16x1xf32> to vector<16x32xf32>
    %36 = arith.mulf %31, %35 : vector<16x32xf32>
    %37 = vector.broadcast %17 : vector<1x32xf32> to vector<16x32xf32>
    %38 = arith.mulf %36, %37 : vector<16x32xf32>
    %39 = vector.broadcast %18 : vector<1x32xf32> to vector<16x32xf32>
    %40 = arith.addf %38, %39 : vector<16x32xf32>
    %41 = arith.truncf %40 : vector<16x32xf32> to vector<16x32xbf16>
    %c0_18 = arith.constant 0 : index
    %c0_19 = arith.constant 0 : index
    %c0_20 = arith.constant 0 : index
    %42 = vector.load %arg8[%c0_18, %c0_19, %c0_20] : memref<2x32x96xbf16, #tpu.memory_space<vmem>>, vector<1x32x96xbf16>
    %43 = vector.shape_cast %42 : vector<1x32x96xbf16> to vector<32x96xbf16>
    %cst_21 = arith.constant dense<0.000000e+00> : vector<16x96xf32>
    %44 = tpu.matmul %41, %43, %cst_21 {dimension_numbers = #tpu.dot_dimension_numbers<[1], [0], [0], [1], [0, 0, 1, 1], [], []>} : vector<16x32xbf16>, vector<32x96xbf16>, vector<16x96xf32> -> vector<16x96xf32>
    %c0_22 = arith.constant 0 : index
    %c0_23 = arith.constant 0 : index
    %c0_24 = arith.constant 0 : index
    %45 = vector.load %arg9[%c0_22, %c0_23, %c0_24] : memref<2x1x96xf32, #tpu.memory_space<vmem>>, vector<1x1x96xf32>
    %46 = vector.shape_cast %45 : vector<1x1x96xf32> to vector<1x96xf32>
    %47 = vector.broadcast %46 : vector<1x96xf32> to vector<16x96xf32>
    %48 = arith.addf %44, %47 : vector<16x96xf32>
    %49 = vector.extract_strided_slice %16 {offsets = [0, 0], sizes = [1, 8], strides = [1, 1]} : vector<2x8xf32> to vector<1x8xf32>
    %cst_25 = arith.constant 0.000000e+00 : f32
    %50 = vector.broadcast %cst_25 : f32 to vector<8x32xf32>
    %51 = vector.extract_strided_slice %48 {offsets = [0, 0], sizes = [8, 8], strides = [1, 1]} : vector<16x96xf32> to vector<8x8xf32>
    %52 = vector.extract_strided_slice %48 {offsets = [0, 32], sizes = [8, 8], strides = [1, 1]} : vector<16x96xf32> to vector<8x8xf32>
    %53 = vector.extract_strided_slice %48 {offsets = [0, 64], sizes = [8, 8], strides = [1, 1]} : vector<16x96xf32> to vector<8x8xf32>
    %54 = tpu.transpose %52, [1, 0] : vector<8x8xf32> -> vector<8x8xf32>
    %cst_26 = arith.constant dense<0.000000e+00> : vector<8x8xf32>
    %55 = tpu.matmul %51, %54, %cst_26 {dimension_numbers = #tpu.dot_dimension_numbers<[1], [0], [0], [1], [0, 0, 1, 1], [], []>} : vector<8x8xf32>, vector<8x8xf32>, vector<8x8xf32> -> vector<8x8xf32>
    %56 = vector.broadcast %49 : vector<1x8xf32> to vector<8x8xf32>
    %57 = arith.addf %55, %56 : vector<8x8xf32>
    %cst_27 = arith.constant dense<0xFF800000> : vector<8xf32>
    %58 = vector.multi_reduction <maximumf>, %57, %cst_27 [1] : vector<8x8xf32> to vector<8xf32>
    %59 = vector.shape_cast %58 : vector<8xf32> to vector<8x1xf32>
    %60 = vector.broadcast %59 : vector<8x1xf32> to vector<8x8xf32>
    %61 = arith.subf %57, %60 : vector<8x8xf32>
    %62 = math.exp %61 : vector<8x8xf32>
    %cst_28 = arith.constant dense<0.000000e+00> : vector<8xf32>
    %63 = vector.multi_reduction <add>, %62, %cst_28 [1] : vector<8x8xf32> to vector<8xf32>
    %64 = vector.shape_cast %63 : vector<8xf32> to vector<8x1xf32>
    %65 = tpu.reciprocal %64 {approx = true} : vector<8x1xf32> -> vector<8x1xf32>
    %66 = vector.broadcast %65 : vector<8x1xf32> to vector<8x8xf32>
    %67 = arith.mulf %62, %66 : vector<8x8xf32>
    %cst_29 = arith.constant dense<0.000000e+00> : vector<8x8xf32>
    %68 = tpu.matmul %67, %53, %cst_29 {dimension_numbers = #tpu.dot_dimension_numbers<[1], [0], [0], [1], [0, 0, 1, 1], [], []>} : vector<8x8xf32>, vector<8x8xf32>, vector<8x8xf32> -> vector<8x8xf32>
    %69 = arith.truncf %68 : vector<8x8xf32> to vector<8x8xbf16>
    %c0_30 = arith.constant 0 : index
    %c0_31 = arith.constant 0 : index
    %c0_32 = arith.constant 0 : index
    %70 = vector.load %arg10[%c0_30, %c0_31, %c0_32] : memref<2x32x32xbf16, #tpu.memory_space<vmem>>, vector<1x8x32xbf16>
    %71 = vector.shape_cast %70 : vector<1x8x32xbf16> to vector<8x32xbf16>
    %cst_33 = arith.constant dense<0.000000e+00> : vector<8x32xf32>
    %72 = tpu.matmul %69, %71, %cst_33 {dimension_numbers = #tpu.dot_dimension_numbers<[1], [0], [0], [1], [0, 0, 1, 1], [], []>} : vector<8x8xbf16>, vector<8x32xbf16>, vector<8x32xf32> -> vector<8x32xf32>
    %73 = arith.addf %50, %72 : vector<8x32xf32>
    %74 = vector.extract_strided_slice %48 {offsets = [0, 8], sizes = [8, 8], strides = [1, 1]} : vector<16x96xf32> to vector<8x8xf32>
    %75 = vector.extract_strided_slice %48 {offsets = [0, 40], sizes = [8, 8], strides = [1, 1]} : vector<16x96xf32> to vector<8x8xf32>
    %76 = vector.extract_strided_slice %48 {offsets = [0, 72], sizes = [8, 8], strides = [1, 1]} : vector<16x96xf32> to vector<8x8xf32>
    %77 = tpu.transpose %75, [1, 0] : vector<8x8xf32> -> vector<8x8xf32>
    %cst_34 = arith.constant dense<0.000000e+00> : vector<8x8xf32>
    %78 = tpu.matmul %74, %77, %cst_34 {dimension_numbers = #tpu.dot_dimension_numbers<[1], [0], [0], [1], [0, 0, 1, 1], [], []>} : vector<8x8xf32>, vector<8x8xf32>, vector<8x8xf32> -> vector<8x8xf32>
    %79 = vector.broadcast %49 : vector<1x8xf32> to vector<8x8xf32>
    %80 = arith.addf %78, %79 : vector<8x8xf32>
    %cst_35 = arith.constant dense<0xFF800000> : vector<8xf32>
    %81 = vector.multi_reduction <maximumf>, %80, %cst_35 [1] : vector<8x8xf32> to vector<8xf32>
    %82 = vector.shape_cast %81 : vector<8xf32> to vector<8x1xf32>
    %83 = vector.broadcast %82 : vector<8x1xf32> to vector<8x8xf32>
    %84 = arith.subf %80, %83 : vector<8x8xf32>
    %85 = math.exp %84 : vector<8x8xf32>
    %cst_36 = arith.constant dense<0.000000e+00> : vector<8xf32>
    %86 = vector.multi_reduction <add>, %85, %cst_36 [1] : vector<8x8xf32> to vector<8xf32>
    %87 = vector.shape_cast %86 : vector<8xf32> to vector<8x1xf32>
    %88 = tpu.reciprocal %87 {approx = true} : vector<8x1xf32> -> vector<8x1xf32>
    %89 = vector.broadcast %88 : vector<8x1xf32> to vector<8x8xf32>
    %90 = arith.mulf %85, %89 : vector<8x8xf32>
    %cst_37 = arith.constant dense<0.000000e+00> : vector<8x8xf32>
    %91 = tpu.matmul %90, %76, %cst_37 {dimension_numbers = #tpu.dot_dimension_numbers<[1], [0], [0], [1], [0, 0, 1, 1], [], []>} : vector<8x8xf32>, vector<8x8xf32>, vector<8x8xf32> -> vector<8x8xf32>
    %92 = arith.truncf %91 : vector<8x8xf32> to vector<8x8xbf16>
    %c0_38 = arith.constant 0 : index
    %c8 = arith.constant 8 : index
    %c0_39 = arith.constant 0 : index
    %93 = vector.load %arg10[%c0_38, %c8, %c0_39] : memref<2x32x32xbf16, #tpu.memory_space<vmem>>, vector<1x8x32xbf16>
    %94 = vector.shape_cast %93 : vector<1x8x32xbf16> to vector<8x32xbf16>
    %cst_40 = arith.constant dense<0.000000e+00> : vector<8x32xf32>
    %95 = tpu.matmul %92, %94, %cst_40 {dimension_numbers = #tpu.dot_dimension_numbers<[1], [0], [0], [1], [0, 0, 1, 1], [], []>} : vector<8x8xbf16>, vector<8x32xbf16>, vector<8x32xf32> -> vector<8x32xf32>
    %96 = arith.addf %73, %95 : vector<8x32xf32>
    %97 = vector.extract_strided_slice %48 {offsets = [0, 16], sizes = [8, 8], strides = [1, 1]} : vector<16x96xf32> to vector<8x8xf32>
    %98 = vector.extract_strided_slice %48 {offsets = [0, 48], sizes = [8, 8], strides = [1, 1]} : vector<16x96xf32> to vector<8x8xf32>
    %99 = vector.extract_strided_slice %48 {offsets = [0, 80], sizes = [8, 8], strides = [1, 1]} : vector<16x96xf32> to vector<8x8xf32>
    %100 = tpu.transpose %98, [1, 0] : vector<8x8xf32> -> vector<8x8xf32>
    %cst_41 = arith.constant dense<0.000000e+00> : vector<8x8xf32>
    %101 = tpu.matmul %97, %100, %cst_41 {dimension_numbers = #tpu.dot_dimension_numbers<[1], [0], [0], [1], [0, 0, 1, 1], [], []>} : vector<8x8xf32>, vector<8x8xf32>, vector<8x8xf32> -> vector<8x8xf32>
    %102 = vector.broadcast %49 : vector<1x8xf32> to vector<8x8xf32>
    %103 = arith.addf %101, %102 : vector<8x8xf32>
    %cst_42 = arith.constant dense<0xFF800000> : vector<8xf32>
    %104 = vector.multi_reduction <maximumf>, %103, %cst_42 [1] : vector<8x8xf32> to vector<8xf32>
    %105 = vector.shape_cast %104 : vector<8xf32> to vector<8x1xf32>
    %106 = vector.broadcast %105 : vector<8x1xf32> to vector<8x8xf32>
    %107 = arith.subf %103, %106 : vector<8x8xf32>
    %108 = math.exp %107 : vector<8x8xf32>
    %cst_43 = arith.constant dense<0.000000e+00> : vector<8xf32>
    %109 = vector.multi_reduction <add>, %108, %cst_43 [1] : vector<8x8xf32> to vector<8xf32>
    %110 = vector.shape_cast %109 : vector<8xf32> to vector<8x1xf32>
    %111 = tpu.reciprocal %110 {approx = true} : vector<8x1xf32> -> vector<8x1xf32>
    %112 = vector.broadcast %111 : vector<8x1xf32> to vector<8x8xf32>
    %113 = arith.mulf %108, %112 : vector<8x8xf32>
    %cst_44 = arith.constant dense<0.000000e+00> : vector<8x8xf32>
    %114 = tpu.matmul %113, %99, %cst_44 {dimension_numbers = #tpu.dot_dimension_numbers<[1], [0], [0], [1], [0, 0, 1, 1], [], []>} : vector<8x8xf32>, vector<8x8xf32>, vector<8x8xf32> -> vector<8x8xf32>
    %115 = arith.truncf %114 : vector<8x8xf32> to vector<8x8xbf16>
    %c0_45 = arith.constant 0 : index
    %c16 = arith.constant 16 : index
    %c0_46 = arith.constant 0 : index
    %116 = vector.load %arg10[%c0_45, %c16, %c0_46] : memref<2x32x32xbf16, #tpu.memory_space<vmem>>, vector<1x8x32xbf16>
    %117 = vector.shape_cast %116 : vector<1x8x32xbf16> to vector<8x32xbf16>
    %cst_47 = arith.constant dense<0.000000e+00> : vector<8x32xf32>
    %118 = tpu.matmul %115, %117, %cst_47 {dimension_numbers = #tpu.dot_dimension_numbers<[1], [0], [0], [1], [0, 0, 1, 1], [], []>} : vector<8x8xbf16>, vector<8x32xbf16>, vector<8x32xf32> -> vector<8x32xf32>
    %119 = arith.addf %96, %118 : vector<8x32xf32>
    %120 = vector.extract_strided_slice %48 {offsets = [0, 24], sizes = [8, 8], strides = [1, 1]} : vector<16x96xf32> to vector<8x8xf32>
    %121 = vector.extract_strided_slice %48 {offsets = [0, 56], sizes = [8, 8], strides = [1, 1]} : vector<16x96xf32> to vector<8x8xf32>
    %122 = vector.extract_strided_slice %48 {offsets = [0, 88], sizes = [8, 8], strides = [1, 1]} : vector<16x96xf32> to vector<8x8xf32>
    %123 = tpu.transpose %121, [1, 0] : vector<8x8xf32> -> vector<8x8xf32>
    %cst_48 = arith.constant dense<0.000000e+00> : vector<8x8xf32>
    %124 = tpu.matmul %120, %123, %cst_48 {dimension_numbers = #tpu.dot_dimension_numbers<[1], [0], [0], [1], [0, 0, 1, 1], [], []>} : vector<8x8xf32>, vector<8x8xf32>, vector<8x8xf32> -> vector<8x8xf32>
    %125 = vector.broadcast %49 : vector<1x8xf32> to vector<8x8xf32>
    %126 = arith.addf %124, %125 : vector<8x8xf32>
    %cst_49 = arith.constant dense<0xFF800000> : vector<8xf32>
    %127 = vector.multi_reduction <maximumf>, %126, %cst_49 [1] : vector<8x8xf32> to vector<8xf32>
    %128 = vector.shape_cast %127 : vector<8xf32> to vector<8x1xf32>
    %129 = vector.broadcast %128 : vector<8x1xf32> to vector<8x8xf32>
    %130 = arith.subf %126, %129 : vector<8x8xf32>
    %131 = math.exp %130 : vector<8x8xf32>
    %cst_50 = arith.constant dense<0.000000e+00> : vector<8xf32>
    %132 = vector.multi_reduction <add>, %131, %cst_50 [1] : vector<8x8xf32> to vector<8xf32>
    %133 = vector.shape_cast %132 : vector<8xf32> to vector<8x1xf32>
    %134 = tpu.reciprocal %133 {approx = true} : vector<8x1xf32> -> vector<8x1xf32>
    %135 = vector.broadcast %134 : vector<8x1xf32> to vector<8x8xf32>
    %136 = arith.mulf %131, %135 : vector<8x8xf32>
    %cst_51 = arith.constant dense<0.000000e+00> : vector<8x8xf32>
    %137 = tpu.matmul %136, %122, %cst_51 {dimension_numbers = #tpu.dot_dimension_numbers<[1], [0], [0], [1], [0, 0, 1, 1], [], []>} : vector<8x8xf32>, vector<8x8xf32>, vector<8x8xf32> -> vector<8x8xf32>
    %138 = arith.truncf %137 : vector<8x8xf32> to vector<8x8xbf16>
    %c0_52 = arith.constant 0 : index
    %c24 = arith.constant 24 : index
    %c0_53 = arith.constant 0 : index
    %139 = vector.load %arg10[%c0_52, %c24, %c0_53] : memref<2x32x32xbf16, #tpu.memory_space<vmem>>, vector<1x8x32xbf16>
    %140 = vector.shape_cast %139 : vector<1x8x32xbf16> to vector<8x32xbf16>
    %cst_54 = arith.constant dense<0.000000e+00> : vector<8x32xf32>
    %141 = tpu.matmul %138, %140, %cst_54 {dimension_numbers = #tpu.dot_dimension_numbers<[1], [0], [0], [1], [0, 0, 1, 1], [], []>} : vector<8x8xbf16>, vector<8x32xbf16>, vector<8x32xf32> -> vector<8x32xf32>
    %142 = arith.addf %119, %141 : vector<8x32xf32>
    %143 = vector.extract_strided_slice %16 {offsets = [1, 0], sizes = [1, 8], strides = [1, 1]} : vector<2x8xf32> to vector<1x8xf32>
    %cst_55 = arith.constant 0.000000e+00 : f32
    %144 = vector.broadcast %cst_55 : f32 to vector<8x32xf32>
    %145 = vector.extract_strided_slice %48 {offsets = [8, 0], sizes = [8, 8], strides = [1, 1]} : vector<16x96xf32> to vector<8x8xf32>
    %146 = vector.extract_strided_slice %48 {offsets = [8, 32], sizes = [8, 8], strides = [1, 1]} : vector<16x96xf32> to vector<8x8xf32>
    %147 = vector.extract_strided_slice %48 {offsets = [8, 64], sizes = [8, 8], strides = [1, 1]} : vector<16x96xf32> to vector<8x8xf32>
    %148 = tpu.transpose %146, [1, 0] : vector<8x8xf32> -> vector<8x8xf32>
    %cst_56 = arith.constant dense<0.000000e+00> : vector<8x8xf32>
    %149 = tpu.matmul %145, %148, %cst_56 {dimension_numbers = #tpu.dot_dimension_numbers<[1], [0], [0], [1], [0, 0, 1, 1], [], []>} : vector<8x8xf32>, vector<8x8xf32>, vector<8x8xf32> -> vector<8x8xf32>
    %150 = vector.broadcast %143 : vector<1x8xf32> to vector<8x8xf32>
    %151 = arith.addf %149, %150 : vector<8x8xf32>
    %cst_57 = arith.constant dense<0xFF800000> : vector<8xf32>
    %152 = vector.multi_reduction <maximumf>, %151, %cst_57 [1] : vector<8x8xf32> to vector<8xf32>
    %153 = vector.shape_cast %152 : vector<8xf32> to vector<8x1xf32>
    %154 = vector.broadcast %153 : vector<8x1xf32> to vector<8x8xf32>
    %155 = arith.subf %151, %154 : vector<8x8xf32>
    %156 = math.exp %155 : vector<8x8xf32>
    %cst_58 = arith.constant dense<0.000000e+00> : vector<8xf32>
    %157 = vector.multi_reduction <add>, %156, %cst_58 [1] : vector<8x8xf32> to vector<8xf32>
    %158 = vector.shape_cast %157 : vector<8xf32> to vector<8x1xf32>
    %159 = tpu.reciprocal %158 {approx = true} : vector<8x1xf32> -> vector<8x1xf32>
    %160 = vector.broadcast %159 : vector<8x1xf32> to vector<8x8xf32>
    %161 = arith.mulf %156, %160 : vector<8x8xf32>
    %cst_59 = arith.constant dense<0.000000e+00> : vector<8x8xf32>
    %162 = tpu.matmul %161, %147, %cst_59 {dimension_numbers = #tpu.dot_dimension_numbers<[1], [0], [0], [1], [0, 0, 1, 1], [], []>} : vector<8x8xf32>, vector<8x8xf32>, vector<8x8xf32> -> vector<8x8xf32>
    %163 = arith.truncf %162 : vector<8x8xf32> to vector<8x8xbf16>
    %c0_60 = arith.constant 0 : index
    %c0_61 = arith.constant 0 : index
    %c0_62 = arith.constant 0 : index
    %164 = vector.load %arg10[%c0_60, %c0_61, %c0_62] : memref<2x32x32xbf16, #tpu.memory_space<vmem>>, vector<1x8x32xbf16>
    %165 = vector.shape_cast %164 : vector<1x8x32xbf16> to vector<8x32xbf16>
    %cst_63 = arith.constant dense<0.000000e+00> : vector<8x32xf32>
    %166 = tpu.matmul %163, %165, %cst_63 {dimension_numbers = #tpu.dot_dimension_numbers<[1], [0], [0], [1], [0, 0, 1, 1], [], []>} : vector<8x8xbf16>, vector<8x32xbf16>, vector<8x32xf32> -> vector<8x32xf32>
    %167 = arith.addf %144, %166 : vector<8x32xf32>
    %168 = vector.extract_strided_slice %48 {offsets = [8, 8], sizes = [8, 8], strides = [1, 1]} : vector<16x96xf32> to vector<8x8xf32>
    %169 = vector.extract_strided_slice %48 {offsets = [8, 40], sizes = [8, 8], strides = [1, 1]} : vector<16x96xf32> to vector<8x8xf32>
    %170 = vector.extract_strided_slice %48 {offsets = [8, 72], sizes = [8, 8], strides = [1, 1]} : vector<16x96xf32> to vector<8x8xf32>
    %171 = tpu.transpose %169, [1, 0] : vector<8x8xf32> -> vector<8x8xf32>
    %cst_64 = arith.constant dense<0.000000e+00> : vector<8x8xf32>
    %172 = tpu.matmul %168, %171, %cst_64 {dimension_numbers = #tpu.dot_dimension_numbers<[1], [0], [0], [1], [0, 0, 1, 1], [], []>} : vector<8x8xf32>, vector<8x8xf32>, vector<8x8xf32> -> vector<8x8xf32>
    %173 = vector.broadcast %143 : vector<1x8xf32> to vector<8x8xf32>
    %174 = arith.addf %172, %173 : vector<8x8xf32>
    %cst_65 = arith.constant dense<0xFF800000> : vector<8xf32>
    %175 = vector.multi_reduction <maximumf>, %174, %cst_65 [1] : vector<8x8xf32> to vector<8xf32>
    %176 = vector.shape_cast %175 : vector<8xf32> to vector<8x1xf32>
    %177 = vector.broadcast %176 : vector<8x1xf32> to vector<8x8xf32>
    %178 = arith.subf %174, %177 : vector<8x8xf32>
    %179 = math.exp %178 : vector<8x8xf32>
    %cst_66 = arith.constant dense<0.000000e+00> : vector<8xf32>
    %180 = vector.multi_reduction <add>, %179, %cst_66 [1] : vector<8x8xf32> to vector<8xf32>
    %181 = vector.shape_cast %180 : vector<8xf32> to vector<8x1xf32>
    %182 = tpu.reciprocal %181 {approx = true} : vector<8x1xf32> -> vector<8x1xf32>
    %183 = vector.broadcast %182 : vector<8x1xf32> to vector<8x8xf32>
    %184 = arith.mulf %179, %183 : vector<8x8xf32>
    %cst_67 = arith.constant dense<0.000000e+00> : vector<8x8xf32>
    %185 = tpu.matmul %184, %170, %cst_67 {dimension_numbers = #tpu.dot_dimension_numbers<[1], [0], [0], [1], [0, 0, 1, 1], [], []>} : vector<8x8xf32>, vector<8x8xf32>, vector<8x8xf32> -> vector<8x8xf32>
    %186 = arith.truncf %185 : vector<8x8xf32> to vector<8x8xbf16>
    %c0_68 = arith.constant 0 : index
    %c8_69 = arith.constant 8 : index
    %c0_70 = arith.constant 0 : index
    %187 = vector.load %arg10[%c0_68, %c8_69, %c0_70] : memref<2x32x32xbf16, #tpu.memory_space<vmem>>, vector<1x8x32xbf16>
    %188 = vector.shape_cast %187 : vector<1x8x32xbf16> to vector<8x32xbf16>
    %cst_71 = arith.constant dense<0.000000e+00> : vector<8x32xf32>
    %189 = tpu.matmul %186, %188, %cst_71 {dimension_numbers = #tpu.dot_dimension_numbers<[1], [0], [0], [1], [0, 0, 1, 1], [], []>} : vector<8x8xbf16>, vector<8x32xbf16>, vector<8x32xf32> -> vector<8x32xf32>
    %190 = arith.addf %167, %189 : vector<8x32xf32>
    %191 = vector.extract_strided_slice %48 {offsets = [8, 16], sizes = [8, 8], strides = [1, 1]} : vector<16x96xf32> to vector<8x8xf32>
    %192 = vector.extract_strided_slice %48 {offsets = [8, 48], sizes = [8, 8], strides = [1, 1]} : vector<16x96xf32> to vector<8x8xf32>
    %193 = vector.extract_strided_slice %48 {offsets = [8, 80], sizes = [8, 8], strides = [1, 1]} : vector<16x96xf32> to vector<8x8xf32>
    %194 = tpu.transpose %192, [1, 0] : vector<8x8xf32> -> vector<8x8xf32>
    %cst_72 = arith.constant dense<0.000000e+00> : vector<8x8xf32>
    %195 = tpu.matmul %191, %194, %cst_72 {dimension_numbers = #tpu.dot_dimension_numbers<[1], [0], [0], [1], [0, 0, 1, 1], [], []>} : vector<8x8xf32>, vector<8x8xf32>, vector<8x8xf32> -> vector<8x8xf32>
    %196 = vector.broadcast %143 : vector<1x8xf32> to vector<8x8xf32>
    %197 = arith.addf %195, %196 : vector<8x8xf32>
    %cst_73 = arith.constant dense<0xFF800000> : vector<8xf32>
    %198 = vector.multi_reduction <maximumf>, %197, %cst_73 [1] : vector<8x8xf32> to vector<8xf32>
    %199 = vector.shape_cast %198 : vector<8xf32> to vector<8x1xf32>
    %200 = vector.broadcast %199 : vector<8x1xf32> to vector<8x8xf32>
    %201 = arith.subf %197, %200 : vector<8x8xf32>
    %202 = math.exp %201 : vector<8x8xf32>
    %cst_74 = arith.constant dense<0.000000e+00> : vector<8xf32>
    %203 = vector.multi_reduction <add>, %202, %cst_74 [1] : vector<8x8xf32> to vector<8xf32>
    %204 = vector.shape_cast %203 : vector<8xf32> to vector<8x1xf32>
    %205 = tpu.reciprocal %204 {approx = true} : vector<8x1xf32> -> vector<8x1xf32>
    %206 = vector.broadcast %205 : vector<8x1xf32> to vector<8x8xf32>
    %207 = arith.mulf %202, %206 : vector<8x8xf32>
    %cst_75 = arith.constant dense<0.000000e+00> : vector<8x8xf32>
    %208 = tpu.matmul %207, %193, %cst_75 {dimension_numbers = #tpu.dot_dimension_numbers<[1], [0], [0], [1], [0, 0, 1, 1], [], []>} : vector<8x8xf32>, vector<8x8xf32>, vector<8x8xf32> -> vector<8x8xf32>
    %209 = arith.truncf %208 : vector<8x8xf32> to vector<8x8xbf16>
    %c0_76 = arith.constant 0 : index
    %c16_77 = arith.constant 16 : index
    %c0_78 = arith.constant 0 : index
    %210 = vector.load %arg10[%c0_76, %c16_77, %c0_78] : memref<2x32x32xbf16, #tpu.memory_space<vmem>>, vector<1x8x32xbf16>
    %211 = vector.shape_cast %210 : vector<1x8x32xbf16> to vector<8x32xbf16>
    %cst_79 = arith.constant dense<0.000000e+00> : vector<8x32xf32>
    %212 = tpu.matmul %209, %211, %cst_79 {dimension_numbers = #tpu.dot_dimension_numbers<[1], [0], [0], [1], [0, 0, 1, 1], [], []>} : vector<8x8xbf16>, vector<8x32xbf16>, vector<8x32xf32> -> vector<8x32xf32>
    %213 = arith.addf %190, %212 : vector<8x32xf32>
    %214 = vector.extract_strided_slice %48 {offsets = [8, 24], sizes = [8, 8], strides = [1, 1]} : vector<16x96xf32> to vector<8x8xf32>
    %215 = vector.extract_strided_slice %48 {offsets = [8, 56], sizes = [8, 8], strides = [1, 1]} : vector<16x96xf32> to vector<8x8xf32>
    %216 = vector.extract_strided_slice %48 {offsets = [8, 88], sizes = [8, 8], strides = [1, 1]} : vector<16x96xf32> to vector<8x8xf32>
    %217 = tpu.transpose %215, [1, 0] : vector<8x8xf32> -> vector<8x8xf32>
    %cst_80 = arith.constant dense<0.000000e+00> : vector<8x8xf32>
    %218 = tpu.matmul %214, %217, %cst_80 {dimension_numbers = #tpu.dot_dimension_numbers<[1], [0], [0], [1], [0, 0, 1, 1], [], []>} : vector<8x8xf32>, vector<8x8xf32>, vector<8x8xf32> -> vector<8x8xf32>
    %219 = vector.broadcast %143 : vector<1x8xf32> to vector<8x8xf32>
    %220 = arith.addf %218, %219 : vector<8x8xf32>
    %cst_81 = arith.constant dense<0xFF800000> : vector<8xf32>
    %221 = vector.multi_reduction <maximumf>, %220, %cst_81 [1] : vector<8x8xf32> to vector<8xf32>
    %222 = vector.shape_cast %221 : vector<8xf32> to vector<8x1xf32>
    %223 = vector.broadcast %222 : vector<8x1xf32> to vector<8x8xf32>
    %224 = arith.subf %220, %223 : vector<8x8xf32>
    %225 = math.exp %224 : vector<8x8xf32>
    %cst_82 = arith.constant dense<0.000000e+00> : vector<8xf32>
    %226 = vector.multi_reduction <add>, %225, %cst_82 [1] : vector<8x8xf32> to vector<8xf32>
    %227 = vector.shape_cast %226 : vector<8xf32> to vector<8x1xf32>
    %228 = tpu.reciprocal %227 {approx = true} : vector<8x1xf32> -> vector<8x1xf32>
    %229 = vector.broadcast %228 : vector<8x1xf32> to vector<8x8xf32>
    %230 = arith.mulf %225, %229 : vector<8x8xf32>
    %cst_83 = arith.constant dense<0.000000e+00> : vector<8x8xf32>
    %231 = tpu.matmul %230, %216, %cst_83 {dimension_numbers = #tpu.dot_dimension_numbers<[1], [0], [0], [1], [0, 0, 1, 1], [], []>} : vector<8x8xf32>, vector<8x8xf32>, vector<8x8xf32> -> vector<8x8xf32>
    %232 = arith.truncf %231 : vector<8x8xf32> to vector<8x8xbf16>
    %c0_84 = arith.constant 0 : index
    %c24_85 = arith.constant 24 : index
    %c0_86 = arith.constant 0 : index
    %233 = vector.load %arg10[%c0_84, %c24_85, %c0_86] : memref<2x32x32xbf16, #tpu.memory_space<vmem>>, vector<1x8x32xbf16>
    %234 = vector.shape_cast %233 : vector<1x8x32xbf16> to vector<8x32xbf16>
    %cst_87 = arith.constant dense<0.000000e+00> : vector<8x32xf32>
    %235 = tpu.matmul %232, %234, %cst_87 {dimension_numbers = #tpu.dot_dimension_numbers<[1], [0], [0], [1], [0, 0, 1, 1], [], []>} : vector<8x8xbf16>, vector<8x32xbf16>, vector<8x32xf32> -> vector<8x32xf32>
    %236 = arith.addf %213, %235 : vector<8x32xf32>
    %237 = tpu.concatenate %142, %236 in 0 : vector<8x32xf32>, vector<8x32xf32> -> vector<16x32xf32>
    %c0_88 = arith.constant 0 : index
    %c0_89 = arith.constant 0 : index
    %c0_90 = arith.constant 0 : index
    %238 = vector.load %arg11[%c0_88, %c0_89, %c0_90] : memref<2x1x32xf32, #tpu.memory_space<vmem>>, vector<1x1x32xf32>
    %239 = vector.shape_cast %238 : vector<1x1x32xf32> to vector<1x32xf32>
    %240 = vector.broadcast %239 : vector<1x32xf32> to vector<16x32xf32>
    %241 = arith.addf %237, %240 : vector<16x32xf32>
    %242 = arith.addf %241, %40 : vector<16x32xf32>
    %c0_91 = arith.constant 0 : index
    %c0_92 = arith.constant 0 : index
    %c0_93 = arith.constant 0 : index
    %243 = vector.load %arg12[%c0_91, %c0_92, %c0_93] : memref<2x1x32xf32, #tpu.memory_space<vmem>>, vector<1x1x32xf32>
    %244 = vector.shape_cast %243 : vector<1x1x32xf32> to vector<1x32xf32>
    %c0_94 = arith.constant 0 : index
    %c0_95 = arith.constant 0 : index
    %c0_96 = arith.constant 0 : index
    %245 = vector.load %arg13[%c0_94, %c0_95, %c0_96] : memref<2x1x32xf32, #tpu.memory_space<vmem>>, vector<1x1x32xf32>
    %246 = vector.shape_cast %245 : vector<1x1x32xf32> to vector<1x32xf32>
    %cst_97 = arith.constant dense<0.000000e+00> : vector<16xf32>
    %247 = vector.multi_reduction <add>, %242, %cst_97 [1] : vector<16x32xf32> to vector<16xf32>
    %248 = vector.shape_cast %247 : vector<16xf32> to vector<16x1xf32>
    %cst_98 = arith.constant 3.200000e+01 : f32
    %249 = vector.broadcast %cst_98 : f32 to vector<16x1xf32>
    %250 = arith.divf %248, %249 : vector<16x1xf32>
    %251 = vector.broadcast %250 : vector<16x1xf32> to vector<16x32xf32>
    %252 = arith.subf %242, %251 : vector<16x32xf32>
    %253 = arith.mulf %252, %252 : vector<16x32xf32>
    %cst_99 = arith.constant dense<0.000000e+00> : vector<16xf32>
    %254 = vector.multi_reduction <add>, %253, %cst_99 [1] : vector<16x32xf32> to vector<16xf32>
    %255 = vector.shape_cast %254 : vector<16xf32> to vector<16x1xf32>
    %cst_100 = arith.constant 3.200000e+01 : f32
    %256 = vector.broadcast %cst_100 : f32 to vector<16x1xf32>
    %257 = arith.divf %255, %256 : vector<16x1xf32>
    %258 = vector.broadcast %250 : vector<16x1xf32> to vector<16x32xf32>
    %259 = arith.subf %242, %258 : vector<16x32xf32>
    %cst_101 = arith.constant 9.99999996E-13 : f32
    %260 = vector.broadcast %cst_101 : f32 to vector<16x1xf32>
    %261 = arith.addf %257, %260 : vector<16x1xf32>
    %262 = math.rsqrt %261 : vector<16x1xf32>
    %263 = vector.broadcast %262 : vector<16x1xf32> to vector<16x32xf32>
    %264 = arith.mulf %259, %263 : vector<16x32xf32>
    %265 = vector.broadcast %244 : vector<1x32xf32> to vector<16x32xf32>
    %266 = arith.mulf %264, %265 : vector<16x32xf32>
    %267 = vector.broadcast %246 : vector<1x32xf32> to vector<16x32xf32>
    %268 = arith.addf %266, %267 : vector<16x32xf32>
    %269 = arith.truncf %268 : vector<16x32xf32> to vector<16x32xbf16>
    %c0_102 = arith.constant 0 : index
    %c0_103 = arith.constant 0 : index
    %c0_104 = arith.constant 0 : index
    %270 = vector.load %arg14[%c0_102, %c0_103, %c0_104] : memref<2x32x64xbf16, #tpu.memory_space<vmem>>, vector<1x32x64xbf16>
    %271 = vector.shape_cast %270 : vector<1x32x64xbf16> to vector<32x64xbf16>
    %cst_105 = arith.constant dense<0.000000e+00> : vector<16x64xf32>
    %272 = tpu.matmul %269, %271, %cst_105 {dimension_numbers = #tpu.dot_dimension_numbers<[1], [0], [0], [1], [0, 0, 1, 1], [], []>} : vector<16x32xbf16>, vector<32x64xbf16>, vector<16x64xf32> -> vector<16x64xf32>
    %c0_106 = arith.constant 0 : index
    %c0_107 = arith.constant 0 : index
    %c0_108 = arith.constant 0 : index
    %273 = vector.load %arg15[%c0_106, %c0_107, %c0_108] : memref<2x1x64xf32, #tpu.memory_space<vmem>>, vector<1x1x64xf32>
    %274 = vector.shape_cast %273 : vector<1x1x64xf32> to vector<1x64xf32>
    %275 = vector.broadcast %274 : vector<1x64xf32> to vector<16x64xf32>
    %276 = arith.addf %272, %275 : vector<16x64xf32>
    %277 = arith.mulf %276, %276 : vector<16x64xf32>
    %278 = arith.mulf %276, %277 : vector<16x64xf32>
    %cst_109 = arith.constant 4.471500e-02 : f32
    %279 = vector.broadcast %cst_109 : f32 to vector<16x64xf32>
    %280 = arith.mulf %279, %278 : vector<16x64xf32>
    %281 = arith.addf %276, %280 : vector<16x64xf32>
    %cst_110 = arith.constant 0.797884583 : f32
    %282 = vector.broadcast %cst_110 : f32 to vector<16x64xf32>
    %283 = arith.mulf %282, %281 : vector<16x64xf32>
    %284 = math.tanh %283 : vector<16x64xf32>
    %cst_111 = arith.constant 1.000000e+00 : f32
    %285 = vector.broadcast %cst_111 : f32 to vector<16x64xf32>
    %286 = arith.addf %285, %284 : vector<16x64xf32>
    %cst_112 = arith.constant 5.000000e-01 : f32
    %287 = vector.broadcast %cst_112 : f32 to vector<16x64xf32>
    %288 = arith.mulf %287, %286 : vector<16x64xf32>
    %289 = arith.mulf %276, %288 : vector<16x64xf32>
    %290 = arith.truncf %289 : vector<16x64xf32> to vector<16x64xbf16>
    %c0_113 = arith.constant 0 : index
    %c0_114 = arith.constant 0 : index
    %c0_115 = arith.constant 0 : index
    %291 = vector.load %arg16[%c0_113, %c0_114, %c0_115] : memref<2x64x32xbf16, #tpu.memory_space<vmem>>, vector<1x64x32xbf16>
    %292 = vector.shape_cast %291 : vector<1x64x32xbf16> to vector<64x32xbf16>
    %cst_116 = arith.constant dense<0.000000e+00> : vector<16x32xf32>
    %293 = tpu.matmul %290, %292, %cst_116 {dimension_numbers = #tpu.dot_dimension_numbers<[1], [0], [0], [1], [0, 0, 1, 1], [], []>} : vector<16x64xbf16>, vector<64x32xbf16>, vector<16x32xf32> -> vector<16x32xf32>
    %c0_117 = arith.constant 0 : index
    %c0_118 = arith.constant 0 : index
    %c0_119 = arith.constant 0 : index
    %294 = vector.load %arg17[%c0_117, %c0_118, %c0_119] : memref<2x1x32xf32, #tpu.memory_space<vmem>>, vector<1x1x32xf32>
    %295 = vector.shape_cast %294 : vector<1x1x32xf32> to vector<1x32xf32>
    %296 = vector.broadcast %295 : vector<1x32xf32> to vector<16x32xf32>
    %297 = arith.addf %293, %296 : vector<16x32xf32>
    %298 = arith.addf %297, %268 : vector<16x32xf32>
    %c0_120 = arith.constant 0 : index
    %c0_121 = arith.constant 0 : index
    %c0_122 = arith.constant 0 : index
    %299 = vector.load %arg18[%c0_120, %c0_121, %c0_122] : memref<2x1x32xf32, #tpu.memory_space<vmem>>, vector<1x1x32xf32>
    %300 = vector.shape_cast %299 : vector<1x1x32xf32> to vector<1x32xf32>
    %c0_123 = arith.constant 0 : index
    %c0_124 = arith.constant 0 : index
    %c0_125 = arith.constant 0 : index
    %301 = vector.load %arg19[%c0_123, %c0_124, %c0_125] : memref<2x1x32xf32, #tpu.memory_space<vmem>>, vector<1x1x32xf32>
    %302 = vector.shape_cast %301 : vector<1x1x32xf32> to vector<1x32xf32>
    %cst_126 = arith.constant dense<0.000000e+00> : vector<16xf32>
    %303 = vector.multi_reduction <add>, %298, %cst_126 [1] : vector<16x32xf32> to vector<16xf32>
    %304 = vector.shape_cast %303 : vector<16xf32> to vector<16x1xf32>
    %cst_127 = arith.constant 3.200000e+01 : f32
    %305 = vector.broadcast %cst_127 : f32 to vector<16x1xf32>
    %306 = arith.divf %304, %305 : vector<16x1xf32>
    %307 = vector.broadcast %306 : vector<16x1xf32> to vector<16x32xf32>
    %308 = arith.subf %298, %307 : vector<16x32xf32>
    %309 = arith.mulf %308, %308 : vector<16x32xf32>
    %cst_128 = arith.constant dense<0.000000e+00> : vector<16xf32>
    %310 = vector.multi_reduction <add>, %309, %cst_128 [1] : vector<16x32xf32> to vector<16xf32>
    %311 = vector.shape_cast %310 : vector<16xf32> to vector<16x1xf32>
    %cst_129 = arith.constant 3.200000e+01 : f32
    %312 = vector.broadcast %cst_129 : f32 to vector<16x1xf32>
    %313 = arith.divf %311, %312 : vector<16x1xf32>
    %314 = vector.broadcast %306 : vector<16x1xf32> to vector<16x32xf32>
    %315 = arith.subf %298, %314 : vector<16x32xf32>
    %cst_130 = arith.constant 9.99999996E-13 : f32
    %316 = vector.broadcast %cst_130 : f32 to vector<16x1xf32>
    %317 = arith.addf %313, %316 : vector<16x1xf32>
    %318 = math.rsqrt %317 : vector<16x1xf32>
    %319 = vector.broadcast %318 : vector<16x1xf32> to vector<16x32xf32>
    %320 = arith.mulf %315, %319 : vector<16x32xf32>
    %321 = vector.broadcast %300 : vector<1x32xf32> to vector<16x32xf32>
    %322 = arith.mulf %320, %321 : vector<16x32xf32>
    %323 = vector.broadcast %302 : vector<1x32xf32> to vector<16x32xf32>
    %324 = arith.addf %322, %323 : vector<16x32xf32>
    %325 = arith.truncf %324 : vector<16x32xf32> to vector<16x32xbf16>
    %c1 = arith.constant 1 : index
    %c0_131 = arith.constant 0 : index
    %c0_132 = arith.constant 0 : index
    %326 = vector.load %arg8[%c1, %c0_131, %c0_132] : memref<2x32x96xbf16, #tpu.memory_space<vmem>>, vector<1x32x96xbf16>
    %327 = vector.shape_cast %326 : vector<1x32x96xbf16> to vector<32x96xbf16>
    %cst_133 = arith.constant dense<0.000000e+00> : vector<16x96xf32>
    %328 = tpu.matmul %325, %327, %cst_133 {dimension_numbers = #tpu.dot_dimension_numbers<[1], [0], [0], [1], [0, 0, 1, 1], [], []>} : vector<16x32xbf16>, vector<32x96xbf16>, vector<16x96xf32> -> vector<16x96xf32>
    %c1_134 = arith.constant 1 : index
    %c0_135 = arith.constant 0 : index
    %c0_136 = arith.constant 0 : index
    %329 = vector.load %arg9[%c1_134, %c0_135, %c0_136] : memref<2x1x96xf32, #tpu.memory_space<vmem>>, vector<1x1x96xf32>
    %330 = vector.shape_cast %329 : vector<1x1x96xf32> to vector<1x96xf32>
    %331 = vector.broadcast %330 : vector<1x96xf32> to vector<16x96xf32>
    %332 = arith.addf %328, %331 : vector<16x96xf32>
    %333 = vector.extract_strided_slice %16 {offsets = [0, 0], sizes = [1, 8], strides = [1, 1]} : vector<2x8xf32> to vector<1x8xf32>
    %cst_137 = arith.constant 0.000000e+00 : f32
    %334 = vector.broadcast %cst_137 : f32 to vector<8x32xf32>
    %335 = vector.extract_strided_slice %332 {offsets = [0, 0], sizes = [8, 8], strides = [1, 1]} : vector<16x96xf32> to vector<8x8xf32>
    %336 = vector.extract_strided_slice %332 {offsets = [0, 32], sizes = [8, 8], strides = [1, 1]} : vector<16x96xf32> to vector<8x8xf32>
    %337 = vector.extract_strided_slice %332 {offsets = [0, 64], sizes = [8, 8], strides = [1, 1]} : vector<16x96xf32> to vector<8x8xf32>
    %338 = tpu.transpose %336, [1, 0] : vector<8x8xf32> -> vector<8x8xf32>
    %cst_138 = arith.constant dense<0.000000e+00> : vector<8x8xf32>
    %339 = tpu.matmul %335, %338, %cst_138 {dimension_numbers = #tpu.dot_dimension_numbers<[1], [0], [0], [1], [0, 0, 1, 1], [], []>} : vector<8x8xf32>, vector<8x8xf32>, vector<8x8xf32> -> vector<8x8xf32>
    %340 = vector.broadcast %333 : vector<1x8xf32> to vector<8x8xf32>
    %341 = arith.addf %339, %340 : vector<8x8xf32>
    %cst_139 = arith.constant dense<0xFF800000> : vector<8xf32>
    %342 = vector.multi_reduction <maximumf>, %341, %cst_139 [1] : vector<8x8xf32> to vector<8xf32>
    %343 = vector.shape_cast %342 : vector<8xf32> to vector<8x1xf32>
    %344 = vector.broadcast %343 : vector<8x1xf32> to vector<8x8xf32>
    %345 = arith.subf %341, %344 : vector<8x8xf32>
    %346 = math.exp %345 : vector<8x8xf32>
    %cst_140 = arith.constant dense<0.000000e+00> : vector<8xf32>
    %347 = vector.multi_reduction <add>, %346, %cst_140 [1] : vector<8x8xf32> to vector<8xf32>
    %348 = vector.shape_cast %347 : vector<8xf32> to vector<8x1xf32>
    %349 = tpu.reciprocal %348 {approx = true} : vector<8x1xf32> -> vector<8x1xf32>
    %350 = vector.broadcast %349 : vector<8x1xf32> to vector<8x8xf32>
    %351 = arith.mulf %346, %350 : vector<8x8xf32>
    %cst_141 = arith.constant dense<0.000000e+00> : vector<8x8xf32>
    %352 = tpu.matmul %351, %337, %cst_141 {dimension_numbers = #tpu.dot_dimension_numbers<[1], [0], [0], [1], [0, 0, 1, 1], [], []>} : vector<8x8xf32>, vector<8x8xf32>, vector<8x8xf32> -> vector<8x8xf32>
    %353 = arith.truncf %352 : vector<8x8xf32> to vector<8x8xbf16>
    %c1_142 = arith.constant 1 : index
    %c0_143 = arith.constant 0 : index
    %c0_144 = arith.constant 0 : index
    %354 = vector.load %arg10[%c1_142, %c0_143, %c0_144] : memref<2x32x32xbf16, #tpu.memory_space<vmem>>, vector<1x8x32xbf16>
    %355 = vector.shape_cast %354 : vector<1x8x32xbf16> to vector<8x32xbf16>
    %cst_145 = arith.constant dense<0.000000e+00> : vector<8x32xf32>
    %356 = tpu.matmul %353, %355, %cst_145 {dimension_numbers = #tpu.dot_dimension_numbers<[1], [0], [0], [1], [0, 0, 1, 1], [], []>} : vector<8x8xbf16>, vector<8x32xbf16>, vector<8x32xf32> -> vector<8x32xf32>
    %357 = arith.addf %334, %356 : vector<8x32xf32>
    %358 = vector.extract_strided_slice %332 {offsets = [0, 8], sizes = [8, 8], strides = [1, 1]} : vector<16x96xf32> to vector<8x8xf32>
    %359 = vector.extract_strided_slice %332 {offsets = [0, 40], sizes = [8, 8], strides = [1, 1]} : vector<16x96xf32> to vector<8x8xf32>
    %360 = vector.extract_strided_slice %332 {offsets = [0, 72], sizes = [8, 8], strides = [1, 1]} : vector<16x96xf32> to vector<8x8xf32>
    %361 = tpu.transpose %359, [1, 0] : vector<8x8xf32> -> vector<8x8xf32>
    %cst_146 = arith.constant dense<0.000000e+00> : vector<8x8xf32>
    %362 = tpu.matmul %358, %361, %cst_146 {dimension_numbers = #tpu.dot_dimension_numbers<[1], [0], [0], [1], [0, 0, 1, 1], [], []>} : vector<8x8xf32>, vector<8x8xf32>, vector<8x8xf32> -> vector<8x8xf32>
    %363 = vector.broadcast %333 : vector<1x8xf32> to vector<8x8xf32>
    %364 = arith.addf %362, %363 : vector<8x8xf32>
    %cst_147 = arith.constant dense<0xFF800000> : vector<8xf32>
    %365 = vector.multi_reduction <maximumf>, %364, %cst_147 [1] : vector<8x8xf32> to vector<8xf32>
    %366 = vector.shape_cast %365 : vector<8xf32> to vector<8x1xf32>
    %367 = vector.broadcast %366 : vector<8x1xf32> to vector<8x8xf32>
    %368 = arith.subf %364, %367 : vector<8x8xf32>
    %369 = math.exp %368 : vector<8x8xf32>
    %cst_148 = arith.constant dense<0.000000e+00> : vector<8xf32>
    %370 = vector.multi_reduction <add>, %369, %cst_148 [1] : vector<8x8xf32> to vector<8xf32>
    %371 = vector.shape_cast %370 : vector<8xf32> to vector<8x1xf32>
    %372 = tpu.reciprocal %371 {approx = true} : vector<8x1xf32> -> vector<8x1xf32>
    %373 = vector.broadcast %372 : vector<8x1xf32> to vector<8x8xf32>
    %374 = arith.mulf %369, %373 : vector<8x8xf32>
    %cst_149 = arith.constant dense<0.000000e+00> : vector<8x8xf32>
    %375 = tpu.matmul %374, %360, %cst_149 {dimension_numbers = #tpu.dot_dimension_numbers<[1], [0], [0], [1], [0, 0, 1, 1], [], []>} : vector<8x8xf32>, vector<8x8xf32>, vector<8x8xf32> -> vector<8x8xf32>
    %376 = arith.truncf %375 : vector<8x8xf32> to vector<8x8xbf16>
    %c1_150 = arith.constant 1 : index
    %c8_151 = arith.constant 8 : index
    %c0_152 = arith.constant 0 : index
    %377 = vector.load %arg10[%c1_150, %c8_151, %c0_152] : memref<2x32x32xbf16, #tpu.memory_space<vmem>>, vector<1x8x32xbf16>
    %378 = vector.shape_cast %377 : vector<1x8x32xbf16> to vector<8x32xbf16>
    %cst_153 = arith.constant dense<0.000000e+00> : vector<8x32xf32>
    %379 = tpu.matmul %376, %378, %cst_153 {dimension_numbers = #tpu.dot_dimension_numbers<[1], [0], [0], [1], [0, 0, 1, 1], [], []>} : vector<8x8xbf16>, vector<8x32xbf16>, vector<8x32xf32> -> vector<8x32xf32>
    %380 = arith.addf %357, %379 : vector<8x32xf32>
    %381 = vector.extract_strided_slice %332 {offsets = [0, 16], sizes = [8, 8], strides = [1, 1]} : vector<16x96xf32> to vector<8x8xf32>
    %382 = vector.extract_strided_slice %332 {offsets = [0, 48], sizes = [8, 8], strides = [1, 1]} : vector<16x96xf32> to vector<8x8xf32>
    %383 = vector.extract_strided_slice %332 {offsets = [0, 80], sizes = [8, 8], strides = [1, 1]} : vector<16x96xf32> to vector<8x8xf32>
    %384 = tpu.transpose %382, [1, 0] : vector<8x8xf32> -> vector<8x8xf32>
    %cst_154 = arith.constant dense<0.000000e+00> : vector<8x8xf32>
    %385 = tpu.matmul %381, %384, %cst_154 {dimension_numbers = #tpu.dot_dimension_numbers<[1], [0], [0], [1], [0, 0, 1, 1], [], []>} : vector<8x8xf32>, vector<8x8xf32>, vector<8x8xf32> -> vector<8x8xf32>
    %386 = vector.broadcast %333 : vector<1x8xf32> to vector<8x8xf32>
    %387 = arith.addf %385, %386 : vector<8x8xf32>
    %cst_155 = arith.constant dense<0xFF800000> : vector<8xf32>
    %388 = vector.multi_reduction <maximumf>, %387, %cst_155 [1] : vector<8x8xf32> to vector<8xf32>
    %389 = vector.shape_cast %388 : vector<8xf32> to vector<8x1xf32>
    %390 = vector.broadcast %389 : vector<8x1xf32> to vector<8x8xf32>
    %391 = arith.subf %387, %390 : vector<8x8xf32>
    %392 = math.exp %391 : vector<8x8xf32>
    %cst_156 = arith.constant dense<0.000000e+00> : vector<8xf32>
    %393 = vector.multi_reduction <add>, %392, %cst_156 [1] : vector<8x8xf32> to vector<8xf32>
    %394 = vector.shape_cast %393 : vector<8xf32> to vector<8x1xf32>
    %395 = tpu.reciprocal %394 {approx = true} : vector<8x1xf32> -> vector<8x1xf32>
    %396 = vector.broadcast %395 : vector<8x1xf32> to vector<8x8xf32>
    %397 = arith.mulf %392, %396 : vector<8x8xf32>
    %cst_157 = arith.constant dense<0.000000e+00> : vector<8x8xf32>
    %398 = tpu.matmul %397, %383, %cst_157 {dimension_numbers = #tpu.dot_dimension_numbers<[1], [0], [0], [1], [0, 0, 1, 1], [], []>} : vector<8x8xf32>, vector<8x8xf32>, vector<8x8xf32> -> vector<8x8xf32>
    %399 = arith.truncf %398 : vector<8x8xf32> to vector<8x8xbf16>
    %c1_158 = arith.constant 1 : index
    %c16_159 = arith.constant 16 : index
    %c0_160 = arith.constant 0 : index
    %400 = vector.load %arg10[%c1_158, %c16_159, %c0_160] : memref<2x32x32xbf16, #tpu.memory_space<vmem>>, vector<1x8x32xbf16>
    %401 = vector.shape_cast %400 : vector<1x8x32xbf16> to vector<8x32xbf16>
    %cst_161 = arith.constant dense<0.000000e+00> : vector<8x32xf32>
    %402 = tpu.matmul %399, %401, %cst_161 {dimension_numbers = #tpu.dot_dimension_numbers<[1], [0], [0], [1], [0, 0, 1, 1], [], []>} : vector<8x8xbf16>, vector<8x32xbf16>, vector<8x32xf32> -> vector<8x32xf32>
    %403 = arith.addf %380, %402 : vector<8x32xf32>
    %404 = vector.extract_strided_slice %332 {offsets = [0, 24], sizes = [8, 8], strides = [1, 1]} : vector<16x96xf32> to vector<8x8xf32>
    %405 = vector.extract_strided_slice %332 {offsets = [0, 56], sizes = [8, 8], strides = [1, 1]} : vector<16x96xf32> to vector<8x8xf32>
    %406 = vector.extract_strided_slice %332 {offsets = [0, 88], sizes = [8, 8], strides = [1, 1]} : vector<16x96xf32> to vector<8x8xf32>
    %407 = tpu.transpose %405, [1, 0] : vector<8x8xf32> -> vector<8x8xf32>
    %cst_162 = arith.constant dense<0.000000e+00> : vector<8x8xf32>
    %408 = tpu.matmul %404, %407, %cst_162 {dimension_numbers = #tpu.dot_dimension_numbers<[1], [0], [0], [1], [0, 0, 1, 1], [], []>} : vector<8x8xf32>, vector<8x8xf32>, vector<8x8xf32> -> vector<8x8xf32>
    %409 = vector.broadcast %333 : vector<1x8xf32> to vector<8x8xf32>
    %410 = arith.addf %408, %409 : vector<8x8xf32>
    %cst_163 = arith.constant dense<0xFF800000> : vector<8xf32>
    %411 = vector.multi_reduction <maximumf>, %410, %cst_163 [1] : vector<8x8xf32> to vector<8xf32>
    %412 = vector.shape_cast %411 : vector<8xf32> to vector<8x1xf32>
    %413 = vector.broadcast %412 : vector<8x1xf32> to vector<8x8xf32>
    %414 = arith.subf %410, %413 : vector<8x8xf32>
    %415 = math.exp %414 : vector<8x8xf32>
    %cst_164 = arith.constant dense<0.000000e+00> : vector<8xf32>
    %416 = vector.multi_reduction <add>, %415, %cst_164 [1] : vector<8x8xf32> to vector<8xf32>
    %417 = vector.shape_cast %416 : vector<8xf32> to vector<8x1xf32>
    %418 = tpu.reciprocal %417 {approx = true} : vector<8x1xf32> -> vector<8x1xf32>
    %419 = vector.broadcast %418 : vector<8x1xf32> to vector<8x8xf32>
    %420 = arith.mulf %415, %419 : vector<8x8xf32>
    %cst_165 = arith.constant dense<0.000000e+00> : vector<8x8xf32>
    %421 = tpu.matmul %420, %406, %cst_165 {dimension_numbers = #tpu.dot_dimension_numbers<[1], [0], [0], [1], [0, 0, 1, 1], [], []>} : vector<8x8xf32>, vector<8x8xf32>, vector<8x8xf32> -> vector<8x8xf32>
    %422 = arith.truncf %421 : vector<8x8xf32> to vector<8x8xbf16>
    %c1_166 = arith.constant 1 : index
    %c24_167 = arith.constant 24 : index
    %c0_168 = arith.constant 0 : index
    %423 = vector.load %arg10[%c1_166, %c24_167, %c0_168] : memref<2x32x32xbf16, #tpu.memory_space<vmem>>, vector<1x8x32xbf16>
    %424 = vector.shape_cast %423 : vector<1x8x32xbf16> to vector<8x32xbf16>
    %cst_169 = arith.constant dense<0.000000e+00> : vector<8x32xf32>
    %425 = tpu.matmul %422, %424, %cst_169 {dimension_numbers = #tpu.dot_dimension_numbers<[1], [0], [0], [1], [0, 0, 1, 1], [], []>} : vector<8x8xbf16>, vector<8x32xbf16>, vector<8x32xf32> -> vector<8x32xf32>
    %426 = arith.addf %403, %425 : vector<8x32xf32>
    %427 = vector.extract_strided_slice %16 {offsets = [1, 0], sizes = [1, 8], strides = [1, 1]} : vector<2x8xf32> to vector<1x8xf32>
    %cst_170 = arith.constant 0.000000e+00 : f32
    %428 = vector.broadcast %cst_170 : f32 to vector<8x32xf32>
    %429 = vector.extract_strided_slice %332 {offsets = [8, 0], sizes = [8, 8], strides = [1, 1]} : vector<16x96xf32> to vector<8x8xf32>
    %430 = vector.extract_strided_slice %332 {offsets = [8, 32], sizes = [8, 8], strides = [1, 1]} : vector<16x96xf32> to vector<8x8xf32>
    %431 = vector.extract_strided_slice %332 {offsets = [8, 64], sizes = [8, 8], strides = [1, 1]} : vector<16x96xf32> to vector<8x8xf32>
    %432 = tpu.transpose %430, [1, 0] : vector<8x8xf32> -> vector<8x8xf32>
    %cst_171 = arith.constant dense<0.000000e+00> : vector<8x8xf32>
    %433 = tpu.matmul %429, %432, %cst_171 {dimension_numbers = #tpu.dot_dimension_numbers<[1], [0], [0], [1], [0, 0, 1, 1], [], []>} : vector<8x8xf32>, vector<8x8xf32>, vector<8x8xf32> -> vector<8x8xf32>
    %434 = vector.broadcast %427 : vector<1x8xf32> to vector<8x8xf32>
    %435 = arith.addf %433, %434 : vector<8x8xf32>
    %cst_172 = arith.constant dense<0xFF800000> : vector<8xf32>
    %436 = vector.multi_reduction <maximumf>, %435, %cst_172 [1] : vector<8x8xf32> to vector<8xf32>
    %437 = vector.shape_cast %436 : vector<8xf32> to vector<8x1xf32>
    %438 = vector.broadcast %437 : vector<8x1xf32> to vector<8x8xf32>
    %439 = arith.subf %435, %438 : vector<8x8xf32>
    %440 = math.exp %439 : vector<8x8xf32>
    %cst_173 = arith.constant dense<0.000000e+00> : vector<8xf32>
    %441 = vector.multi_reduction <add>, %440, %cst_173 [1] : vector<8x8xf32> to vector<8xf32>
    %442 = vector.shape_cast %441 : vector<8xf32> to vector<8x1xf32>
    %443 = tpu.reciprocal %442 {approx = true} : vector<8x1xf32> -> vector<8x1xf32>
    %444 = vector.broadcast %443 : vector<8x1xf32> to vector<8x8xf32>
    %445 = arith.mulf %440, %444 : vector<8x8xf32>
    %cst_174 = arith.constant dense<0.000000e+00> : vector<8x8xf32>
    %446 = tpu.matmul %445, %431, %cst_174 {dimension_numbers = #tpu.dot_dimension_numbers<[1], [0], [0], [1], [0, 0, 1, 1], [], []>} : vector<8x8xf32>, vector<8x8xf32>, vector<8x8xf32> -> vector<8x8xf32>
    %447 = arith.truncf %446 : vector<8x8xf32> to vector<8x8xbf16>
    %c1_175 = arith.constant 1 : index
    %c0_176 = arith.constant 0 : index
    %c0_177 = arith.constant 0 : index
    %448 = vector.load %arg10[%c1_175, %c0_176, %c0_177] : memref<2x32x32xbf16, #tpu.memory_space<vmem>>, vector<1x8x32xbf16>
    %449 = vector.shape_cast %448 : vector<1x8x32xbf16> to vector<8x32xbf16>
    %cst_178 = arith.constant dense<0.000000e+00> : vector<8x32xf32>
    %450 = tpu.matmul %447, %449, %cst_178 {dimension_numbers = #tpu.dot_dimension_numbers<[1], [0], [0], [1], [0, 0, 1, 1], [], []>} : vector<8x8xbf16>, vector<8x32xbf16>, vector<8x32xf32> -> vector<8x32xf32>
    %451 = arith.addf %428, %450 : vector<8x32xf32>
    %452 = vector.extract_strided_slice %332 {offsets = [8, 8], sizes = [8, 8], strides = [1, 1]} : vector<16x96xf32> to vector<8x8xf32>
    %453 = vector.extract_strided_slice %332 {offsets = [8, 40], sizes = [8, 8], strides = [1, 1]} : vector<16x96xf32> to vector<8x8xf32>
    %454 = vector.extract_strided_slice %332 {offsets = [8, 72], sizes = [8, 8], strides = [1, 1]} : vector<16x96xf32> to vector<8x8xf32>
    %455 = tpu.transpose %453, [1, 0] : vector<8x8xf32> -> vector<8x8xf32>
    %cst_179 = arith.constant dense<0.000000e+00> : vector<8x8xf32>
    %456 = tpu.matmul %452, %455, %cst_179 {dimension_numbers = #tpu.dot_dimension_numbers<[1], [0], [0], [1], [0, 0, 1, 1], [], []>} : vector<8x8xf32>, vector<8x8xf32>, vector<8x8xf32> -> vector<8x8xf32>
    %457 = vector.broadcast %427 : vector<1x8xf32> to vector<8x8xf32>
    %458 = arith.addf %456, %457 : vector<8x8xf32>
    %cst_180 = arith.constant dense<0xFF800000> : vector<8xf32>
    %459 = vector.multi_reduction <maximumf>, %458, %cst_180 [1] : vector<8x8xf32> to vector<8xf32>
    %460 = vector.shape_cast %459 : vector<8xf32> to vector<8x1xf32>
    %461 = vector.broadcast %460 : vector<8x1xf32> to vector<8x8xf32>
    %462 = arith.subf %458, %461 : vector<8x8xf32>
    %463 = math.exp %462 : vector<8x8xf32>
    %cst_181 = arith.constant dense<0.000000e+00> : vector<8xf32>
    %464 = vector.multi_reduction <add>, %463, %cst_181 [1] : vector<8x8xf32> to vector<8xf32>
    %465 = vector.shape_cast %464 : vector<8xf32> to vector<8x1xf32>
    %466 = tpu.reciprocal %465 {approx = true} : vector<8x1xf32> -> vector<8x1xf32>
    %467 = vector.broadcast %466 : vector<8x1xf32> to vector<8x8xf32>
    %468 = arith.mulf %463, %467 : vector<8x8xf32>
    %cst_182 = arith.constant dense<0.000000e+00> : vector<8x8xf32>
    %469 = tpu.matmul %468, %454, %cst_182 {dimension_numbers = #tpu.dot_dimension_numbers<[1], [0], [0], [1], [0, 0, 1, 1], [], []>} : vector<8x8xf32>, vector<8x8xf32>, vector<8x8xf32> -> vector<8x8xf32>
    %470 = arith.truncf %469 : vector<8x8xf32> to vector<8x8xbf16>
    %c1_183 = arith.constant 1 : index
    %c8_184 = arith.constant 8 : index
    %c0_185 = arith.constant 0 : index
    %471 = vector.load %arg10[%c1_183, %c8_184, %c0_185] : memref<2x32x32xbf16, #tpu.memory_space<vmem>>, vector<1x8x32xbf16>
    %472 = vector.shape_cast %471 : vector<1x8x32xbf16> to vector<8x32xbf16>
    %cst_186 = arith.constant dense<0.000000e+00> : vector<8x32xf32>
    %473 = tpu.matmul %470, %472, %cst_186 {dimension_numbers = #tpu.dot_dimension_numbers<[1], [0], [0], [1], [0, 0, 1, 1], [], []>} : vector<8x8xbf16>, vector<8x32xbf16>, vector<8x32xf32> -> vector<8x32xf32>
    %474 = arith.addf %451, %473 : vector<8x32xf32>
    %475 = vector.extract_strided_slice %332 {offsets = [8, 16], sizes = [8, 8], strides = [1, 1]} : vector<16x96xf32> to vector<8x8xf32>
    %476 = vector.extract_strided_slice %332 {offsets = [8, 48], sizes = [8, 8], strides = [1, 1]} : vector<16x96xf32> to vector<8x8xf32>
    %477 = vector.extract_strided_slice %332 {offsets = [8, 80], sizes = [8, 8], strides = [1, 1]} : vector<16x96xf32> to vector<8x8xf32>
    %478 = tpu.transpose %476, [1, 0] : vector<8x8xf32> -> vector<8x8xf32>
    %cst_187 = arith.constant dense<0.000000e+00> : vector<8x8xf32>
    %479 = tpu.matmul %475, %478, %cst_187 {dimension_numbers = #tpu.dot_dimension_numbers<[1], [0], [0], [1], [0, 0, 1, 1], [], []>} : vector<8x8xf32>, vector<8x8xf32>, vector<8x8xf32> -> vector<8x8xf32>
    %480 = vector.broadcast %427 : vector<1x8xf32> to vector<8x8xf32>
    %481 = arith.addf %479, %480 : vector<8x8xf32>
    %cst_188 = arith.constant dense<0xFF800000> : vector<8xf32>
    %482 = vector.multi_reduction <maximumf>, %481, %cst_188 [1] : vector<8x8xf32> to vector<8xf32>
    %483 = vector.shape_cast %482 : vector<8xf32> to vector<8x1xf32>
    %484 = vector.broadcast %483 : vector<8x1xf32> to vector<8x8xf32>
    %485 = arith.subf %481, %484 : vector<8x8xf32>
    %486 = math.exp %485 : vector<8x8xf32>
    %cst_189 = arith.constant dense<0.000000e+00> : vector<8xf32>
    %487 = vector.multi_reduction <add>, %486, %cst_189 [1] : vector<8x8xf32> to vector<8xf32>
    %488 = vector.shape_cast %487 : vector<8xf32> to vector<8x1xf32>
    %489 = tpu.reciprocal %488 {approx = true} : vector<8x1xf32> -> vector<8x1xf32>
    %490 = vector.broadcast %489 : vector<8x1xf32> to vector<8x8xf32>
    %491 = arith.mulf %486, %490 : vector<8x8xf32>
    %cst_190 = arith.constant dense<0.000000e+00> : vector<8x8xf32>
    %492 = tpu.matmul %491, %477, %cst_190 {dimension_numbers = #tpu.dot_dimension_numbers<[1], [0], [0], [1], [0, 0, 1, 1], [], []>} : vector<8x8xf32>, vector<8x8xf32>, vector<8x8xf32> -> vector<8x8xf32>
    %493 = arith.truncf %492 : vector<8x8xf32> to vector<8x8xbf16>
    %c1_191 = arith.constant 1 : index
    %c16_192 = arith.constant 16 : index
    %c0_193 = arith.constant 0 : index
    %494 = vector.load %arg10[%c1_191, %c16_192, %c0_193] : memref<2x32x32xbf16, #tpu.memory_space<vmem>>, vector<1x8x32xbf16>
    %495 = vector.shape_cast %494 : vector<1x8x32xbf16> to vector<8x32xbf16>
    %cst_194 = arith.constant dense<0.000000e+00> : vector<8x32xf32>
    %496 = tpu.matmul %493, %495, %cst_194 {dimension_numbers = #tpu.dot_dimension_numbers<[1], [0], [0], [1], [0, 0, 1, 1], [], []>} : vector<8x8xbf16>, vector<8x32xbf16>, vector<8x32xf32> -> vector<8x32xf32>
    %497 = arith.addf %474, %496 : vector<8x32xf32>
    %498 = vector.extract_strided_slice %332 {offsets = [8, 24], sizes = [8, 8], strides = [1, 1]} : vector<16x96xf32> to vector<8x8xf32>
    %499 = vector.extract_strided_slice %332 {offsets = [8, 56], sizes = [8, 8], strides = [1, 1]} : vector<16x96xf32> to vector<8x8xf32>
    %500 = vector.extract_strided_slice %332 {offsets = [8, 88], sizes = [8, 8], strides = [1, 1]} : vector<16x96xf32> to vector<8x8xf32>
    %501 = tpu.transpose %499, [1, 0] : vector<8x8xf32> -> vector<8x8xf32>
    %cst_195 = arith.constant dense<0.000000e+00> : vector<8x8xf32>
    %502 = tpu.matmul %498, %501, %cst_195 {dimension_numbers = #tpu.dot_dimension_numbers<[1], [0], [0], [1], [0, 0, 1, 1], [], []>} : vector<8x8xf32>, vector<8x8xf32>, vector<8x8xf32> -> vector<8x8xf32>
    %503 = vector.broadcast %427 : vector<1x8xf32> to vector<8x8xf32>
    %504 = arith.addf %502, %503 : vector<8x8xf32>
    %cst_196 = arith.constant dense<0xFF800000> : vector<8xf32>
    %505 = vector.multi_reduction <maximumf>, %504, %cst_196 [1] : vector<8x8xf32> to vector<8xf32>
    %506 = vector.shape_cast %505 : vector<8xf32> to vector<8x1xf32>
    %507 = vector.broadcast %506 : vector<8x1xf32> to vector<8x8xf32>
    %508 = arith.subf %504, %507 : vector<8x8xf32>
    %509 = math.exp %508 : vector<8x8xf32>
    %cst_197 = arith.constant dense<0.000000e+00> : vector<8xf32>
    %510 = vector.multi_reduction <add>, %509, %cst_197 [1] : vector<8x8xf32> to vector<8xf32>
    %511 = vector.shape_cast %510 : vector<8xf32> to vector<8x1xf32>
    %512 = tpu.reciprocal %511 {approx = true} : vector<8x1xf32> -> vector<8x1xf32>
    %513 = vector.broadcast %512 : vector<8x1xf32> to vector<8x8xf32>
    %514 = arith.mulf %509, %513 : vector<8x8xf32>
    %cst_198 = arith.constant dense<0.000000e+00> : vector<8x8xf32>
    %515 = tpu.matmul %514, %500, %cst_198 {dimension_numbers = #tpu.dot_dimension_numbers<[1], [0], [0], [1], [0, 0, 1, 1], [], []>} : vector<8x8xf32>, vector<8x8xf32>, vector<8x8xf32> -> vector<8x8xf32>
    %516 = arith.truncf %515 : vector<8x8xf32> to vector<8x8xbf16>
    %c1_199 = arith.constant 1 : index
    %c24_200 = arith.constant 24 : index
    %c0_201 = arith.constant 0 : index
    %517 = vector.load %arg10[%c1_199, %c24_200, %c0_201] : memref<2x32x32xbf16, #tpu.memory_space<vmem>>, vector<1x8x32xbf16>
    %518 = vector.shape_cast %517 : vector<1x8x32xbf16> to vector<8x32xbf16>
    %cst_202 = arith.constant dense<0.000000e+00> : vector<8x32xf32>
    %519 = tpu.matmul %516, %518, %cst_202 {dimension_numbers = #tpu.dot_dimension_numbers<[1], [0], [0], [1], [0, 0, 1, 1], [], []>} : vector<8x8xbf16>, vector<8x32xbf16>, vector<8x32xf32> -> vector<8x32xf32>
    %520 = arith.addf %497, %519 : vector<8x32xf32>
    %521 = tpu.concatenate %426, %520 in 0 : vector<8x32xf32>, vector<8x32xf32> -> vector<16x32xf32>
    %c1_203 = arith.constant 1 : index
    %c0_204 = arith.constant 0 : index
    %c0_205 = arith.constant 0 : index
    %522 = vector.load %arg11[%c1_203, %c0_204, %c0_205] : memref<2x1x32xf32, #tpu.memory_space<vmem>>, vector<1x1x32xf32>
    %523 = vector.shape_cast %522 : vector<1x1x32xf32> to vector<1x32xf32>
    %524 = vector.broadcast %523 : vector<1x32xf32> to vector<16x32xf32>
    %525 = arith.addf %521, %524 : vector<16x32xf32>
    %526 = arith.addf %525, %324 : vector<16x32xf32>
    %c1_206 = arith.constant 1 : index
    %c0_207 = arith.constant 0 : index
    %c0_208 = arith.constant 0 : index
    %527 = vector.load %arg12[%c1_206, %c0_207, %c0_208] : memref<2x1x32xf32, #tpu.memory_space<vmem>>, vector<1x1x32xf32>
    %528 = vector.shape_cast %527 : vector<1x1x32xf32> to vector<1x32xf32>
    %c1_209 = arith.constant 1 : index
    %c0_210 = arith.constant 0 : index
    %c0_211 = arith.constant 0 : index
    %529 = vector.load %arg13[%c1_209, %c0_210, %c0_211] : memref<2x1x32xf32, #tpu.memory_space<vmem>>, vector<1x1x32xf32>
    %530 = vector.shape_cast %529 : vector<1x1x32xf32> to vector<1x32xf32>
    %cst_212 = arith.constant dense<0.000000e+00> : vector<16xf32>
    %531 = vector.multi_reduction <add>, %526, %cst_212 [1] : vector<16x32xf32> to vector<16xf32>
    %532 = vector.shape_cast %531 : vector<16xf32> to vector<16x1xf32>
    %cst_213 = arith.constant 3.200000e+01 : f32
    %533 = vector.broadcast %cst_213 : f32 to vector<16x1xf32>
    %534 = arith.divf %532, %533 : vector<16x1xf32>
    %535 = vector.broadcast %534 : vector<16x1xf32> to vector<16x32xf32>
    %536 = arith.subf %526, %535 : vector<16x32xf32>
    %537 = arith.mulf %536, %536 : vector<16x32xf32>
    %cst_214 = arith.constant dense<0.000000e+00> : vector<16xf32>
    %538 = vector.multi_reduction <add>, %537, %cst_214 [1] : vector<16x32xf32> to vector<16xf32>
    %539 = vector.shape_cast %538 : vector<16xf32> to vector<16x1xf32>
    %cst_215 = arith.constant 3.200000e+01 : f32
    %540 = vector.broadcast %cst_215 : f32 to vector<16x1xf32>
    %541 = arith.divf %539, %540 : vector<16x1xf32>
    %542 = vector.broadcast %534 : vector<16x1xf32> to vector<16x32xf32>
    %543 = arith.subf %526, %542 : vector<16x32xf32>
    %cst_216 = arith.constant 9.99999996E-13 : f32
    %544 = vector.broadcast %cst_216 : f32 to vector<16x1xf32>
    %545 = arith.addf %541, %544 : vector<16x1xf32>
    %546 = math.rsqrt %545 : vector<16x1xf32>
    %547 = vector.broadcast %546 : vector<16x1xf32> to vector<16x32xf32>
    %548 = arith.mulf %543, %547 : vector<16x32xf32>
    %549 = vector.broadcast %528 : vector<1x32xf32> to vector<16x32xf32>
    %550 = arith.mulf %548, %549 : vector<16x32xf32>
    %551 = vector.broadcast %530 : vector<1x32xf32> to vector<16x32xf32>
    %552 = arith.addf %550, %551 : vector<16x32xf32>
    %553 = arith.truncf %552 : vector<16x32xf32> to vector<16x32xbf16>
    %c1_217 = arith.constant 1 : index
    %c0_218 = arith.constant 0 : index
    %c0_219 = arith.constant 0 : index
    %554 = vector.load %arg14[%c1_217, %c0_218, %c0_219] : memref<2x32x64xbf16, #tpu.memory_space<vmem>>, vector<1x32x64xbf16>
    %555 = vector.shape_cast %554 : vector<1x32x64xbf16> to vector<32x64xbf16>
    %cst_220 = arith.constant dense<0.000000e+00> : vector<16x64xf32>
    %556 = tpu.matmul %553, %555, %cst_220 {dimension_numbers = #tpu.dot_dimension_numbers<[1], [0], [0], [1], [0, 0, 1, 1], [], []>} : vector<16x32xbf16>, vector<32x64xbf16>, vector<16x64xf32> -> vector<16x64xf32>
    %c1_221 = arith.constant 1 : index
    %c0_222 = arith.constant 0 : index
    %c0_223 = arith.constant 0 : index
    %557 = vector.load %arg15[%c1_221, %c0_222, %c0_223] : memref<2x1x64xf32, #tpu.memory_space<vmem>>, vector<1x1x64xf32>
    %558 = vector.shape_cast %557 : vector<1x1x64xf32> to vector<1x64xf32>
    %559 = vector.broadcast %558 : vector<1x64xf32> to vector<16x64xf32>
    %560 = arith.addf %556, %559 : vector<16x64xf32>
    %561 = arith.mulf %560, %560 : vector<16x64xf32>
    %562 = arith.mulf %560, %561 : vector<16x64xf32>
    %cst_224 = arith.constant 4.471500e-02 : f32
    %563 = vector.broadcast %cst_224 : f32 to vector<16x64xf32>
    %564 = arith.mulf %563, %562 : vector<16x64xf32>
    %565 = arith.addf %560, %564 : vector<16x64xf32>
    %cst_225 = arith.constant 0.797884583 : f32
    %566 = vector.broadcast %cst_225 : f32 to vector<16x64xf32>
    %567 = arith.mulf %566, %565 : vector<16x64xf32>
    %568 = math.tanh %567 : vector<16x64xf32>
    %cst_226 = arith.constant 1.000000e+00 : f32
    %569 = vector.broadcast %cst_226 : f32 to vector<16x64xf32>
    %570 = arith.addf %569, %568 : vector<16x64xf32>
    %cst_227 = arith.constant 5.000000e-01 : f32
    %571 = vector.broadcast %cst_227 : f32 to vector<16x64xf32>
    %572 = arith.mulf %571, %570 : vector<16x64xf32>
    %573 = arith.mulf %560, %572 : vector<16x64xf32>
    %574 = arith.truncf %573 : vector<16x64xf32> to vector<16x64xbf16>
    %c1_228 = arith.constant 1 : index
    %c0_229 = arith.constant 0 : index
    %c0_230 = arith.constant 0 : index
    %575 = vector.load %arg16[%c1_228, %c0_229, %c0_230] : memref<2x64x32xbf16, #tpu.memory_space<vmem>>, vector<1x64x32xbf16>
    %576 = vector.shape_cast %575 : vector<1x64x32xbf16> to vector<64x32xbf16>
    %cst_231 = arith.constant dense<0.000000e+00> : vector<16x32xf32>
    %577 = tpu.matmul %574, %576, %cst_231 {dimension_numbers = #tpu.dot_dimension_numbers<[1], [0], [0], [1], [0, 0, 1, 1], [], []>} : vector<16x64xbf16>, vector<64x32xbf16>, vector<16x32xf32> -> vector<16x32xf32>
    %c1_232 = arith.constant 1 : index
    %c0_233 = arith.constant 0 : index
    %c0_234 = arith.constant 0 : index
    %578 = vector.load %arg17[%c1_232, %c0_233, %c0_234] : memref<2x1x32xf32, #tpu.memory_space<vmem>>, vector<1x1x32xf32>
    %579 = vector.shape_cast %578 : vector<1x1x32xf32> to vector<1x32xf32>
    %580 = vector.broadcast %579 : vector<1x32xf32> to vector<16x32xf32>
    %581 = arith.addf %577, %580 : vector<16x32xf32>
    %582 = arith.addf %581, %552 : vector<16x32xf32>
    %c1_235 = arith.constant 1 : index
    %c0_236 = arith.constant 0 : index
    %c0_237 = arith.constant 0 : index
    %583 = vector.load %arg18[%c1_235, %c0_236, %c0_237] : memref<2x1x32xf32, #tpu.memory_space<vmem>>, vector<1x1x32xf32>
    %584 = vector.shape_cast %583 : vector<1x1x32xf32> to vector<1x32xf32>
    %c1_238 = arith.constant 1 : index
    %c0_239 = arith.constant 0 : index
    %c0_240 = arith.constant 0 : index
    %585 = vector.load %arg19[%c1_238, %c0_239, %c0_240] : memref<2x1x32xf32, #tpu.memory_space<vmem>>, vector<1x1x32xf32>
    %586 = vector.shape_cast %585 : vector<1x1x32xf32> to vector<1x32xf32>
    %cst_241 = arith.constant dense<0.000000e+00> : vector<16xf32>
    %587 = vector.multi_reduction <add>, %582, %cst_241 [1] : vector<16x32xf32> to vector<16xf32>
    %588 = vector.shape_cast %587 : vector<16xf32> to vector<16x1xf32>
    %cst_242 = arith.constant 3.200000e+01 : f32
    %589 = vector.broadcast %cst_242 : f32 to vector<16x1xf32>
    %590 = arith.divf %588, %589 : vector<16x1xf32>
    %591 = vector.broadcast %590 : vector<16x1xf32> to vector<16x32xf32>
    %592 = arith.subf %582, %591 : vector<16x32xf32>
    %593 = arith.mulf %592, %592 : vector<16x32xf32>
    %cst_243 = arith.constant dense<0.000000e+00> : vector<16xf32>
    %594 = vector.multi_reduction <add>, %593, %cst_243 [1] : vector<16x32xf32> to vector<16xf32>
    %595 = vector.shape_cast %594 : vector<16xf32> to vector<16x1xf32>
    %cst_244 = arith.constant 3.200000e+01 : f32
    %596 = vector.broadcast %cst_244 : f32 to vector<16x1xf32>
    %597 = arith.divf %595, %596 : vector<16x1xf32>
    %598 = vector.broadcast %590 : vector<16x1xf32> to vector<16x32xf32>
    %599 = arith.subf %582, %598 : vector<16x32xf32>
    %cst_245 = arith.constant 9.99999996E-13 : f32
    %600 = vector.broadcast %cst_245 : f32 to vector<16x1xf32>
    %601 = arith.addf %597, %600 : vector<16x1xf32>
    %602 = math.rsqrt %601 : vector<16x1xf32>
    %603 = vector.broadcast %602 : vector<16x1xf32> to vector<16x32xf32>
    %604 = arith.mulf %599, %603 : vector<16x32xf32>
    %605 = vector.broadcast %584 : vector<1x32xf32> to vector<16x32xf32>
    %606 = arith.mulf %604, %605 : vector<16x32xf32>
    %607 = vector.broadcast %586 : vector<1x32xf32> to vector<16x32xf32>
    %608 = arith.addf %606, %607 : vector<16x32xf32>
    %c0_246 = arith.constant 0 : index
    %c0_247 = arith.constant 0 : index
    %609 = vector.load %arg3[%c0_246, %c0_247] : memref<16x1xi32, #tpu.memory_space<vmem>>, vector<16x1xi32>
    %610 = arith.sitofp %609 : vector<16x1xi32> to vector<16x1xf32>
    %cst_248 = arith.constant 1.000000e+00 : f32
    %611 = vector.broadcast %cst_248 : f32 to vector<16x1xf32>
    %612 = arith.subf %610, %611 : vector<16x1xf32>
    %cst_249 = arith.constant 1.000000e+09 : f32
    %613 = vector.broadcast %cst_249 : f32 to vector<16x1xf32>
    %614 = arith.mulf %612, %613 : vector<16x1xf32>
    %615 = vector.broadcast %614 : vector<16x1xf32> to vector<16x32xf32>
    %616 = arith.addf %608, %615 : vector<16x32xf32>
    %617 = vector.extract_strided_slice %616 {offsets = [0, 0], sizes = [8, 32], strides = [1, 1]} : vector<16x32xf32> to vector<8x32xf32>
    %cst_250 = arith.constant dense<0xFF800000> : vector<32xf32>
    %618 = vector.multi_reduction <maximumf>, %617, %cst_250 [0] : vector<8x32xf32> to vector<32xf32>
    %619 = vector.shape_cast %618 : vector<32xf32> to vector<1x32xf32>
    %620 = vector.extract_strided_slice %616 {offsets = [8, 0], sizes = [8, 32], strides = [1, 1]} : vector<16x32xf32> to vector<8x32xf32>
    %cst_251 = arith.constant dense<0xFF800000> : vector<32xf32>
    %621 = vector.multi_reduction <maximumf>, %620, %cst_251 [0] : vector<8x32xf32> to vector<32xf32>
    %622 = vector.shape_cast %621 : vector<32xf32> to vector<1x32xf32>
    %623 = tpu.concatenate %619, %622 in 0 : vector<1x32xf32>, vector<1x32xf32> -> vector<2x32xf32>
    %c0_252 = arith.constant 0 : index
    %c0_253 = arith.constant 0 : index
    %624 = vector.load %arg20[%c0_252, %c0_253] : memref<2x32xf32, #tpu.memory_space<vmem>>, vector<2x32xf32>
    tpu.vector_store %arg20[%c0_252, %c0_253], %623 {strides = array<i32>} : memref<2x32xf32, #tpu.memory_space<vmem>>, vector<2x32xf32>,
    return
  }
  func.func @transform_0(%arg0: i32) -> (i32, i32) {
    %c0_i32 = arith.constant 0 : i32
    %c0_i32_0 = arith.constant 0 : i32
    %c0_i32_1 = arith.constant 0 : i32
    return %c0_i32, %c0_i32_0 : i32, i32
  }
  func.func @transform_1(%arg0: i32) -> (i32, i32) {
    %c0_i32 = arith.constant 0 : i32
    %c0_i32_0 = arith.constant 0 : i32
    %c0_i32_1 = arith.constant 0 : i32
    return %c0_i32, %c0_i32_0 : i32, i32
  }
  func.func @transform_2(%arg0: i32) -> (i32, i32) {
    %c0_i32 = arith.constant 0 : i32
    %c0_i32_0 = arith.constant 0 : i32
    %c0_i32_1 = arith.constant 0 : i32
    return %c0_i32, %c0_i32_0 : i32, i32
  }
  func.func @transform_3(%arg0: i32) -> (i32, i32) {
    %c0_i32 = arith.constant 0 : i32
    %c0_i32_0 = arith.constant 0 : i32
    %c0_i32_1 = arith.constant 0 : i32
    return %c0_i32, %c0_i32_0 : i32, i32
  }
  func.func @transform_4(%arg0: i32) -> (i32, i32) {
    %c0_i32 = arith.constant 0 : i32
    %c0_i32_0 = arith.constant 0 : i32
    %c0_i32_1 = arith.constant 0 : i32
    return %c0_i32, %c0_i32_0 : i32, i32
  }
  func.func @transform_5(%arg0: i32) -> (i32, i32) {
    %c0_i32 = arith.constant 0 : i32
    %c0_i32_0 = arith.constant 0 : i32
    %c0_i32_1 = arith.constant 0 : i32
    return %c0_i32, %c0_i32_0 : i32, i32
  }
  func.func @transform_6(%arg0: i32) -> (i32, i32) {
    %c0_i32 = arith.constant 0 : i32
    %c0_i32_0 = arith.constant 0 : i32
    %c0_i32_1 = arith.constant 0 : i32
    return %c0_i32, %c0_i32_0 : i32, i32
  }
  func.func @transform_7(%arg0: i32) -> (i32, i32, i32) {
    %c0_i32 = arith.constant 0 : i32
    %c0_i32_0 = arith.constant 0 : i32
    %c0_i32_1 = arith.constant 0 : i32
    %c0_i32_2 = arith.constant 0 : i32
    return %c0_i32, %c0_i32_0, %c0_i32_1 : i32, i32, i32
  }
  func.func @transform_8(%arg0: i32) -> (i32, i32, i32) {
    %c0_i32 = arith.constant 0 : i32
    %c0_i32_0 = arith.constant 0 : i32
    %c0_i32_1 = arith.constant 0 : i32
    %c0_i32_2 = arith.constant 0 : i32
    return %c0_i32, %c0_i32_0, %c0_i32_1 : i32, i32, i32
  }
  func.func @transform_9(%arg0: i32) -> (i32, i32, i32) {
    %c0_i32 = arith.constant 0 : i32
    %c0_i32_0 = arith.constant 0 : i32
    %c0_i32_1 = arith.constant 0 : i32
    %c0_i32_2 = arith.constant 0 : i32
    return %c0_i32, %c0_i32_0, %c0_i32_1 : i32, i32, i32
  }
  func.func @transform_10(%arg0: i32) -> (i32, i32, i32) {
    %c0_i32 = arith.constant 0 : i32
    %c0_i32_0 = arith.constant 0 : i32
    %c0_i32_1 = arith.constant 0 : i32
    %c0_i32_2 = arith.constant 0 : i32
    return %c0_i32, %c0_i32_0, %c0_i32_1 : i32, i32, i32
  }
  func.func @transform_11(%arg0: i32) -> (i32, i32, i32) {
    %c0_i32 = arith.constant 0 : i32
    %c0_i32_0 = arith.constant 0 : i32
    %c0_i32_1 = arith.constant 0 : i32
    %c0_i32_2 = arith.constant 0 : i32
    return %c0_i32, %c0_i32_0, %c0_i32_1 : i32, i32, i32
  }
  func.func @transform_12(%arg0: i32) -> (i32, i32, i32) {
    %c0_i32 = arith.constant 0 : i32
    %c0_i32_0 = arith.constant 0 : i32
    %c0_i32_1 = arith.constant 0 : i32
    %c0_i32_2 = arith.constant 0 : i32
    return %c0_i32, %c0_i32_0, %c0_i32_1 : i32, i32, i32
  }
  func.func @transform_13(%arg0: i32) -> (i32, i32, i32) {
    %c0_i32 = arith.constant 0 : i32
    %c0_i32_0 = arith.constant 0 : i32
    %c0_i32_1 = arith.constant 0 : i32
    %c0_i32_2 = arith.constant 0 : i32
    return %c0_i32, %c0_i32_0, %c0_i32_1 : i32, i32, i32
  }
  func.func @transform_14(%arg0: i32) -> (i32, i32, i32) {
    %c0_i32 = arith.constant 0 : i32
    %c0_i32_0 = arith.constant 0 : i32
    %c0_i32_1 = arith.constant 0 : i32
    %c0_i32_2 = arith.constant 0 : i32
    return %c0_i32, %c0_i32_0, %c0_i32_1 : i32, i32, i32
  }
  func.func @transform_15(%arg0: i32) -> (i32, i32, i32) {
    %c0_i32 = arith.constant 0 : i32
    %c0_i32_0 = arith.constant 0 : i32
    %c0_i32_1 = arith.constant 0 : i32
    %c0_i32_2 = arith.constant 0 : i32
    return %c0_i32, %c0_i32_0, %c0_i32_1 : i32, i32, i32
  }
  func.func @transform_16(%arg0: i32) -> (i32, i32, i32) {
    %c0_i32 = arith.constant 0 : i32
    %c0_i32_0 = arith.constant 0 : i32
    %c0_i32_1 = arith.constant 0 : i32
    %c0_i32_2 = arith.constant 0 : i32
    return %c0_i32, %c0_i32_0, %c0_i32_1 : i32, i32, i32
  }
  func.func @transform_17(%arg0: i32) -> (i32, i32, i32) {
    %c0_i32 = arith.constant 0 : i32
    %c0_i32_0 = arith.constant 0 : i32
    %c0_i32_1 = arith.constant 0 : i32
    %c0_i32_2 = arith.constant 0 : i32
    return %c0_i32, %c0_i32_0, %c0_i32_1 : i32, i32, i32
  }
  func.func @transform_18(%arg0: i32) -> (i32, i32, i32) {
    %c0_i32 = arith.constant 0 : i32
    %c0_i32_0 = arith.constant 0 : i32
    %c0_i32_1 = arith.constant 0 : i32
    %c0_i32_2 = arith.constant 0 : i32
    return %c0_i32, %c0_i32_0, %c0_i32_1 : i32, i32, i32
  }
  func.func @transform_19(%arg0: i32) -> (i32, i32) {
    %c0_i32 = arith.constant 0 : i32
    %c0_i32_0 = arith.constant 0 : i32
    %c0_i32_1 = arith.constant 0 : i32
    return %c0_i32, %c0_i32_0 : i32, i32
  }
}

</mosaic_0001>

<bundles_post_ra>
// kernel: sentence_transformer_forward.1
= control target key start
LH: loop header
LB: loop body
LE: loop exit
PB: predicated region body
PF: predicated region fallthrough
CT: control target
= control target key end

     0   :  { %s5934_s0 = inlined_call_operand.vmem [shape: s32[16,1], index: 0, kind: input, shape index: {}]   ;;  %s5935_s1 = inlined_call_operand.vmem [shape: s32[2,8], index: 1, kind: input, shape index: {}]   ;;  %s5936_s2 = inlined_call_operand.vmem [shape: s32[16,1], index: 2, kind: input, shape index: {}]   ;;  %s5937_s3 = inlined_call_operand.vmem [shape: f32[128,32], index: 3, kind: input, shape index: {}]   ;;  %s5938_s4 = inlined_call_operand.vmem [shape: f32[16,32], index: 4, kind: input, shape index: {}]   ;;  %s5939_s5 = inlined_call_operand.vmem [shape: f32[1,32], index: 5, kind: input, shape index: {}]   ;;  %s5940_s6 = inlined_call_operand.vmem [shape: f32[1,32], index: 6, kind: input, shape index: {}]   ;;  %s5941_s7 = inlined_call_operand.vmem [shape: bf16[2,32,96], index: 7, kind: input, shape index: {}]   ;;  %s5942_s8 = inlined_call_operand.vmem [shape: f32[2,1,96], index: 8, kind: input, shape index: {}]   ;;  %s5943_s9 = inlined_call_operand.vmem [shape: bf16[2,32,32], index: 9, kind: input, shape index: {}]   ;;  %s5944_s10 = inlined_call_operand.vmem [shape: f32[2,1,32], index: 10, kind: input, shape index: {}]   ;;  %s5945_s11 = inlined_call_operand.vmem [shape: f32[2,1,32], index: 11, kind: input, shape index: {}]   ;;  %s5946_s12 = inlined_call_operand.vmem [shape: f32[2,1,32], index: 12, kind: input, shape index: {}]   ;;  %s5947_s13 = inlined_call_operand.vmem [shape: bf16[2,32,64], index: 13, kind: input, shape index: {}]   ;;  %s5948_s14 = inlined_call_operand.vmem [shape: f32[2,1,64], index: 14, kind: input, shape index: {}]   ;;  %s5949_s15 = inlined_call_operand.vmem [shape: bf16[2,64,32], index: 15, kind: input, shape index: {}]   ;;  %s5950_s16 = inlined_call_operand.vmem [shape: f32[2,1,32], index: 16, kind: input, shape index: {}]   ;;  %s5951_s17 = inlined_call_operand.vmem [shape: f32[2,1,32], index: 17, kind: input, shape index: {}]   ;;  %s5952_s18 = inlined_call_operand.vmem [shape: f32[2,1,32], index: 18, kind: input, shape index: {}]   ;;  %s5953_s19 = inlined_call_operand.hbm [shape: f32[2,32], index: 19, kind: output, shape index: {}]  }
   0x1   :  { %5958 = sst [smem:[#allocation5_spill]] %s5934_s0 }
   0x2   :  { %5959 = sst [smem:[#allocation6_spill]] %s5935_s1 }
   0x3   :  { %5960 = sst [smem:[#allocation7_spill]] %s5936_s2 }
   0x4   :  { %5961 = sst [smem:[#allocation8_spill]] %s5937_s3 }
   0x5   :  { %5962 = sst [smem:[#allocation9_spill]] %s5948_s14 }
   0x6   :  { %s5963_s20 = sld [smem:[#allocation5_spill]]  ;;  %v5125_v2 = vmov 0   ;;  %v66_v7 = vlaneseq }
   0x7   :  { %s5964_s14 = sld [smem:[#allocation8_spill]]  ;;  %4993 = vset.pattern.permute.xlu0 %v5125_v2  ;;  %4994 = vset.pattern.permute.xlu1 %v5125_v2 }
   0x8   :  { %s5965_s21 = sld [smem:[#allocation6_spill]]  ;;  %v5268_v12 = vshrl.u32 %v66_v7, 7 }
   0xa   :  { %v1151_v15 = vsub.s32 1, %v5268_v12 }
   0xc   :  { %v64_v0 = vld [vmem:[%s5963_s20] sm:$0xff]  ;;  %v65_v5 = vld [vmem:[%s5963_s20 + $0x8] sm:$0xff] }
   0xd   :  { %v95_v1 = vld [vmem:[%s5964_s14 + $0x78] sm:$0xff]  ;;  %v94_v3 = vld [vmem:[%s5964_s14 + $0x70] sm:$0xff]  ;;  %69 = vperm.xlu0 %4993, %v64_v0   ;;  %v93_v4 = vld [vmem:[%s5964_s14 + $0x68] sm:$0xff] }
   0xe   :  { %4630 = vmatprep.subr.mxu0 %v95_v1  ;;  %v92_v6 = vld [vmem:[%s5964_s14 + $0x60] sm:$0xff]  ;;  %v91_v8 = vld [vmem:[%s5964_s14 + $0x58] sm:$0xff]  ;;  %v90_v10 = vld [vmem:[%s5964_s14 + $0x50] sm:$0xff] }
   0xf   :  { %4631 = vmatpush3.msra.mxu0 %v95_v1  ;;  %v172_v9 = vld [vmem:[%s5965_s21] sm:$0x3]  ;;  %v89_v13 = vld [vmem:[%s5964_s14 + $0x48] sm:$0xff]  ;;  %v87_v18 = vld [vmem:[%s5964_s14 + $0x38] sm:$0xff] }
  0x10   :  { %4632 = vmatprep.subr.mxu0 %v94_v3  ;;  %v173_v11 = vcvt.s32.f32 %v172_v9  ;;  %v88_v16 = vld [vmem:[%s5964_s14 + $0x40] sm:$0xff]  ;;  %v86_v20 = vld [vmem:[%s5964_s14 + $0x30] sm:$0xff] }
  0x11   :  { %4633 = vmatpush3.msra.mxu0 %v94_v3  ;;  %72 = vperm.xlu0 %4993, %v65_v5  }
  0x12   :  { %4634 = vmatprep.subr.mxu0 %v93_v4  ;;  %v4359_v14 = vadd.f32 -1.0, %v173_v11 }
  0x13   :  { %4635 = vmatpush3.msra.mxu0 %v93_v4 }
  0x14   :  { %4636 = vmatprep.subr.mxu0 %v92_v6  ;;  %v5277_v17 = vmul.f32 1e+09, %v4359_v14 }
  0x15   :  { %4637 = vmatpush3.msra.mxu0 %v92_v6 }
  0x16   :  { %4638 = vmatprep.subr.mxu0 %v91_v8  ;;  %v5283_v19 = vrot.slane %v5277_v17, %v1151_v15 }
  0x17   :  { %4639 = vmatpush3.msra.mxu0 %v91_v8 }
  0x18   :  { %4640 = vmatprep.subr.mxu0 %v90_v10 }
  0x19   :  { %4641 = vmatpush3.msra.mxu0 %v90_v10 }
  0x1a   :  { %4642 = vmatprep.subr.mxu0 %v89_v13 }
  0x1b   :  { %4643 = vmatpush3.msra.mxu0 %v89_v13 }
  0x1c   :  { %4644 = vmatprep.subr.mxu0 %v88_v16 }
  0x1d   :  { %4645 = vmatpush3.msra.mxu0 %v88_v16 }
  0x1e   :  { %4646 = vmatprep.subr.mxu0 %v87_v18 }
  0x1f   :  { %24 = vsyncpa [#allocation3], 0  ;;  %4647 = vmatpush3.msra.mxu0 %v87_v18  ;;  %v85_v21 = vld [vmem:[%s5964_s14 + $0x28] sm:$0xff]  ;;  %v84_v22 = vld [vmem:[%s5964_s14 + $0x20] sm:$0xff]  ;;  %v67_v27 = vand.u32 127, %v66_v7  ;;  %v5126_v29 = vmov 1.0  }
  0x20   :  { %4648 = vmatprep.subr.mxu0 %v86_v20  ;;  %v83_v23 = vld [vmem:[%s5964_s14 + $0x18] sm:$0xff]  ;;  %v82_v24 = vld [vmem:[%s5964_s14 + $0x10] sm:$0xff]  ;;  %v81_v25 = vld [vmem:[%s5964_s14 + $0x8] sm:$0xff]  ;;  %vm178_vm2 = vcmask 261120   ;;  %v5127_v49 = vmov 0.0   ;;  %vm5128_vm3 = vmmov 0  }
  0x21   :  { %4649 = vmatpush3.msra.mxu0 %v86_v20  ;;  %v80_v26 = vld [vmem:[%s5964_s14] sm:$0xff]  ;;  %v4995_v48 = vld [vmem:[%s5941_s7 + $0x8] sm:$0xff]   ;;  %4665 = vmatprep.subr.bf16.mxu1 %v5127_v49  ;;  %s5130_s1 = smov 96   ;;  %vm297_vm4 = vcmask 64512   ;;  %v292_v14 = vsub.s32 0, %v5268_v12  ;;  %s5131_s22 = smov 120  }
  0x22   :  { %4650 = vmatprep.subr.mxu0 %v85_v21  ;;  %v96_v32 = vld [vmem:[%s5938_s4] sm:$0xff]  ;;  %4669 = vmatprep.mubr.msk.bf16.mxu1 %vm5128_vm3, %v5127_v49  ;;  %s5132_s2 = smov 88   ;;  %vm631_vm5 = vcmask 1043456   ;;  %s5133_s25 = smov 56   ;;  %vm2171_vm6 = vcmask 523264   ;;  %vm4337_vm7 = vcmask 1040384  }
  0x23   :  { %4651 = vmatpush3.msra.mxu0 %v85_v21  ;;  %4666 = vmatpush3.bf16.msra.mxu1 %v4995_v48  ;;  %v4996_v50 = vld [vmem:[%s5941_s7] sm:$0xff]   ;;  %v5362_v15 = vrot.slane %v5277_v17, %v292_v14  ;;  %s5134_s3 = smov 112   ;;  %s5135_s26 = smov 80   ;;  %vm4339_vm8 = vcmask 254976  }
  0x24   :  { %4652 = vmatprep.subr.mxu0 %v84_v22  ;;  %4667 = vmatprep.subr.bf16.mxu1 %v5127_v49  ;;  %v4360_v59 = vld [vmem:[%s5939_s5] ss:$0 sm:$0xff]  ;;  %s5136_s27 = smov 48   ;;  %s5137_s28 = smov 104  }
  0x25   :  { %4653 = vmatpush3.msra.mxu0 %v84_v22  ;;  %v4361_v63 = vld [vmem:[%s5940_s6] ss:$0 sm:$0xff]  ;;  %s5129_s6 = smov 64   ;;  %s5138_s29 = smov 72  }
  0x26   :  { %4654 = vmatprep.subr.mxu0 %v83_v23  ;;  %v4362_v4 = vld [vmem:[%s5942_s8] ss:$0 sm:$0xff]  ;;  %s5139_s21 = smov 40   ;;  %s5966_s0 = sld [smem:[#allocation9_spill]] }
  0x27   :  { %4655 = vmatpush3.msra.mxu0 %v83_v23  ;;  %4668 = vmatpush3.bf16.msra.mxu1 %v4996_v50 }
  0x28   :  { %4656 = vmatprep.subr.mxu0 %v82_v24  ;;  %4673 = vmatprep.subr.mxu1 %v5127_v49 }
  0x29   :  { %4657 = vmatpush3.msra.mxu0 %v82_v24 }
  0x2a   :  { %4658 = vmatprep.subr.mxu0 %v81_v25 }
  0x2b   :  { %4659 = vmatpush3.msra.mxu0 %v81_v25 }
  0x2c   :  { %4660 = vmatprep.subr.mxu0 %v80_v26 }
  0x2d   :  { %4661 = vmatpush3.msra.mxu0 %v80_v26 }
  0x2e   :  { %4699 = vmatprep.subr.bf16.mxu0 %v5127_v49 }
  0x88   :  { %v70_v28 = vpop.permute.xlu0 %69 }
  0x89   :  { %vm74_vm0 = vcmp.eq.s32.totalorder %v70_v28, %v67_v27 }
  0x8a   :  { %4662 = vmatprep.mubr.msk.f32.mxu0 %vm74_vm0, %v5126_v29 }
  0x8c   :  { %v73_v30 = vpop.permute.xlu0 %72 }
  0x8d   :  { %vm75_vm1 = vcmp.eq.s32.totalorder %v73_v30, %v67_v27  ;;  %v460_v30 = vld [vmem:[%s5943_s9] sm:$0xf] }
  0x8e   :  { %4663 = vmatmul.mubr.msk.f32.vlgmr.msra.gmra.mxu0 %vm75_vm1, %v5126_v29 }
  0x8f   :  { %4701 = vmatprep.mubr.msk.bf16.mxu0 %vm5128_vm3, %v5127_v49 }
 0x14e   :  { %v4664_v31 = vpop.f32.mrf.mxu0 }
 0x14f   :  { %v169_v35 = vadd.f32 %v4664_v31, %v96_v32  ;;  %v5383_v31 = vsel %vm631_vm5, %v460_v30, 0 }
 0x150   :  { %v163_v33 = vpop.f32.mrf.mxu0  ;;  %4700 = vmatpush3.bf16.msra.mxu0 %v5383_v31 }
 0x151   :  { %v164_v34 = vadd.f32 %v163_v33, %v96_v32  ;;  %v182_v37 = vsel %vm178_vm2, %v169_v35, 0.0  ;;  %4710 = vmatprep.subr.mxu0 %v5127_v49 }
 0x153   :  { %v179_v36 = vsel %vm178_vm2, %v164_v34, 0.0 }
 0x154   :  { %180 = vadd.xlane.f32.xlu1 %v179_v36 }
 0x158   :  { %183 = vadd.xlane.f32.xlu1 %v182_v37 }
 0x1dd   :  { %v181_v38 = vpop.xlane.xlu1 %180 }
 0x1de   :  { %v186_v39 = vmul.f32 0.03125, %v181_v38 }
 0x1e0   :  { %v188_v40 = vsub.f32 %v164_v34, %v186_v39 }
 0x1e1   :  { %v184_v41 = vpop.xlane.xlu1 %183 }
 0x1e2   :  { %v187_v42 = vmul.f32 0.03125, %v184_v41  ;;  %v190_v43 = vmul.f32 %v188_v40, %v188_v40 }
 0x1e4   :  { %v189_v44 = vsub.f32 %v169_v35, %v187_v42  ;;  %v192_v45 = vsel %vm178_vm2, %v190_v43, 0.0 }
 0x1e5   :  { %193 = vadd.xlane.f32.xlu0 %v192_v45 }
 0x1e6   :  { %v191_v46 = vmul.f32 %v189_v44, %v189_v44 }
 0x1e8   :  { %v195_v47 = vsel %vm178_vm2, %v191_v46, 0.0 }
 0x1e9   :  { %196 = vadd.xlane.f32.xlu1 %v195_v47 }
 0x26e   :  { %v194_v51 = vpop.xlane.xlu0 %193 }
 0x26f   :  { %v198_v52 = vmul.f32 0.03125, %v194_v51  ;;  %v627_v51 = vld [vmem:[%s5943_s9 + $0x4] sm:$0xf] }
 0x271   :  { %v200_v53 = vadd.f32 1e-12, %v198_v52 }
 0x272   :  { %v197_v54 = vpop.xlane.xlu1 %196 }
 0x273   :  { %5011 = vrsqrt.f32 %v200_v53  ;;  %v199_v55 = vmul.f32 0.03125, %v197_v54  ;;  %v5406_v54 = vsel %vm631_vm5, %v627_v51, 0 }
 0x275   :  { %v201_v56 = vadd.f32 1e-12, %v199_v55 }
 0x277   :  { %5013 = vrsqrt.f32 %v201_v56 }
 0x280   :  { %v5012_v57 = vpop.eup %5011 }
 0x281   :  { %v204_v58 = vmul.f32 %v5012_v57, %v188_v40 }
 0x283   :  { %v212_v62 = vmul.f32 %v4360_v59, %v204_v58 }
 0x284   :  { %v5014_v60 = vpop.eup %5013 }
 0x285   :  { %v205_v61 = vmul.f32 %v5014_v60, %v189_v44  ;;  %v5333_v1 = vadd.f32 %v4361_v63, %v212_v62 }
 0x287   :  { %v213_v0 = vmul.f32 %v4360_v59, %v205_v61 }
 0x289   :  { %v5335_v2 = vadd.f32 %v4361_v63, %v213_v0 }
 0x28b   :  { %v222_v3 = vpack.c.bf16 %v5335_v2, %v5333_v1 }
 0x28d   :  { %4670 = vmatmul.mubr.msk.bf16.vlgmr.msra.gmra.mxu1 %vm178_vm2, %v222_v3 }
 0x28e   :  { %4675 = vmatprep.mubr.msk.f32.mxu1 %vm5128_vm3, %v5127_v49 }
 0x34d   :  { %v283_v5 = vpop.f32.mrf.mxu1 }
 0x34e   :  { %v5345_v6 = vadd.f32 %v4362_v4, %v283_v5 }
 0x34f   :  { %v4671_v7 = vpop.f32.mrf.mxu1 }
 0x350   :  { %383 = vrot.lane.b32.xlu0 %v5345_v6, %s5129_s6  ;;  %295 = vrot.lane.b32.xlu1 %v5345_v6, %s5130_s1 }
 0x351   :  { %v286_v8 = vpop.f32.mrf.mxu1 }
 0x352   :  { %v5351_v9 = vadd.f32 %v4362_v4, %v286_v8 }
 0x353   :  { %v4672_v10 = vpop.f32.mrf.mxu1 }
 0x3c2   :  { %v296_v11 = vpop.permute.xlu1 %295  ;;  %v384_v13 = vpop.permute.xlu0 %383 }
 0x3c3   :  { %4674 = vmatpush3.xpose.msk.msra.mxu1 %vm297_vm4, %v296_v11 }
 0x3c4   :  { %4678 = vmatprep.subr.mxu1 %v5127_v49 }
 0x3c6   :  { %4676 = vmatmul.mubr.msk.f32.vlgmr.msra.gmra.mxu1 %vm297_vm4, %v5345_v6 }
 0x3c7   :  { %4679 = vmatpush3.msra.mxu1 %v384_v13  ;;  %4680 = vmatprep.mubr.msk.f32.mxu1 %vm5128_vm3, %v5127_v49 }
 0x3c8   :  { %4683 = vmatprep.subr.mxu1 %v5127_v49 }
 0x486   :  { %v368_v16 = vpop.f32.mrf.mxu1 }
 0x487   :  { %v369_v18 = vadd.f32 %v368_v16, %v5362_v15 }
 0x488   :  { %v4677_v20 = vpop.f32.mrf.mxu1 }
 0x489   :  { %v372_v21 = vsel %vm297_vm4, %v369_v18, -inf }
 0x48a   :  { %373 = vmax.xlane.f32.xlu1 %v372_v21 }
 0x49b   :  { %461 = vrot.lane.b32.xlu1 %v5345_v6, %s5131_s22 }
 0x513   :  { %v374_v22 = vpop.xlane.xlu1 %373 }
 0x514   :  { %v375_v23 = vsub.f32 %v369_v18, %v374_v22 }
 0x516   :  { %v376_v24 = vmul.f32 1.442695, %v375_v23  ;;  %v887_v23 = vld [vmem:[%s5943_s9 + $0x8] sm:$0xf] }
 0x517   :  { %v462_v29 = vpop.permute.xlu1 %461 }
 0x518   :  { %5015 = vpow2.f32 %v376_v24  ;;  %v5445_v24 = vsel %vm631_vm5, %v887_v23, 0 }
 0x525   :  { %v5016_v25 = vpop.eup %5015 }
 0x526   :  { %v378_v12 = vsel %vm297_vm4, %v5016_v25, 0.0 }
 0x527   :  { %379 = vadd.xlane.f32.xlu0 %v378_v12 }
 0x53d   :  { %463 = vrot.lane.b32.xlu0 %v5345_v6, %s5132_s2 }
 0x5b0   :  { %v380_v17 = vpop.xlane.xlu0 %379 }
 0x5b1   :  { %5017 = vrcp.f32 %v380_v17 }
 0x5b4   :  { %v464_v28 = vpop.permute.xlu0 %463 }
 0x5be   :  { %v5018_v26 = vpop.eup %5017 }
 0x5bf   :  { %v382_v27 = vmul.f32 %v5018_v26, %v5016_v25 }
 0x5c1   :  { %4681 = vmatmul.mubr.msk.f32.vlgmr.msra.gmra.mxu1 %vm297_vm4, %v382_v27 }
 0x5c2   :  { %4684 = vmatpush3.xpose.msk.msra.mxu1 %vm297_vm4, %v464_v28  ;;  %4685 = vmatprep.mubr.msk.f32.mxu1 %vm5128_vm3, %v5127_v49 }
 0x5c3   :  { %4688 = vmatprep.subr.mxu1 %v5127_v49 }
 0x5c5   :  { %4686 = vmatmul.mubr.msk.f32.vlgmr.msra.gmra.mxu1 %vm297_vm4, %v462_v29 }
 0x5c6   :  { %4690 = vmatprep.mubr.msk.f32.mxu1 %vm5128_vm3, %v5127_v49 }
 0x681   :  { %v455_v32 = vpop.f32.mrf.mxu1 }
 0x682   :  { %v459_v33 = vpack.c.bf16 %v455_v32, %v455_v32 }
 0x683   :  { %v4682_v34 = vpop.f32.mrf.mxu1 }
 0x684   :  { %4702 = vmatmul.mubr.msk.bf16.vlgmr.msra.gmra.mxu0 %vm297_vm4, %v459_v33 }
 0x685   :  { %v535_v35 = vpop.f32.mrf.mxu1  ;;  %4712 = vmatprep.mubr.msk.f32.mxu0 %vm5128_vm3, %v5127_v49 }
 0x686   :  { %v536_v36 = vadd.f32 %v535_v35, %v5362_v15 }
 0x687   :  { %v4687_v37 = vpop.f32.mrf.mxu1 }
 0x688   :  { %v539_v38 = vsel %vm297_vm4, %v536_v36, -inf }
 0x689   :  { %540 = vmax.xlane.f32.xlu0 %v539_v38  ;;  %v1101_v38 = vld [vmem:[%s5943_s9 + $0xc] sm:$0xf] }
 0x69f   :  { %550 = vrot.lane.b32.xlu0 %v5345_v6, %s5133_s25 }
 0x6a3   :  { %721 = vrot.lane.b32.xlu0 %v5345_v6, %s5134_s3 }
 0x712   :  { %v541_v39 = vpop.xlane.xlu0 %540 }
 0x713   :  { %v542_v40 = vsub.f32 %v536_v36, %v541_v39 }
 0x715   :  { %v543_v41 = vmul.f32 1.442695, %v542_v40  ;;  %v5470_v40 = vsel %vm631_vm5, %v1101_v38, 0 }
 0x716   :  { %v551_v42 = vpop.permute.xlu0 %550 }
 0x717   :  { %5019 = vpow2.f32 %v543_v41  ;;  %4689 = vmatpush3.msra.mxu1 %v551_v42 }
 0x718   :  { %4693 = vmatprep.subr.bf16.mxu1 %v5127_v49 }
 0x71a   :  { %v722_v59 = vpop.permute.xlu0 %721 }
 0x724   :  { %v5020_v43 = vpop.eup %5019 }
 0x725   :  { %v545_v44 = vsel %vm297_vm4, %v5020_v43, 0.0 }
 0x726   :  { %546 = vadd.xlane.f32.xlu1 %v545_v44 }
 0x737   :  { %723 = vrot.lane.b32.xlu1 %v5345_v6, %s5135_s26 }
 0x744   :  { %v5400_v45 = vpop.f32.mrf.mxu0 }
 0x746   :  { %v4703_v46 = vpop.f32.mrf.mxu0 }
 0x748   :  { %v718_v47 = vpop.f32.mrf.mxu0 }
 0x74a   :  { %v4704_v48 = vpop.f32.mrf.mxu0 }
 0x7af   :  { %v547_v50 = vpop.xlane.xlu1 %546 }
 0x7b0   :  { %5021 = vrcp.f32 %v547_v50 }
 0x7b3   :  { %v724_v58 = vpop.permute.xlu1 %723 }
 0x7bd   :  { %v5022_v52 = vpop.eup %5021 }
 0x7be   :  { %v549_v53 = vmul.f32 %v5022_v52, %v5020_v43 }
 0x7c0   :  { %4691 = vmatmul.mubr.msk.f32.vlgmr.msra.gmra.mxu1 %vm297_vm4, %v549_v53 }
 0x7c1   :  { %4694 = vmatpush3.bf16.msra.mxu1 %v5406_v54  ;;  %4695 = vmatprep.mubr.msk.bf16.mxu1 %vm5128_vm3, %v5127_v49 }
 0x7c2   :  { %4705 = vmatprep.subr.mxu1 %v5127_v49 }
 0x880   :  { %v622_v55 = vpop.f32.mrf.mxu1 }
 0x881   :  { %v626_v56 = vpack.c.bf16 %v622_v55, %v622_v55 }
 0x882   :  { %v4692_v57 = vpop.f32.mrf.mxu1 }
 0x883   :  { %4696 = vmatmul.mubr.msk.bf16.vlgmr.msra.gmra.mxu1 %vm297_vm4, %v626_v56 }
 0x884   :  { %4706 = vmatpush3.xpose.msk.msra.mxu1 %vm297_vm4, %v724_v58  ;;  %4707 = vmatprep.mubr.msk.f32.mxu1 %vm5128_vm3, %v5127_v49 }
 0x885   :  { %4715 = vmatprep.subr.bf16.mxu1 %v5127_v49 }
 0x88b   :  { %4708 = vmatmul.mubr.msk.f32.vlgmr.msra.gmra.mxu1 %vm297_vm4, %v722_v59 }
 0x88c   :  { %4717 = vmatprep.mubr.msk.bf16.mxu1 %vm5128_vm3, %v5127_v49  ;;  %4716 = vmatpush3.bf16.msra.mxu1 %v5445_v24 }
 0x88d   :  { %4731 = vmatprep.subr.bf16.mxu1 %v5127_v49 }
 0x943   :  { %v5421_v60 = vpop.f32.mrf.mxu1 }
 0x945   :  { %v4697_v61 = vpop.f32.mrf.mxu1 }
 0x947   :  { %v672_v62 = vpop.f32.mrf.mxu1 }
 0x949   :  { %v4698_v63 = vpop.f32.mrf.mxu1 }
 0x94b   :  { %v795_v0 = vpop.f32.mrf.mxu1 }
 0x94c   :  { %v796_v3 = vadd.f32 %v795_v0, %v5362_v15 }
 0x94d   :  { %v4709_v4 = vpop.f32.mrf.mxu1 }
 0x94e   :  { %v799_v5 = vsel %vm297_vm4, %v796_v3, -inf }
 0x94f   :  { %800 = vmax.xlane.f32.xlu0 %v799_v5 }
 0x965   :  { %810 = vrot.lane.b32.xlu0 %v5345_v6, %s5136_s27 }
 0x969   :  { %935 = vrot.lane.b32.xlu0 %v5345_v6, %s5137_s28 }
 0x9d8   :  { %v801_v7 = vpop.xlane.xlu0 %800 }
 0x9d9   :  { %v802_v8 = vsub.f32 %v796_v3, %v801_v7 }
 0x9db   :  { %v803_v10 = vmul.f32 1.442695, %v802_v8 }
 0x9dc   :  { %v811_v11 = vpop.permute.xlu0 %810 }
 0x9dd   :  { %5023 = vpow2.f32 %v803_v10  ;;  %4711 = vmatpush3.msra.mxu0 %v811_v11 }
 0x9de   :  { %4721 = vmatprep.subr.mxu0 %v5127_v49 }
 0x9e0   :  { %v936_v22 = vpop.permute.xlu0 %935 }
 0x9ea   :  { %v5024_v13 = vpop.eup %5023 }
 0x9eb   :  { %v805_v14 = vsel %vm297_vm4, %v5024_v13, 0.0 }
 0x9ec   :  { %806 = vadd.xlane.f32.xlu1 %v805_v14 }
 0x9fd   :  { %937 = vrot.lane.b32.xlu1 %v5345_v6, %s5138_s29 }
 0xa75   :  { %v807_v16 = vpop.xlane.xlu1 %806 }
 0xa76   :  { %5025 = vrcp.f32 %v807_v16 }
 0xa79   :  { %v938_v21 = vpop.permute.xlu1 %937 }
 0xa83   :  { %v5026_v18 = vpop.eup %5025 }
 0xa84   :  { %v809_v20 = vmul.f32 %v5026_v18, %v5024_v13 }
 0xa86   :  { %4713 = vmatmul.mubr.msk.f32.vlgmr.msra.gmra.mxu0 %vm297_vm4, %v809_v20 }
 0xa87   :  { %4722 = vmatpush3.xpose.msk.msra.mxu0 %vm297_vm4, %v938_v21  ;;  %4723 = vmatprep.mubr.msk.f32.mxu0 %vm5128_vm3, %v5127_v49 }
 0xa88   :  { %4726 = vmatprep.subr.mxu0 %v5127_v49 }
 0xa8a   :  { %4724 = vmatmul.mubr.msk.f32.vlgmr.msra.gmra.mxu0 %vm297_vm4, %v936_v22 }
 0xa8b   :  { %4728 = vmatprep.mubr.msk.f32.mxu0 %vm5128_vm3, %v5127_v49 }
 0xb46   :  { %v882_v25 = vpop.f32.mrf.mxu0 }
 0xb47   :  { %v886_v12 = vpack.c.bf16 %v882_v25, %v882_v25 }
 0xb48   :  { %v4714_v17 = vpop.f32.mrf.mxu0 }
 0xb49   :  { %4718 = vmatmul.mubr.msk.bf16.vlgmr.msra.gmra.mxu1 %vm297_vm4, %v886_v12 }
 0xb4a   :  { %v1009_v26 = vpop.f32.mrf.mxu0  ;;  %4733 = vmatprep.mubr.msk.bf16.mxu1 %vm5128_vm3, %v5127_v49  ;;  %4732 = vmatpush3.bf16.msra.mxu1 %v5470_v40 }
 0xb4b   :  { %v1010_v27 = vadd.f32 %v1009_v26, %v5362_v15  ;;  %4747 = vmatprep.subr.mxu1 %v5127_v49 }
 0xb4c   :  { %v4725_v28 = vpop.f32.mrf.mxu0 }
 0xb4d   :  { %v1013_v29 = vsel %vm297_vm4, %v1010_v27, -inf }
 0xb4e   :  { %1014 = vmax.xlane.f32.xlu0 %v1013_v29 }
 0xb64   :  { %1024 = vrot.lane.b32.xlu0 %v5345_v6, %s5139_s21  ;;  %v716_v6 = vadd.f32 %v5400_v45, %v5421_v60 }
 0xb68   :  { %1320 = vrot.lane.b32.xlu0 %v5351_v9, %s5132_s2 }
 0xb6c   :  { %1318 = vrot.lane.b32.xlu0 %v5351_v9, %s5131_s22 }
 0xbd7   :  { %v1015_v30 = vpop.xlane.xlu0 %1014 }
 0xbd8   :  { %v1016_v32 = vsub.f32 %v1010_v27, %v1015_v30 }
 0xbda   :  { %v1017_v33 = vmul.f32 1.442695, %v1016_v32 }
 0xbdb   :  { %v1025_v34 = vpop.permute.xlu0 %1024 }
 0xbdc   :  { %5027 = vpow2.f32 %v1017_v33  ;;  %4727 = vmatpush3.msra.mxu0 %v1025_v34 }
 0xbdd   :  { %4737 = vmatprep.subr.mxu0 %v5127_v49 }
 0xbdf   :  { %v1321_v52 = vpop.permute.xlu0 %1320 }
 0xbe3   :  { %v1319_v58 = vpop.permute.xlu0 %1318 }
 0xbe9   :  { %v5028_v35 = vpop.eup %5027 }
 0xbea   :  { %v1019_v36 = vsel %vm297_vm4, %v5028_v35, 0.0 }
 0xbeb   :  { %1020 = vadd.xlane.f32.xlu1 %v1019_v36 }
 0xbfc   :  { %1154 = vrot.lane.b32.xlu1 %v5351_v9, %s5130_s1 }
 0xc09   :  { %v928_v37 = vpop.f32.mrf.mxu1 }
 0xc0a   :  { %v934_v39 = vadd.f32 %v928_v37, %v716_v6 }
 0xc0b   :  { %v4719_v41 = vpop.f32.mrf.mxu1 }
 0xc0d   :  { %v931_v42 = vpop.f32.mrf.mxu1 }
 0xc0f   :  { %v4720_v43 = vpop.f32.mrf.mxu1 }
 0xc74   :  { %v1021_v44 = vpop.xlane.xlu1 %1020 }
 0xc75   :  { %5029 = vrcp.f32 %v1021_v44 }
 0xc78   :  { %v1155_v47 = vpop.permute.xlu1 %1154 }
 0xc82   :  { %v5030_v46 = vpop.eup %5029 }
 0xc83   :  { %v1023_v45 = vmul.f32 %v5030_v46, %v5028_v35 }
 0xc85   :  { %4729 = vmatmul.mubr.msk.f32.vlgmr.msra.gmra.mxu0 %vm297_vm4, %v1023_v45 }
 0xc86   :  { %4738 = vmatpush3.xpose.msk.msra.mxu0 %vm297_vm4, %v1155_v47  ;;  %4739 = vmatprep.mubr.msk.f32.mxu0 %vm5128_vm3, %v5127_v49 }
 0xc87   :  { %4742 = vmatprep.subr.mxu0 %v5127_v49 }
 0xc89   :  { %4740 = vmatmul.mubr.msk.f32.vlgmr.msra.gmra.mxu0 %vm297_vm4, %v5351_v9 }
 0xc8a   :  { %4744 = vmatprep.mubr.msk.f32.mxu0 %vm5128_vm3, %v5127_v49 }
 0xd45   :  { %v1096_v48 = vpop.f32.mrf.mxu0 }
 0xd46   :  { %v1100_v50 = vpack.c.bf16 %v1096_v48, %v1096_v48 }
 0xd47   :  { %v4730_v51 = vpop.f32.mrf.mxu0 }
 0xd48   :  { %4734 = vmatmul.mubr.msk.bf16.vlgmr.msra.gmra.mxu1 %vm297_vm4, %v1100_v50 }
 0xd49   :  { %4748 = vmatpush3.xpose.msk.msra.mxu1 %vm297_vm4, %v1321_v52  ;;  %v1226_v53 = vpop.f32.mrf.mxu0  ;;  %4749 = vmatprep.mubr.msk.f32.mxu1 %vm5128_vm3, %v5127_v49 }
 0xd4a   :  { %v1227_v55 = vadd.f32 %v1226_v53, %v5283_v19  ;;  %4757 = vmatprep.subr.bf16.mxu1 %v5127_v49 }
 0xd4b   :  { %v4741_v56 = vpop.f32.mrf.mxu0 }
 0xd4c   :  { %v1230_v57 = vsel %vm297_vm4, %v1227_v55, -inf }
 0xd4d   :  { %1231 = vmax.xlane.f32.xlu1 %v1230_v57 }
 0xd50   :  { %4750 = vmatmul.mubr.msk.f32.vlgmr.msra.gmra.mxu1 %vm297_vm4, %v1319_v58 }
 0xd51   :  { %4758 = vmatpush3.bf16.msra.mxu1 %v5406_v54  ;;  %4759 = vmatprep.mubr.msk.bf16.mxu1 %vm5128_vm3, %v5127_v49 }
 0xd52   :  { %4769 = vmatprep.subr.mxu1 %v5127_v49 }
 0xdd6   :  { %v1232_v59 = vpop.xlane.xlu1 %1231 }
 0xdd7   :  { %v1233_v60 = vsub.f32 %v1227_v55, %v1232_v59 }
 0xdd9   :  { %v1234_v61 = vmul.f32 1.442695, %v1233_v60 }
 0xddb   :  { %5031 = vpow2.f32 %v1234_v61 }
 0xde8   :  { %v5032_v10 = vpop.eup %5031 }
 0xde9   :  { %v1236_v11 = vsel %vm297_vm4, %v5032_v10, 0.0 }
 0xe08   :  { %v1142_v62 = vpop.f32.mrf.mxu1 }
 0xe09   :  { %v5495_v63 = vadd.f32 %v1142_v62, %v934_v39 }
 0xe0a   :  { %v4735_v0 = vpop.f32.mrf.mxu1 }
 0xe0c   :  { %v1145_v3 = vpop.f32.mrf.mxu1 }
 0xe0e   :  { %v4736_v4 = vpop.f32.mrf.mxu1 }
 0xe10   :  { %v1392_v5 = vpop.f32.mrf.mxu1 }
 0xe11   :  { %v1393_v7 = vadd.f32 %v1392_v5, %v5283_v19 }
 0xe12   :  { %v4751_v8 = vpop.f32.mrf.mxu1 }
 0xe13   :  { %v1396_v54 = vsel %vm297_vm4, %v1393_v7, -inf }
 0xe14   :  { %1397 = vmax.xlane.f32.xlu0 %v1396_v54 }
 0xe18   :  { %1237 = vadd.xlane.f32.xlu0 %v1236_v11 }
 0xe2e   :  { %1241 = vrot.lane.b32.xlu0 %v5351_v9, %s5129_s6 }
 0xe32   :  { %1570 = vrot.lane.b32.xlu0 %v5351_v9, %s5134_s3 }
 0xe9d   :  { %v1398_v13 = vpop.xlane.xlu0 %1397 }
 0xe9e   :  { %v1399_v14 = vsub.f32 %v1393_v7, %v1398_v13 }
 0xea0   :  { %v1400_v16 = vmul.f32 1.442695, %v1399_v14 }
 0xea1   :  { %v1238_v18 = vpop.xlane.xlu0 %1237 }
 0xea2   :  { %5033 = vpow2.f32 %v1400_v16 }
 0xea3   :  { %5035 = vrcp.f32 %v1238_v18 }
 0xea5   :  { %v1242_v20 = vpop.permute.xlu0 %1241 }
 0xea6   :  { %4743 = vmatpush3.msra.mxu0 %v1242_v20 }
 0xea7   :  { %4752 = vmatprep.subr.mxu0 %v5127_v49 }
 0xeaf   :  { %v5034_v21 = vpop.eup %5033 }
 0xeb0   :  { %v5036_v22 = vpop.eup %5035  ;;  %v1402_v23 = vsel %vm297_vm4, %v5034_v21, 0.0 }
 0xeb1   :  { %1403 = vadd.xlane.f32.xlu1 %v1402_v23  ;;  %v1240_v25 = vmul.f32 %v5036_v22, %v5032_v10 }
 0xeb3   :  { %4745 = vmatmul.mubr.msk.f32.vlgmr.msra.gmra.mxu0 %vm297_vm4, %v1240_v25 }
 0xeb4   :  { %4754 = vmatprep.mubr.msk.f32.mxu0 %vm5128_vm3, %v5127_v49 }
 0xec2   :  { %1407 = vrot.lane.b32.xlu1 %v5351_v9, %s5133_s25 }
 0xec6   :  { %1572 = vrot.lane.b32.xlu1 %v5351_v9, %s5135_s26 }
 0xf3a   :  { %v1404_v12 = vpop.xlane.xlu1 %1403 }
 0xf3b   :  { %5037 = vrcp.f32 %v1404_v12 }
 0xf3e   :  { %v1408_v17 = vpop.permute.xlu1 %1407 }
 0xf3f   :  { %4753 = vmatpush3.msra.mxu0 %v1408_v17 }
 0xf40   :  { %4763 = vmatprep.subr.bf16.mxu0 %v5127_v49 }
 0xf42   :  { %v1573_v35 = vpop.permute.xlu1 %1572 }
 0xf48   :  { %v5038_v26 = vpop.eup %5037 }
 0xf49   :  { %v1406_v27 = vmul.f32 %v5038_v26, %v5034_v21 }
 0xf4b   :  { %4755 = vmatmul.mubr.msk.f32.vlgmr.msra.gmra.mxu0 %vm297_vm4, %v1406_v27 }
 0xf4c   :  { %4764 = vmatpush3.bf16.msra.mxu0 %v5383_v31  ;;  %4765 = vmatprep.mubr.msk.bf16.mxu0 %vm5128_vm3, %v5127_v49  ;;  %v1571_v31 = vpop.permute.xlu0 %1570 }
 0xf4d   :  { %4774 = vmatprep.subr.mxu0 %v5127_v49 }
 0xf73   :  { %v1313_v28 = vpop.f32.mrf.mxu0 }
 0xf74   :  { %v1317_v29 = vpack.c.bf16 %v1313_v28, %v1313_v28 }
 0xf75   :  { %v4746_v30 = vpop.f32.mrf.mxu0 }
 0xf76   :  { %4766 = vmatmul.mubr.msk.bf16.vlgmr.msra.gmra.mxu0 %vm297_vm4, %v1317_v29 }
 0xf77   :  { %4776 = vmatprep.mubr.msk.f32.mxu0 %vm5128_vm3, %v5127_v49 }
0x100b   :  { %v1479_v32 = vpop.f32.mrf.mxu0 }
0x100c   :  { %v1483_v33 = vpack.c.bf16 %v1479_v32, %v1479_v32 }
0x100d   :  { %v4756_v34 = vpop.f32.mrf.mxu0 }
0x100e   :  { %4760 = vmatmul.mubr.msk.bf16.vlgmr.msra.gmra.mxu1 %vm297_vm4, %v1483_v33 }
0x100f   :  { %4770 = vmatpush3.xpose.msk.msra.mxu1 %vm297_vm4, %v1573_v35  ;;  %4771 = vmatprep.mubr.msk.f32.mxu1 %vm5128_vm3, %v5127_v49 }
0x1010   :  { %4779 = vmatprep.subr.bf16.mxu1 %v5127_v49 }
0x1016   :  { %4772 = vmatmul.mubr.msk.f32.vlgmr.msra.gmra.mxu1 %vm297_vm4, %v1571_v31 }
0x1017   :  { %4780 = vmatpush3.bf16.msra.mxu1 %v5445_v24  ;;  %4781 = vmatprep.mubr.msk.bf16.mxu1 %vm5128_vm3, %v5127_v49 }
0x1018   :  { %4795 = vmatprep.subr.bf16.mxu1 %v5127_v49 }
0x1036   :  { %v5532_v36 = vpop.f32.mrf.mxu0 }
0x1038   :  { %v4767_v6 = vpop.f32.mrf.mxu0 }
0x103a   :  { %v1567_v37 = vpop.f32.mrf.mxu0 }
0x103c   :  { %v4768_v38 = vpop.f32.mrf.mxu0 }
0x10ce   :  { %v1521_v39 = vpop.f32.mrf.mxu1 }
0x10cf   :  { %v1565_v18 = vadd.f32 %v5532_v36, %v1521_v39 }
0x10d0   :  { %v4761_v41 = vpop.f32.mrf.mxu1 }
0x10d2   :  { %v1524_v42 = vpop.f32.mrf.mxu1 }
0x10d4   :  { %v4762_v43 = vpop.f32.mrf.mxu1 }
0x10d6   :  { %v1644_v44 = vpop.f32.mrf.mxu1 }
0x10d7   :  { %v1645_v46 = vadd.f32 %v1644_v44, %v5283_v19 }
0x10d8   :  { %v4773_v45 = vpop.f32.mrf.mxu1 }
0x10d9   :  { %v1648_v24 = vsel %vm297_vm4, %v1645_v46, -inf  ;;  %v4997_v45 = vld [vmem:[%s5947_s13 + $0x8] sm:$0xff]  }
0x10da   :  { %1649 = vmax.xlane.f32.xlu1 %v1648_v24 }
0x10eb   :  { %1782 = vrot.lane.b32.xlu1 %v5351_v9, %s5138_s29 }
0x10ef   :  { %1780 = vrot.lane.b32.xlu1 %v5351_v9, %s5137_s28 }
0x1163   :  { %v1650_v47 = vpop.xlane.xlu1 %1649 }
0x1164   :  { %v1651_v48 = vsub.f32 %v1645_v46, %v1650_v47 }
0x1166   :  { %v1652_v50 = vmul.f32 1.442695, %v1651_v48 }
0x1167   :  { %v1783_v57 = vpop.permute.xlu1 %1782 }
0x1168   :  { %5039 = vpow2.f32 %v1652_v50 }
0x116b   :  { %v1781_v59 = vpop.permute.xlu1 %1780 }
0x1175   :  { %v5040_v51 = vpop.eup %5039 }
0x1176   :  { %v1654_v52 = vsel %vm297_vm4, %v5040_v51, 0.0 }
0x1177   :  { %1655 = vadd.xlane.f32.xlu0 %v1654_v52 }
0x118d   :  { %1659 = vrot.lane.b32.xlu0 %v5351_v9, %s5136_s27 }
0x1200   :  { %v1656_v53 = vpop.xlane.xlu0 %1655 }
0x1201   :  { %5041 = vrcp.f32 %v1656_v53 }
0x1204   :  { %v1660_v55 = vpop.permute.xlu0 %1659 }
0x1205   :  { %4775 = vmatpush3.msra.mxu0 %v1660_v55 }
0x1206   :  { %4785 = vmatprep.subr.mxu0 %v5127_v49 }
0x120e   :  { %v5042_v56 = vpop.eup %5041 }
0x120f   :  { %v1658_v58 = vmul.f32 %v5042_v56, %v5040_v51  ;;  %v4399_v56 = vld [vmem:[%s5945_s11] ss:$0 sm:$0xff] }
0x1211   :  { %4777 = vmatmul.mubr.msk.f32.vlgmr.msra.gmra.mxu0 %vm297_vm4, %v1658_v58 }
0x1212   :  { %4786 = vmatpush3.xpose.msk.msra.mxu0 %vm297_vm4, %v1783_v57  ;;  %4787 = vmatprep.mubr.msk.f32.mxu0 %vm5128_vm3, %v5127_v49 }
0x1213   :  { %4790 = vmatprep.subr.mxu0 %v5127_v49 }
0x1215   :  { %4788 = vmatmul.mubr.msk.f32.vlgmr.msra.gmra.mxu0 %vm297_vm4, %v1781_v59 }
0x1216   :  { %4792 = vmatprep.mubr.msk.f32.mxu0 %vm5128_vm3, %v5127_v49 }
0x12d1   :  { %v1731_v60 = vpop.f32.mrf.mxu0 }
0x12d2   :  { %v1735_v61 = vpack.c.bf16 %v1731_v60, %v1731_v60  ;;  %v4400_v60 = vld [vmem:[%s5946_s12] ss:$0 sm:$0xff] }
0x12d3   :  { %v4778_v62 = vpop.f32.mrf.mxu0 }
0x12d4   :  { %4782 = vmatmul.mubr.msk.bf16.vlgmr.msra.gmra.mxu1 %vm297_vm4, %v1735_v61 }
0x12d5   :  { %v1854_v0 = vpop.f32.mrf.mxu0  ;;  %4796 = vmatpush3.bf16.msra.mxu1 %v5470_v40  ;;  %4797 = vmatprep.mubr.msk.bf16.mxu1 %vm5128_vm3, %v5127_v49  ;;  %v4398_v40 = vld [vmem:[%s5944_s10] ss:$0 sm:$0xff] }
0x12d6   :  { %v1855_v3 = vadd.f32 %v1854_v0, %v5283_v19  ;;  %4809 = vmatprep.subr.bf16.mxu1 %v5127_v49  ;;  %v1997_v11 = vadd.f32 %v4398_v40, %v5495_v63 }
0x12d7   :  { %v4789_v4 = vpop.f32.mrf.mxu0 }
0x12d8   :  { %v1858_v5 = vsel %vm297_vm4, %v1855_v3, -inf  ;;  %v1999_v16 = vadd.f32 %v1997_v11, %v5333_v1  ;;  %v4999_v4 = vld [vmem:[%s5949_s15 + $0x18] sm:$0xff]  }
0x12d9   :  { %1859 = vmax.xlane.f32.xlu0 %v1858_v5  ;;  %v5000_v5 = vld [vmem:[%s5949_s15 + $0x10] sm:$0xff]  }
0x12ef   :  { %1869 = vrot.lane.b32.xlu0 %v5351_v9, %s5139_s21  ;;  %v2003_v9 = vsel %vm178_vm2, %v1999_v16, 0.0 }
0x1362   :  { %v1860_v7 = vpop.xlane.xlu0 %1859 }
0x1363   :  { %v1861_v8 = vsub.f32 %v1855_v3, %v1860_v7  ;;  %v5001_v7 = vld [vmem:[%s5949_s15 + $0x8] sm:$0xff]  }
0x1365   :  { %v1862_v54 = vmul.f32 1.442695, %v1861_v8  ;;  %v5002_v8 = vld [vmem:[%s5949_s15] sm:$0xff]  }
0x1366   :  { %v1870_v10 = vpop.permute.xlu0 %1869 }
0x1367   :  { %5043 = vpow2.f32 %v1862_v54  ;;  %4791 = vmatpush3.msra.mxu0 %v1870_v10  ;;  %v4401_v54 = vld [vmem:[%s5966_s0] ss:$0 sm:$0xff] }
0x1368   :  { %4801 = vmatprep.subr.bf16.mxu0 %v5127_v49 }
0x1374   :  { %v5044_v13 = vpop.eup %5043 }
0x1375   :  { %v1864_v14 = vsel %vm297_vm4, %v5044_v13, 0.0 }
0x1376   :  { %1865 = vadd.xlane.f32.xlu1 %v1864_v14 }
0x137a   :  { %2004 = vadd.xlane.f32.xlu1 %v2003_v9 }
0x1394   :  { %v1773_v20 = vpop.f32.mrf.mxu1 }
0x1395   :  { %v1779_v21 = vadd.f32 %v1773_v20, %v1565_v18 }
0x1396   :  { %v4783_v22 = vpop.f32.mrf.mxu1 }
0x1398   :  { %v1776_v23 = vpop.f32.mrf.mxu1 }
0x139a   :  { %v4784_v25 = vpop.f32.mrf.mxu1 }
0x13ff   :  { %v1866_v12 = vpop.xlane.xlu1 %1865 }
0x1400   :  { %5045 = vrcp.f32 %v1866_v12 }
0x1403   :  { %v2005_v28 = vpop.xlane.xlu1 %2004 }
0x1404   :  { %v2009_v29 = vmul.f32 0.03125, %v2005_v28 }
0x1406   :  { %v2011_v34 = vsub.f32 %v1999_v16, %v2009_v29 }
0x1408   :  { %v2013_v38 = vmul.f32 %v2011_v34, %v2011_v34 }
0x140a   :  { %v2015_v39 = vsel %vm178_vm2, %v2013_v38, 0.0 }
0x140d   :  { %v5046_v17 = vpop.eup %5045 }
0x140e   :  { %v1868_v63 = vmul.f32 %v5046_v17, %v5044_v13 }
0x1410   :  { %4793 = vmatmul.mubr.msk.f32.vlgmr.msra.gmra.mxu0 %vm297_vm4, %v1868_v63 }
0x1411   :  { %4805 = vmatprep.mubr.msk.bf16.mxu0 %vm5128_vm3, %v5127_v49  ;;  %4802 = vmatpush3.bf16.msra.mxu0 %v4997_v45 }
0x1412   :  { %4803 = vmatprep.subr.bf16.mxu0 %v5127_v49 }
0x14d0   :  { %v1941_v1 = vpop.f32.mrf.mxu0 }
0x14d1   :  { %v1945_v26 = vpack.c.bf16 %v1941_v1, %v1941_v1 }
0x14d2   :  { %v4794_v27 = vpop.f32.mrf.mxu0 }
0x14d3   :  { %4798 = vmatmul.mubr.msk.bf16.vlgmr.msra.gmra.mxu1 %vm297_vm4, %v1945_v26 }
0x14d4   :  { %4817 = vmatprep.mubr.msk.bf16.mxu1 %vm5128_vm3, %v5127_v49  ;;  %4810 = vmatpush3.bf16.msra.mxu1 %v4999_v4  ;;  %v4411_v4 = vld [vmem:[%s5951_s17] ss:$0 sm:$0xff] }
0x14d5   :  { %4811 = vmatprep.subr.bf16.mxu1 %v5127_v49 }
0x14d8   :  { %4812 = vmatpush3.bf16.msra.mxu1 %v5000_v5 }
0x14d9   :  { %4813 = vmatprep.subr.bf16.mxu1 %v5127_v49 }
0x14dc   :  { %4814 = vmatpush3.bf16.msra.mxu1 %v5001_v7 }
0x14dd   :  { %4815 = vmatprep.subr.bf16.mxu1 %v5127_v49 }
0x14e0   :  { %4816 = vmatpush3.bf16.msra.mxu1 %v5002_v8 }
0x14e1   :  { %4834 = vmatprep.subr.mxu1 %v5127_v49 }
0x1593   :  { %v1983_v30 = vpop.f32.mrf.mxu1 }
0x1594   :  { %v1989_v32 = vadd.f32 %v1983_v30, %v1779_v21 }
0x1595   :  { %v4799_v33 = vpop.f32.mrf.mxu1 }
0x1596   :  { %v1998_v35 = vadd.f32 %v4398_v40, %v1989_v32 }
0x1597   :  { %v1986_v31 = vpop.f32.mrf.mxu1 }
0x1598   :  { %v2000_v36 = vadd.f32 %v1998_v35, %v5335_v2  ;;  %v4998_v2 = vld [vmem:[%s5947_s13] sm:$0xff]  }
0x1599   :  { %v4800_v6 = vpop.f32.mrf.mxu1  ;;  %4804 = vmatpush3.bf16.msra.mxu0 %v4998_v2  ;;  %v4405_v35 = vld [vmem:[%s5950_s16] ss:$0 sm:$0xff] }
0x159a   :  { %v2006_v37 = vsel %vm178_vm2, %v2000_v36, 0.0  ;;  %4821 = vmatprep.subr.bf16.mxu0 %v5127_v49 }
0x159b   :  { %2007 = vadd.xlane.f32.xlu1 %v2006_v37 }
0x159f   :  { %2016 = vadd.xlane.f32.xlu1 %v2015_v39 }
0x1624   :  { %v2008_v41 = vpop.xlane.xlu1 %2007 }
0x1625   :  { %v2010_v42 = vmul.f32 0.03125, %v2008_v41 }
0x1627   :  { %v2012_v43 = vsub.f32 %v2000_v36, %v2010_v42 }
0x1628   :  { %v2017_v24 = vpop.xlane.xlu1 %2016 }
0x1629   :  { %v2014_v44 = vmul.f32 %v2012_v43, %v2012_v43  ;;  %v2021_v47 = vmul.f32 0.03125, %v2017_v24 }
0x162b   :  { %v2018_v46 = vsel %vm178_vm2, %v2014_v44, 0.0  ;;  %v2023_v48 = vadd.f32 1e-12, %v2021_v47 }
0x162c   :  { %2019 = vadd.xlane.f32.xlu1 %v2018_v46 }
0x162d   :  { %5047 = vrsqrt.f32 %v2023_v48 }
0x163a   :  { %v5048_v53 = vpop.eup %5047 }
0x163b   :  { %v2027_v55 = vmul.f32 %v5048_v53, %v2011_v34 }
0x163d   :  { %v2035_v59 = vmul.f32 %v4399_v56, %v2027_v55  ;;  %v5003_v55 = vld [vmem:[%s5941_s7 + $0x18] sm:$0xff]  }
0x163f   :  { %v2043_v62 = vadd.f32 %v4400_v60, %v2035_v59 }
0x16b5   :  { %v2020_v50 = vpop.xlane.xlu1 %2019 }
0x16b6   :  { %v2022_v51 = vmul.f32 0.03125, %v2020_v50 }
0x16b8   :  { %v2024_v52 = vadd.f32 1e-12, %v2022_v51 }
0x16ba   :  { %5049 = vrsqrt.f32 %v2024_v52 }
0x16c7   :  { %v5050_v57 = vpop.eup %5049 }
0x16c8   :  { %v2028_v58 = vmul.f32 %v5050_v57, %v2012_v43 }
0x16ca   :  { %v2036_v61 = vmul.f32 %v4399_v56, %v2028_v58  ;;  %v5004_v56 = vld [vmem:[%s5941_s7 + $0x10] sm:$0xff]   ;;  %s5967_s7 = sld [smem:[#allocation7_spill]] }
0x16cc   :  { %v2044_v0 = vadd.f32 %v4400_v60, %v2036_v61 }
0x16ce   :  { %v2045_v3 = vpack.c.bf16 %v2044_v0, %v2043_v62 }
0x16d0   :  { %4806 = vmatmul.mubr.msk.bf16.vlgmr.msra.gmra.mxu0 %vm178_vm2, %v2045_v3 }
0x16d1   :  { %4825 = vmatprep.mubr.msk.bf16.mxu0 %vm5128_vm3, %v5127_v49  ;;  %4822 = vmatpush3.bf16.msra.mxu0 %v5003_v55 }
0x16d2   :  { %4823 = vmatprep.subr.bf16.mxu0 %v5127_v49 }
0x16d5   :  { %4824 = vmatpush3.bf16.msra.mxu0 %v5004_v56 }
0x16d6   :  { %4829 = vmatprep.subr.mxu0 %v5127_v49 }
0x1790   :  { %v2106_v10 = vpop.f32.mrf.mxu0 }
0x1791   :  { %v2107_v40 = vadd.f32 %v4401_v54, %v2106_v10 }
0x1792   :  { %v4807_v11 = vpop.f32.mrf.mxu0 }
0x1793   :  { %v2113_v13 = vmul.f32 %v2107_v40, %v2107_v40 }
0x1794   :  { %v2109_v14 = vpop.f32.mrf.mxu0 }
0x1795   :  { %v2115_v16 = vmul.f32 %v2113_v13, %v2107_v40  ;;  %v2110_v9 = vadd.f32 %v4401_v54, %v2109_v14  ;;  %v4412_v54 = vld [vmem:[%s5952_s18] ss:$0 sm:$0xff]  ;;  %v4418_v14 = vld [vmem:[%s5942_s8 + $0x1] ss:$0 sm:$0xff] }
0x1796   :  { %v4808_v18 = vpop.f32.mrf.mxu0 }
0x1797   :  { %v2117_v20 = vmul.f32 0.044715, %v2115_v16  ;;  %v2114_v21 = vmul.f32 %v2110_v9, %v2110_v9 }
0x1799   :  { %v2119_v22 = vadd.f32 %v2117_v20, %v2107_v40  ;;  %v2116_v23 = vmul.f32 %v2114_v21, %v2110_v9 }
0x179b   :  { %v2121_v25 = vmul.f32 0.7978846, %v2119_v22  ;;  %v2118_v12 = vmul.f32 0.044715, %v2116_v23 }
0x179d   :  { %5051 = vtanh.f32 %v2121_v25  ;;  %v2120_v17 = vadd.f32 %v2118_v12, %v2110_v9 }
0x179f   :  { %v2122_v63 = vmul.f32 0.7978846, %v2120_v17 }
0x17a1   :  { %5053 = vtanh.f32 %v2122_v63 }
0x17aa   :  { %v5052_v1 = vpop.eup %5051 }
0x17ab   :  { %v2125_v26 = vadd.f32 1.0, %v5052_v1 }
0x17ad   :  { %v2127_v28 = vmul.f32 0.5, %v2125_v26 }
0x17ae   :  { %v5054_v27 = vpop.eup %5053 }
0x17af   :  { %v2126_v29 = vadd.f32 1.0, %v5054_v27  ;;  %v2129_v32 = vmul.f32 %v2127_v28, %v2107_v40 }
0x17b1   :  { %v2128_v30 = vmul.f32 0.5, %v2126_v29 }
0x17b3   :  { %v2130_v33 = vmul.f32 %v2128_v30, %v2110_v9 }
0x17b5   :  { %v2131_v34 = vpack.c.bf16 %v2130_v33, %v2129_v32 }
0x17b7   :  { %4818 = vmatmul.mubr.msk.bf16.vlgmr.msra.gmra.mxu1 %vm2171_vm6, %v2131_v34 }
0x17b8   :  { %4836 = vmatprep.mubr.msk.f32.mxu1 %vm5128_vm3, %v5127_v49 }
0x1877   :  { %v2209_v31 = vpop.f32.mrf.mxu1 }
0x1878   :  { %v2210_v36 = vadd.f32 %v4405_v35, %v2209_v31 }
0x1879   :  { %v4819_v6 = vpop.f32.mrf.mxu1 }
0x187a   :  { %v2216_v37 = vadd.f32 %v2210_v36, %v2043_v62 }
0x187b   :  { %v2212_v38 = vpop.f32.mrf.mxu1 }
0x187c   :  { %v2213_v39 = vadd.f32 %v4405_v35, %v2212_v38  ;;  %v2220_v41 = vsel %vm178_vm2, %v2216_v37, 0.0 }
0x187d   :  { %2221 = vadd.xlane.f32.xlu0 %v2220_v41  ;;  %v4820_v42 = vpop.f32.mrf.mxu1 }
0x187e   :  { %v2217_v43 = vadd.f32 %v2213_v39, %v2044_v0 }
0x1880   :  { %v2223_v44 = vsel %vm178_vm2, %v2217_v43, 0.0 }
0x1881   :  { %2224 = vadd.xlane.f32.xlu1 %v2223_v44 }
0x1906   :  { %v2222_v46 = vpop.xlane.xlu0 %2221 }
0x1907   :  { %v2226_v45 = vmul.f32 0.03125, %v2222_v46 }
0x1909   :  { %v2228_v2 = vsub.f32 %v2216_v37, %v2226_v45 }
0x190a   :  { %v2225_v24 = vpop.xlane.xlu1 %2224 }
0x190b   :  { %v2227_v47 = vmul.f32 0.03125, %v2225_v24  ;;  %v2230_v48 = vmul.f32 %v2228_v2, %v2228_v2 }
0x190d   :  { %v2229_v50 = vsub.f32 %v2217_v43, %v2227_v47  ;;  %v2232_v51 = vsel %vm178_vm2, %v2230_v48, 0.0  ;;  %v4425_v47 = vld [vmem:[%s5943_s9 + $0x10] sm:$0xf] }
0x190e   :  { %2233 = vadd.xlane.f32.xlu1 %v2232_v51  ;;  %v5699_v48 = vsel %vm631_vm5, %v4425_v47, 0 }
0x190f   :  { %v2231_v52 = vmul.f32 %v2229_v50, %v2229_v50 }
0x1911   :  { %v2235_v53 = vsel %vm178_vm2, %v2231_v52, 0.0 }
0x1912   :  { %2236 = vadd.xlane.f32.xlu1 %v2235_v53 }
0x1997   :  { %v2234_v57 = vpop.xlane.xlu1 %2233 }
0x1998   :  { %v2238_v58 = vmul.f32 0.03125, %v2234_v57 }
0x199a   :  { %v2240_v59 = vadd.f32 1e-12, %v2238_v58 }
0x199b   :  { %v2237_v60 = vpop.xlane.xlu1 %2236 }
0x199c   :  { %5055 = vrsqrt.f32 %v2240_v59  ;;  %v2239_v61 = vmul.f32 0.03125, %v2237_v60 }
0x199e   :  { %v2241_v62 = vadd.f32 1e-12, %v2239_v61 }
0x19a0   :  { %5057 = vrsqrt.f32 %v2241_v62 }
0x19a9   :  { %v5056_v0 = vpop.eup %5055 }
0x19aa   :  { %v2244_v3 = vmul.f32 %v5056_v0, %v2228_v2 }
0x19ac   :  { %v2252_v8 = vmul.f32 %v4411_v4, %v2244_v3 }
0x19ad   :  { %v5058_v5 = vpop.eup %5057 }
0x19ae   :  { %v2245_v7 = vmul.f32 %v5058_v5, %v2229_v50  ;;  %v5640_v40 = vadd.f32 %v4412_v54, %v2252_v8  ;;  %v4429_v50 = vld [vmem:[%s5943_s9 + $0x14] sm:$0xf] }
0x19af   :  { %v5707_v51 = vsel %vm631_vm5, %v4429_v50, 0 }
0x19b0   :  { %v2253_v10 = vmul.f32 %v4411_v4, %v2245_v7 }
0x19b2   :  { %v5642_v11 = vadd.f32 %v4412_v54, %v2253_v10 }
0x19b4   :  { %v2262_v13 = vpack.c.bf16 %v5642_v11, %v5640_v40 }
0x19b6   :  { %4826 = vmatmul.mubr.msk.bf16.vlgmr.msra.gmra.mxu0 %vm178_vm2, %v2262_v13 }
0x19b7   :  { %4831 = vmatprep.mubr.msk.f32.mxu0 %vm5128_vm3, %v5127_v49 }
0x1a76   :  { %v2325_v16 = vpop.f32.mrf.mxu0 }
0x1a77   :  { %v5652_v9 = vadd.f32 %v4418_v14, %v2325_v16 }
0x1a78   :  { %v4827_v18 = vpop.f32.mrf.mxu0 }
0x1a79   :  { %2499 = vrot.lane.b32.xlu0 %v5652_v9, %s5131_s22  ;;  %2333 = vrot.lane.b32.xlu1 %v5652_v9, %s5130_s1 }
0x1a7a   :  { %v2328_v20 = vpop.f32.mrf.mxu0 }
0x1a7b   :  { %v5658_v21 = vadd.f32 %v4418_v14, %v2328_v20 }
0x1a7c   :  { %v4828_v22 = vpop.f32.mrf.mxu0 }
0x1a7d   :  { %2501 = vrot.lane.b32.xlu1 %v5652_v9, %s5132_s2 }
0x1aeb   :  { %v2334_v23 = vpop.permute.xlu1 %2333  ;;  %v2500_v12 = vpop.permute.xlu0 %2499 }
0x1aec   :  { %4830 = vmatpush3.xpose.msk.msra.mxu0 %vm297_vm4, %v2334_v23 }
0x1aed   :  { %4839 = vmatprep.subr.mxu0 %v5127_v49 }
0x1aef   :  { %4832 = vmatmul.mubr.msk.f32.vlgmr.msra.gmra.mxu0 %vm297_vm4, %v5652_v9  ;;  %v2502_v25 = vpop.permute.xlu1 %2501 }
0x1af0   :  { %4840 = vmatpush3.xpose.msk.msra.mxu0 %vm297_vm4, %v2502_v25  ;;  %4841 = vmatprep.mubr.msk.f32.mxu0 %vm5128_vm3, %v5127_v49 }
0x1af1   :  { %4849 = vmatprep.subr.bf16.mxu0 %v5127_v49 }
0x1af3   :  { %4842 = vmatmul.mubr.msk.f32.vlgmr.msra.gmra.mxu0 %vm297_vm4, %v2500_v12 }
0x1af4   :  { %4851 = vmatprep.mubr.msk.bf16.mxu0 %vm5128_vm3, %v5127_v49  ;;  %4850 = vmatpush3.bf16.msra.mxu0 %v5707_v51 }
0x1af5   :  { %4861 = vmatprep.subr.mxu0 %v5127_v49 }
0x1baf   :  { %v2405_v17 = vpop.f32.mrf.mxu0 }
0x1bb0   :  { %v2406_v63 = vadd.f32 %v2405_v17, %v5362_v15 }
0x1bb1   :  { %v4833_v1 = vpop.f32.mrf.mxu0 }
0x1bb2   :  { %v2409_v26 = vsel %vm297_vm4, %v2406_v63, -inf }
0x1bb3   :  { %2410 = vmax.xlane.f32.xlu1 %v2409_v26  ;;  %v2573_v27 = vpop.f32.mrf.mxu0 }
0x1bb4   :  { %v2574_v28 = vadd.f32 %v2573_v27, %v5362_v15 }
0x1bb5   :  { %v4843_v29 = vpop.f32.mrf.mxu0 }
0x1bb6   :  { %v2577_v30 = vsel %vm297_vm4, %v2574_v28, -inf }
0x1bb7   :  { %2578 = vmax.xlane.f32.xlu0 %v2577_v30 }
0x1bcd   :  { %2588 = vrot.lane.b32.xlu0 %v5652_v9, %s5133_s25 }
0x1c3c   :  { %v2411_v32 = vpop.xlane.xlu1 %2410 }
0x1c3d   :  { %v2412_v33 = vsub.f32 %v2406_v63, %v2411_v32 }
0x1c3f   :  { %v2413_v34 = vmul.f32 1.442695, %v2412_v33 }
0x1c40   :  { %v2579_v35 = vpop.xlane.xlu0 %2578 }
0x1c41   :  { %5059 = vpow2.f32 %v2413_v34  ;;  %v2580_v31 = vsub.f32 %v2574_v28, %v2579_v35  ;;  %v4435_v28 = vld [vmem:[%s5943_s9 + $0x18] sm:$0xf] }
0x1c42   :  { %v5746_v29 = vsel %vm631_vm5, %v4435_v28, 0 }
0x1c43   :  { %v2581_v36 = vmul.f32 1.442695, %v2580_v31 }
0x1c44   :  { %v2589_v45 = vpop.permute.xlu0 %2588 }
0x1c45   :  { %5061 = vpow2.f32 %v2581_v36 }
0x1c4e   :  { %v5060_v6 = vpop.eup %5059 }
0x1c4f   :  { %v2415_v37 = vsel %vm297_vm4, %v5060_v6, 0.0 }
0x1c50   :  { %2416 = vadd.xlane.f32.xlu1 %v2415_v37 }
0x1c52   :  { %v5062_v38 = vpop.eup %5061 }
0x1c53   :  { %v2583_v39 = vsel %vm297_vm4, %v5062_v38, 0.0 }
0x1c54   :  { %2584 = vadd.xlane.f32.xlu1 %v2583_v39 }
0x1c65   :  { %2420 = vrot.lane.b32.xlu1 %v5652_v9, %s5129_s6 }
0x1c69   :  { %2760 = vrot.lane.b32.xlu1 %v5652_v9, %s5135_s26 }
0x1c6d   :  { %2758 = vrot.lane.b32.xlu1 %v5652_v9, %s5134_s3 }
0x1cd9   :  { %v2417_v41 = vpop.xlane.xlu1 %2416 }
0x1cda   :  { %5063 = vrcp.f32 %v2417_v41 }
0x1cdd   :  { %v2585_v42 = vpop.xlane.xlu1 %2584 }
0x1cde   :  { %5065 = vrcp.f32 %v2585_v42  ;;  %v4440_v42 = vld [vmem:[%s5943_s9 + $0x1c] sm:$0xf] }
0x1ce1   :  { %v2421_v43 = vpop.permute.xlu1 %2420 }
0x1ce2   :  { %4835 = vmatpush3.msra.mxu1 %v2421_v43 }
0x1ce3   :  { %4844 = vmatprep.subr.mxu1 %v5127_v49 }
0x1ce5   :  { %v2761_v59 = vpop.permute.xlu1 %2760 }
0x1ce7   :  { %v5064_v44 = vpop.eup %5063 }
0x1ce8   :  { %v2419_v46 = vmul.f32 %v5064_v44, %v5060_v6  ;;  %v5770_v44 = vsel %vm631_vm5, %v4440_v42, 0 }
0x1ce9   :  { %v2759_v60 = vpop.permute.xlu1 %2758 }
0x1cea   :  { %4837 = vmatmul.mubr.msk.f32.vlgmr.msra.gmra.mxu1 %vm297_vm4, %v2419_v46 }
0x1ceb   :  { %v5066_v2 = vpop.eup %5065  ;;  %4845 = vmatpush3.msra.mxu1 %v2589_v45  ;;  %4846 = vmatprep.mubr.msk.f32.mxu1 %vm5128_vm3, %v5127_v49 }
0x1cec   :  { %v2587_v24 = vmul.f32 %v5066_v2, %v5062_v38  ;;  %4855 = vmatprep.subr.bf16.mxu1 %v5127_v49 }
0x1cee   :  { %4847 = vmatmul.mubr.msk.f32.vlgmr.msra.gmra.mxu1 %vm297_vm4, %v2587_v24 }
0x1cef   :  { %4857 = vmatprep.mubr.msk.bf16.mxu1 %vm5128_vm3, %v5127_v49  ;;  %4856 = vmatpush3.bf16.msra.mxu1 %v5699_v48 }
0x1cf0   :  { %4866 = vmatprep.subr.mxu1 %v5127_v49 }
0x1daa   :  { %v2492_v52 = vpop.f32.mrf.mxu1 }
0x1dab   :  { %v2496_v53 = vpack.c.bf16 %v2492_v52, %v2492_v52 }
0x1dac   :  { %v4838_v55 = vpop.f32.mrf.mxu1 }
0x1dad   :  { %4858 = vmatmul.mubr.msk.bf16.vlgmr.msra.gmra.mxu1 %vm297_vm4, %v2496_v53 }
0x1dae   :  { %v2660_v56 = vpop.f32.mrf.mxu1  ;;  %4868 = vmatprep.mubr.msk.f32.mxu1 %vm5128_vm3, %v5127_v49 }
0x1daf   :  { %v2664_v57 = vpack.c.bf16 %v2660_v56, %v2660_v56 }
0x1db0   :  { %v4848_v58 = vpop.f32.mrf.mxu1 }
0x1db1   :  { %4852 = vmatmul.mubr.msk.bf16.vlgmr.msra.gmra.mxu0 %vm297_vm4, %v2664_v57 }
0x1db2   :  { %4862 = vmatpush3.xpose.msk.msra.mxu0 %vm297_vm4, %v2761_v59  ;;  %4863 = vmatprep.mubr.msk.f32.mxu0 %vm5128_vm3, %v5127_v49 }
0x1db3   :  { %4871 = vmatprep.subr.bf16.mxu0 %v5127_v49 }
0x1db9   :  { %4864 = vmatmul.mubr.msk.f32.vlgmr.msra.gmra.mxu0 %vm297_vm4, %v2759_v60 }
0x1dba   :  { %4873 = vmatprep.mubr.msk.bf16.mxu0 %vm5128_vm3, %v5127_v49  ;;  %4872 = vmatpush3.bf16.msra.mxu0 %v5746_v29 }
0x1dbb   :  { %4887 = vmatprep.subr.bf16.mxu0 %v5127_v49 }
0x1e6d   :  { %v2752_v61 = vpop.f32.mrf.mxu1 }
0x1e6f   :  { %v4859_v62 = vpop.f32.mrf.mxu1 }
0x1e71   :  { %v2706_v0 = vpop.f32.mrf.mxu0  ;;  %v2755_v3 = vpop.f32.mrf.mxu1 }
0x1e72   :  { %v5722_v4 = vadd.f32 %v2752_v61, %v2706_v0 }
0x1e73   :  { %v4853_v5 = vpop.f32.mrf.mxu0  ;;  %v4860_v7 = vpop.f32.mrf.mxu1 }
0x1e75   :  { %v2709_v8 = vpop.f32.mrf.mxu0 }
0x1e77   :  { %v4854_v54 = vpop.f32.mrf.mxu0 }
0x1e79   :  { %v2832_v10 = vpop.f32.mrf.mxu0 }
0x1e7a   :  { %v2833_v13 = vadd.f32 %v2832_v10, %v5362_v15 }
0x1e7b   :  { %v4865_v14 = vpop.f32.mrf.mxu0 }
0x1e7c   :  { %v2836_v16 = vsel %vm297_vm4, %v2833_v13, -inf }
0x1e7d   :  { %2837 = vmax.xlane.f32.xlu1 %v2836_v16 }
0x1e8e   :  { %2974 = vrot.lane.b32.xlu1 %v5652_v9, %s5138_s29 }
0x1e92   :  { %2972 = vrot.lane.b32.xlu1 %v5652_v9, %s5137_s28 }
0x1f06   :  { %v2838_v18 = vpop.xlane.xlu1 %2837 }
0x1f07   :  { %v2839_v20 = vsub.f32 %v2833_v13, %v2838_v18 }
0x1f09   :  { %v2840_v22 = vmul.f32 1.442695, %v2839_v20 }
0x1f0a   :  { %v2975_v1 = vpop.permute.xlu1 %2974 }
0x1f0b   :  { %5067 = vpow2.f32 %v2840_v22 }
0x1f0e   :  { %v2973_v27 = vpop.permute.xlu1 %2972 }
0x1f18   :  { %v5068_v23 = vpop.eup %5067 }
0x1f19   :  { %v2842_v25 = vsel %vm297_vm4, %v5068_v23, 0.0 }
0x1f1a   :  { %2843 = vadd.xlane.f32.xlu0 %v2842_v25 }
0x1f30   :  { %2847 = vrot.lane.b32.xlu0 %v5652_v9, %s5136_s27 }
0x1fa3   :  { %v2844_v12 = vpop.xlane.xlu0 %2843 }
0x1fa4   :  { %5069 = vrcp.f32 %v2844_v12 }
0x1fa7   :  { %v2848_v17 = vpop.permute.xlu0 %2847 }
0x1fa8   :  { %4867 = vmatpush3.msra.mxu1 %v2848_v17 }
0x1fa9   :  { %4877 = vmatprep.subr.mxu1 %v5127_v49 }
0x1fb1   :  { %v5070_v63 = vpop.eup %5069 }
0x1fb2   :  { %v2846_v26 = vmul.f32 %v5070_v63, %v5068_v23 }
0x1fb4   :  { %4869 = vmatmul.mubr.msk.f32.vlgmr.msra.gmra.mxu1 %vm297_vm4, %v2846_v26 }
0x1fb5   :  { %4878 = vmatpush3.xpose.msk.msra.mxu1 %vm297_vm4, %v2975_v1  ;;  %4879 = vmatprep.mubr.msk.f32.mxu1 %vm5128_vm3, %v5127_v49 }
0x1fb6   :  { %4882 = vmatprep.subr.mxu1 %v5127_v49 }
0x1fb8   :  { %4880 = vmatmul.mubr.msk.f32.vlgmr.msra.gmra.mxu1 %vm297_vm4, %v2973_v27 }
0x1fb9   :  { %4884 = vmatprep.mubr.msk.f32.mxu1 %vm5128_vm3, %v5127_v49 }
0x2074   :  { %v2919_v30 = vpop.f32.mrf.mxu1 }
0x2075   :  { %v2923_v32 = vpack.c.bf16 %v2919_v30, %v2919_v30 }
0x2076   :  { %v4870_v33 = vpop.f32.mrf.mxu1 }
0x2077   :  { %4874 = vmatmul.mubr.msk.bf16.vlgmr.msra.gmra.mxu0 %vm297_vm4, %v2923_v32 }
0x2078   :  { %v3046_v34 = vpop.f32.mrf.mxu1  ;;  %4889 = vmatprep.mubr.msk.bf16.mxu0 %vm5128_vm3, %v5127_v49  ;;  %4888 = vmatpush3.bf16.msra.mxu0 %v5770_v44 }
0x2079   :  { %v3047_v35 = vadd.f32 %v3046_v34, %v5362_v15  ;;  %4903 = vmatprep.subr.mxu0 %v5127_v49 }
0x207a   :  { %v4881_v31 = vpop.f32.mrf.mxu1 }
0x207b   :  { %v3050_v36 = vsel %vm297_vm4, %v3047_v35, -inf }
0x207c   :  { %3051 = vmax.xlane.f32.xlu0 %v3050_v36 }
0x2092   :  { %3061 = vrot.lane.b32.xlu0 %v5652_v9, %s5139_s21 }
0x2096   :  { %3353 = vrot.lane.b32.xlu0 %v5658_v21, %s5132_s2 }
0x2105   :  { %v3052_v6 = vpop.xlane.xlu0 %3051 }
0x2106   :  { %v3053_v37 = vsub.f32 %v3047_v35, %v3052_v6 }
0x2108   :  { %v3054_v38 = vmul.f32 1.442695, %v3053_v37 }
0x2109   :  { %v3062_v39 = vpop.permute.xlu0 %3061 }
0x210a   :  { %5071 = vpow2.f32 %v3054_v38  ;;  %4883 = vmatpush3.msra.mxu1 %v3062_v39 }
0x210b   :  { %4893 = vmatprep.subr.mxu1 %v5127_v49 }
0x210d   :  { %v3354_v57 = vpop.permute.xlu0 %3353 }
0x2117   :  { %v5072_v41 = vpop.eup %5071 }
0x2118   :  { %v3056_v15 = vsel %vm297_vm4, %v5072_v41, 0.0 }
0x2119   :  { %3057 = vadd.xlane.f32.xlu1 %v3056_v15 }
0x212a   :  { %3187 = vrot.lane.b32.xlu1 %v5658_v21, %s5130_s1 }
0x212e   :  { %3351 = vrot.lane.b32.xlu1 %v5658_v21, %s5131_s22 }
0x2137   :  { %v2965_v9 = vpop.f32.mrf.mxu0 }
0x2138   :  { %v2971_v43 = vadd.f32 %v2965_v9, %v5722_v4 }
0x2139   :  { %v4875_v46 = vpop.f32.mrf.mxu0 }
0x213b   :  { %v2968_v45 = vpop.f32.mrf.mxu0 }
0x213d   :  { %v4876_v2 = vpop.f32.mrf.mxu0 }
0x21a2   :  { %v3058_v24 = vpop.xlane.xlu1 %3057 }
0x21a3   :  { %5073 = vrcp.f32 %v3058_v24 }
0x21a6   :  { %v3188_v52 = vpop.permute.xlu1 %3187 }
0x21aa   :  { %v3352_v62 = vpop.permute.xlu1 %3351 }
0x21b0   :  { %v5074_v47 = vpop.eup %5073 }
0x21b1   :  { %v3060_v50 = vmul.f32 %v5074_v47, %v5072_v41 }
0x21b3   :  { %4885 = vmatmul.mubr.msk.f32.vlgmr.msra.gmra.mxu1 %vm297_vm4, %v3060_v50 }
0x21b4   :  { %4894 = vmatpush3.xpose.msk.msra.mxu1 %vm297_vm4, %v3188_v52  ;;  %4895 = vmatprep.mubr.msk.f32.mxu1 %vm5128_vm3, %v5127_v49 }
0x21b5   :  { %4898 = vmatprep.subr.mxu1 %v5127_v49 }
0x21b7   :  { %4896 = vmatmul.mubr.msk.f32.vlgmr.msra.gmra.mxu1 %vm297_vm4, %v5658_v21 }
0x21b8   :  { %4900 = vmatprep.mubr.msk.f32.mxu1 %vm5128_vm3, %v5127_v49 }
0x2273   :  { %v3133_v53 = vpop.f32.mrf.mxu1 }
0x2274   :  { %v3137_v55 = vpack.c.bf16 %v3133_v53, %v3133_v53 }
0x2275   :  { %v4886_v56 = vpop.f32.mrf.mxu1 }
0x2276   :  { %4890 = vmatmul.mubr.msk.bf16.vlgmr.msra.gmra.mxu0 %vm297_vm4, %v3137_v55 }
0x2277   :  { %4904 = vmatpush3.xpose.msk.msra.mxu0 %vm297_vm4, %v3354_v57  ;;  %v3259_v58 = vpop.f32.mrf.mxu1  ;;  %4905 = vmatprep.mubr.msk.f32.mxu0 %vm5128_vm3, %v5127_v49 }
0x2278   :  { %v3260_v59 = vadd.f32 %v3259_v58, %v5283_v19  ;;  %4913 = vmatprep.subr.bf16.mxu0 %v5127_v49 }
0x2279   :  { %v4897_v60 = vpop.f32.mrf.mxu1 }
0x227a   :  { %v3263_v61 = vsel %vm297_vm4, %v3260_v59, -inf }
0x227b   :  { %3264 = vmax.xlane.f32.xlu0 %v3263_v61 }
0x227e   :  { %4906 = vmatmul.mubr.msk.f32.vlgmr.msra.gmra.mxu0 %vm297_vm4, %v3352_v62 }
0x227f   :  { %4914 = vmatpush3.bf16.msra.mxu0 %v5707_v51  ;;  %4915 = vmatprep.mubr.msk.bf16.mxu0 %vm5128_vm3, %v5127_v49 }
0x2280   :  { %4925 = vmatprep.subr.mxu0 %v5127_v49 }
0x2304   :  { %v3265_v0 = vpop.xlane.xlu0 %3264 }
0x2305   :  { %v3266_v3 = vsub.f32 %v3260_v59, %v3265_v0  ;;  %v4459_v0 = vld [vmem:[%s5944_s10 + $0x1] ss:$0 sm:$0xff] }
0x2307   :  { %v3267_v4 = vmul.f32 1.442695, %v3266_v3 }
0x2309   :  { %5075 = vpow2.f32 %v3267_v4 }
0x2316   :  { %v5076_v5 = vpop.eup %5075 }
0x2317   :  { %v3269_v7 = vsel %vm297_vm4, %v5076_v5, 0.0 }
0x2318   :  { %3270 = vadd.xlane.f32.xlu0 %v3269_v7 }
0x2336   :  { %v3179_v8 = vpop.f32.mrf.mxu0 }
0x2337   :  { %v5796_v54 = vadd.f32 %v3179_v8, %v2971_v43 }
0x2338   :  { %v4891_v10 = vpop.f32.mrf.mxu0 }
0x2339   :  { %v4031_v7 = vadd.f32 %v4459_v0, %v5796_v54 }
0x233a   :  { %v3182_v13 = vpop.f32.mrf.mxu0 }
0x233c   :  { %v4892_v14 = vpop.f32.mrf.mxu0 }
0x233e   :  { %v3425_v51 = vpop.f32.mrf.mxu0 }
0x233f   :  { %v3426_v16 = vadd.f32 %v3425_v51, %v5283_v19  ;;  %v4033_v51 = vadd.f32 %v4031_v7, %v5640_v40  ;;  %v5008_v7 = vld [vmem:[%s5949_s15 + $0x30] sm:$0xff]  }
0x2340   :  { %v4907_v18 = vpop.f32.mrf.mxu0 }
0x2341   :  { %v3429_v20 = vsel %vm297_vm4, %v3426_v16, -inf }
0x2342   :  { %3430 = vmax.xlane.f32.xlu1 %v3429_v20 }
0x2353   :  { %3274 = vrot.lane.b32.xlu1 %v5658_v21, %s5129_s6 }
0x2357   :  { %3605 = vrot.lane.b32.xlu1 %v5658_v21, %s5135_s26 }
0x235b   :  { %3603 = vrot.lane.b32.xlu1 %v5658_v21, %s5134_s3 }
0x23a1   :  { %v3271_v22 = vpop.xlane.xlu0 %3270 }
0x23a2   :  { %5077 = vrcp.f32 %v3271_v22 }
0x23af   :  { %v5078_v25 = vpop.eup %5077 }
0x23b0   :  { %v3273_v1 = vmul.f32 %v5078_v25, %v5076_v5 }
0x23cb   :  { %v3431_v23 = vpop.xlane.xlu1 %3430 }
0x23cc   :  { %v3432_v12 = vsub.f32 %v3426_v16, %v3431_v23  ;;  %v4039_v16 = vsel %vm178_vm2, %v4033_v51, 0.0 }
0x23ce   :  { %v3433_v17 = vmul.f32 1.442695, %v3432_v12 }
0x23cf   :  { %v3275_v63 = vpop.permute.xlu1 %3274 }
0x23d0   :  { %5079 = vpow2.f32 %v3433_v17  ;;  %4899 = vmatpush3.msra.mxu1 %v3275_v63 }
0x23d1   :  { %4901 = vmatmul.mubr.msk.f32.vlgmr.msra.gmra.mxu1 %vm297_vm4, %v3273_v1  ;;  %4908 = vmatprep.subr.mxu1 %v5127_v49 }
0x23d2   :  { %4910 = vmatprep.mubr.msk.f32.mxu1 %vm5128_vm3, %v5127_v49 }
0x23d3   :  { %v3606_v38 = vpop.permute.xlu1 %3605 }
0x23dd   :  { %v5080_v26 = vpop.eup %5079 }
0x23de   :  { %v3435_v27 = vsel %vm297_vm4, %v5080_v26, 0.0 }
0x23df   :  { %3436 = vadd.xlane.f32.xlu0 %v3435_v27 }
0x23f5   :  { %3440 = vrot.lane.b32.xlu0 %v5658_v21, %s5133_s25 }
0x2468   :  { %v3437_v28 = vpop.xlane.xlu0 %3436 }
0x2469   :  { %5081 = vrcp.f32 %v3437_v28 }
0x246c   :  { %v3441_v30 = vpop.permute.xlu0 %3440 }
0x246d   :  { %4909 = vmatpush3.msra.mxu1 %v3441_v30 }
0x246e   :  { %4919 = vmatprep.subr.bf16.mxu1 %v5127_v49 }
0x2476   :  { %v5082_v32 = vpop.eup %5081 }
0x2477   :  { %v3439_v33 = vmul.f32 %v5082_v32, %v5080_v26 }
0x2479   :  { %4911 = vmatmul.mubr.msk.f32.vlgmr.msra.gmra.mxu1 %vm297_vm4, %v3439_v33 }
0x247a   :  { %4920 = vmatpush3.bf16.msra.mxu1 %v5699_v48  ;;  %4921 = vmatprep.mubr.msk.bf16.mxu1 %vm5128_vm3, %v5127_v49  ;;  %v3604_v48 = vpop.permute.xlu1 %3603 }
0x247b   :  { %4930 = vmatprep.subr.mxu1 %v5127_v49 }
0x2491   :  { %v3346_v34 = vpop.f32.mrf.mxu1 }
0x2492   :  { %v3350_v35 = vpack.c.bf16 %v3346_v34, %v3346_v34 }
0x2493   :  { %v4902_v31 = vpop.f32.mrf.mxu1 }
0x2494   :  { %4922 = vmatmul.mubr.msk.bf16.vlgmr.msra.gmra.mxu1 %vm297_vm4, %v3350_v35 }
0x2495   :  { %4932 = vmatprep.mubr.msk.f32.mxu1 %vm5128_vm3, %v5127_v49 }
0x2539   :  { %v3512_v36 = vpop.f32.mrf.mxu1 }
0x253a   :  { %v3516_v6 = vpack.c.bf16 %v3512_v36, %v3512_v36 }
0x253b   :  { %v4912_v37 = vpop.f32.mrf.mxu1 }
0x253c   :  { %4916 = vmatmul.mubr.msk.bf16.vlgmr.msra.gmra.mxu0 %vm297_vm4, %v3516_v6 }
0x253d   :  { %4926 = vmatpush3.xpose.msk.msra.mxu0 %vm297_vm4, %v3606_v38  ;;  %4927 = vmatprep.mubr.msk.f32.mxu0 %vm5128_vm3, %v5127_v49 }
0x253e   :  { %4935 = vmatprep.subr.bf16.mxu0 %v5127_v49 }
0x2544   :  { %4928 = vmatmul.mubr.msk.f32.vlgmr.msra.gmra.mxu0 %vm297_vm4, %v3604_v48 }
0x2545   :  { %4936 = vmatpush3.bf16.msra.mxu0 %v5746_v29  ;;  %4937 = vmatprep.mubr.msk.bf16.mxu0 %vm5128_vm3, %v5127_v49 }
0x2546   :  { %4965 = vmatprep.subr.bf16.mxu0 %v5127_v49 }
0x2554   :  { %v3597_v39 = vpop.f32.mrf.mxu1 }
0x2556   :  { %v4923_v41 = vpop.f32.mrf.mxu1 }
0x2558   :  { %v3600_v15 = vpop.f32.mrf.mxu1 }
0x255a   :  { %v4924_v9 = vpop.f32.mrf.mxu1 }
0x25fc   :  { %v3554_v42 = vpop.f32.mrf.mxu0 }
0x25fe   :  { %v4917_v43 = vpop.f32.mrf.mxu0 }
0x2600   :  { %v3557_v46 = vpop.f32.mrf.mxu0 }
0x2602   :  { %v4918_v45 = vpop.f32.mrf.mxu0 }
0x2604   :  { %v3677_v2 = vpop.f32.mrf.mxu0 }
0x2605   :  { %v3678_v24 = vadd.f32 %v3677_v2, %v5283_v19  ;;  %v5005_v2 = vld [vmem:[%s5947_s13 + $0x18] sm:$0xff]  }
0x2606   :  { %v4929_v47 = vpop.f32.mrf.mxu0 }
0x2607   :  { %v3681_v50 = vsel %vm297_vm4, %v3678_v24, -inf }
0x2608   :  { %3682 = vmax.xlane.f32.xlu0 %v3681_v50 }
0x261e   :  { %3692 = vrot.lane.b32.xlu0 %v5658_v21, %s5136_s27 }
0x2622   :  { %3813 = vrot.lane.b32.xlu0 %v5658_v21, %s5137_s28 }
0x2691   :  { %v3683_v29 = vpop.xlane.xlu0 %3682 }
0x2692   :  { %v3684_v52 = vsub.f32 %v3678_v24, %v3683_v29 }
0x2694   :  { %v3685_v53 = vmul.f32 1.442695, %v3684_v52 }
0x2695   :  { %v3693_v55 = vpop.permute.xlu0 %3692 }
0x2696   :  { %5083 = vpow2.f32 %v3685_v53  ;;  %4931 = vmatpush3.msra.mxu1 %v3693_v55 }
0x2697   :  { %4941 = vmatprep.subr.mxu1 %v5127_v49 }
0x2699   :  { %v3814_v62 = vpop.permute.xlu0 %3813 }
0x26a3   :  { %v5084_v56 = vpop.eup %5083 }
0x26a4   :  { %v3687_v57 = vsel %vm297_vm4, %v5084_v56, 0.0 }
0x26a5   :  { %3688 = vadd.xlane.f32.xlu1 %v3687_v57  ;;  %v4462_v57 = vld [vmem:[%s5945_s11 + $0x1] ss:$0 sm:$0xff] }
0x26b6   :  { %3815 = vrot.lane.b32.xlu1 %v5658_v21, %s5138_s29 }
0x272e   :  { %v3689_v58 = vpop.xlane.xlu1 %3688 }
0x272f   :  { %5085 = vrcp.f32 %v3689_v58 }
0x2732   :  { %v3816_v61 = vpop.permute.xlu1 %3815 }
0x273c   :  { %v5086_v59 = vpop.eup %5085 }
0x273d   :  { %v3691_v60 = vmul.f32 %v5086_v59, %v5084_v56 }
0x273f   :  { %4933 = vmatmul.mubr.msk.f32.vlgmr.msra.gmra.mxu1 %vm297_vm4, %v3691_v60 }
0x2740   :  { %4942 = vmatpush3.xpose.msk.msra.mxu1 %vm297_vm4, %v3816_v61  ;;  %4943 = vmatprep.mubr.msk.f32.mxu1 %vm5128_vm3, %v5127_v49  ;;  %v4463_v61 = vld [vmem:[%s5946_s12 + $0x1] ss:$0 sm:$0xff] }
0x2741   :  { %4946 = vmatprep.subr.mxu1 %v5127_v49 }
0x2743   :  { %4944 = vmatmul.mubr.msk.f32.vlgmr.msra.gmra.mxu1 %vm297_vm4, %v3814_v62 }
0x2744   :  { %4948 = vmatprep.mubr.msk.f32.mxu1 %vm5128_vm3, %v5127_v49 }
0x27ff   :  { %v3764_v3 = vpop.f32.mrf.mxu1 }
0x2800   :  { %v3768_v4 = vpack.c.bf16 %v3764_v3, %v3764_v3 }
0x2801   :  { %v4934_v5 = vpop.f32.mrf.mxu1 }
0x2802   :  { %4938 = vmatmul.mubr.msk.bf16.vlgmr.msra.gmra.mxu0 %vm297_vm4, %v3768_v4  ;;  %v5007_v5 = vld [vmem:[%s5949_s15 + $0x38] sm:$0xff]  }
0x2803   :  { %v3887_v8 = vpop.f32.mrf.mxu1  ;;  %4973 = vmatprep.mubr.msk.bf16.mxu0 %vm5128_vm3, %v5127_v49  ;;  %4966 = vmatpush3.bf16.msra.mxu0 %v5007_v5 }
0x2804   :  { %v3888_v10 = vadd.f32 %v3887_v8, %v5283_v19  ;;  %v3598_v19 = vadd.f32 %v3597_v39, %v3554_v42  ;;  %4967 = vmatprep.subr.bf16.mxu0 %v5127_v49  ;;  %v5009_v8 = vld [vmem:[%s5949_s15 + $0x28] sm:$0xff]  }
0x2805   :  { %v4945_v13 = vpop.f32.mrf.mxu1 }
0x2806   :  { %v3891_v14 = vsel %vm297_vm4, %v3888_v10, -inf  ;;  %v4469_v13 = vld [vmem:[%s5966_s0 + $0x1] ss:$0 sm:$0xff] }
0x2807   :  { %3892 = vmax.xlane.f32.xlu1 %v3891_v14  ;;  %4968 = vmatpush3.bf16.msra.mxu0 %v5008_v7 }
0x2808   :  { %4969 = vmatprep.subr.bf16.mxu0 %v5127_v49 }
0x280b   :  { %4040 = vadd.xlane.f32.xlu1 %v4039_v16  ;;  %4970 = vmatpush3.bf16.msra.mxu0 %v5009_v8 }
0x280c   :  { %4971 = vmatprep.subr.bf16.mxu0 %v5127_v49 }
0x2890   :  { %v3893_v18 = vpop.xlane.xlu1 %3892 }
0x2891   :  { %v3894_v20 = vsub.f32 %v3888_v10, %v3893_v18  ;;  %v5010_v10 = vld [vmem:[%s5949_s15 + $0x20] sm:$0xff]  }
0x2892   :  { %4972 = vmatpush3.bf16.msra.mxu0 %v5010_v10  ;;  %v4490_v10 = vld [vmem:[%s5951_s17 + $0x1] ss:$0 sm:$0xff]  ;;  %s5140_s17 = smov [#allocation2]  }
0x2893   :  { %v3895_v54 = vmul.f32 1.442695, %v3894_v20 }
0x2894   :  { %v4041_v33 = vpop.xlane.xlu1 %4040 }
0x2895   :  { %5087 = vpow2.f32 %v3895_v54  ;;  %v4045_v34 = vmul.f32 0.03125, %v4041_v33 }
0x2897   :  { %v4047_v6 = vsub.f32 %v4033_v51, %v4045_v34 }
0x2899   :  { %v4049_v41 = vmul.f32 %v4047_v6, %v4047_v6 }
0x289b   :  { %v4051_v15 = vsel %vm178_vm2, %v4049_v41, 0.0 }
0x28a2   :  { %v5088_v22 = vpop.eup %5087 }
0x28a3   :  { %v3897_v23 = vsel %vm297_vm4, %v5088_v22, 0.0 }
0x28a4   :  { %3898 = vadd.xlane.f32.xlu0 %v3897_v23 }
0x28ba   :  { %3902 = vrot.lane.b32.xlu0 %v5658_v21, %s5139_s21 }
0x28c2   :  { %v3806_v25 = vpop.f32.mrf.mxu0 }
0x28c3   :  { %v3812_v12 = vadd.f32 %v3806_v25, %v3598_v19 }
0x28c4   :  { %v4939_v17 = vpop.f32.mrf.mxu0 }
0x28c6   :  { %v3809_v40 = vpop.f32.mrf.mxu0 }
0x28c8   :  { %v4940_v63 = vpop.f32.mrf.mxu0 }
0x292d   :  { %v3899_v1 = vpop.xlane.xlu0 %3898 }
0x292e   :  { %5089 = vrcp.f32 %v3899_v1 }
0x2931   :  { %v3903_v26 = vpop.permute.xlu0 %3902 }
0x2932   :  { %4947 = vmatpush3.msra.mxu1 %v3903_v26 }
0x2933   :  { %4951 = vmatprep.subr.bf16.mxu1 %v5127_v49 }
0x293b   :  { %v5090_v27 = vpop.eup %5089 }
0x293c   :  { %v3901_v28 = vmul.f32 %v5090_v27, %v5088_v22 }
0x293e   :  { %4949 = vmatmul.mubr.msk.f32.vlgmr.msra.gmra.mxu1 %vm297_vm4, %v3901_v28 }
0x293f   :  { %4952 = vmatpush3.bf16.msra.mxu1 %v5770_v44  ;;  %4953 = vmatprep.mubr.msk.bf16.mxu1 %vm5128_vm3, %v5127_v49 }
0x2940   :  { %4957 = vmatprep.subr.bf16.mxu1 %v5127_v49 }
0x29fe   :  { %v3974_v21 = vpop.f32.mrf.mxu1 }
0x29ff   :  { %v3978_v30 = vpack.c.bf16 %v3974_v21, %v3974_v21 }
0x2a00   :  { %v4950_v32 = vpop.f32.mrf.mxu1 }
0x2a01   :  { %4954 = vmatmul.mubr.msk.bf16.vlgmr.msra.gmra.mxu1 %vm297_vm4, %v3978_v30 }
0x2a02   :  { %4961 = vmatprep.mubr.msk.bf16.mxu1 %vm5128_vm3, %v5127_v49  ;;  %4958 = vmatpush3.bf16.msra.mxu1 %v5005_v2 }
0x2a03   :  { %4959 = vmatprep.subr.bf16.mxu1 %v5127_v49 }
0x2ac1   :  { %v4016_v35 = vpop.f32.mrf.mxu1 }
0x2ac2   :  { %v4022_v31 = vadd.f32 %v4016_v35, %v3812_v12 }
0x2ac3   :  { %v4955_v36 = vpop.f32.mrf.mxu1 }
0x2ac4   :  { %v4032_v44 = vadd.f32 %v4459_v0, %v4022_v31  ;;  %v4482_v31 = vld [vmem:[%s5950_s16 + $0x1] ss:$0 sm:$0xff] }
0x2ac5   :  { %v4019_v37 = vpop.f32.mrf.mxu1 }
0x2ac6   :  { %v4034_v38 = vadd.f32 %v4032_v44, %v5642_v11  ;;  %v5006_v11 = vld [vmem:[%s5947_s13 + $0x10] sm:$0xff]  }
0x2ac7   :  { %v4956_v48 = vpop.f32.mrf.mxu1  ;;  %4960 = vmatpush3.bf16.msra.mxu1 %v5006_v11 }
0x2ac8   :  { %v4042_v39 = vsel %vm178_vm2, %v4034_v38, 0.0 }
0x2ac9   :  { %4043 = vadd.xlane.f32.xlu1 %v4042_v39 }
0x2acd   :  { %4052 = vadd.xlane.f32.xlu1 %v4051_v15 }
0x2b52   :  { %v4044_v9 = vpop.xlane.xlu1 %4043 }
0x2b53   :  { %v4046_v42 = vmul.f32 0.03125, %v4044_v9 }
0x2b55   :  { %v4048_v43 = vsub.f32 %v4034_v38, %v4046_v42  ;;  %v4303_v42 = vld [vmem:[%s5967_s7] sm:$0xff] }
0x2b56   :  { %v4053_v24 = vpop.xlane.xlu1 %4052 }
0x2b57   :  { %v4050_v46 = vmul.f32 %v4048_v43, %v4048_v43  ;;  %v4057_v47 = vmul.f32 0.03125, %v4053_v24 }
0x2b59   :  { %v4054_v45 = vsel %vm178_vm2, %v4050_v46, 0.0  ;;  %v4059_v50 = vadd.f32 1e-12, %v4057_v47 }
0x2b5a   :  { %4055 = vadd.xlane.f32.xlu1 %v4054_v45 }
0x2b5b   :  { %5091 = vrsqrt.f32 %v4059_v50 }
0x2b68   :  { %v5092_v55 = vpop.eup %5091 }
0x2b69   :  { %v4063_v56 = vmul.f32 %v5092_v55, %v4047_v6 }
0x2b6b   :  { %v4071_v60 = vmul.f32 %v4462_v57, %v4063_v56 }
0x2b6d   :  { %v4079_v0 = vadd.f32 %v4463_v61, %v4071_v60 }
0x2be3   :  { %v4056_v29 = vpop.xlane.xlu1 %4055 }
0x2be4   :  { %v4058_v52 = vmul.f32 0.03125, %v4056_v29 }
0x2be6   :  { %v4060_v53 = vadd.f32 1e-12, %v4058_v52 }
0x2be8   :  { %5093 = vrsqrt.f32 %v4060_v53 }
0x2bf5   :  { %v5094_v58 = vpop.eup %5093 }
0x2bf6   :  { %v4064_v59 = vmul.f32 %v5094_v58, %v4048_v43  ;;  %v4305_v43 = vcvt.s32.f32 %v4303_v42 }
0x2bf8   :  { %v4072_v62 = vmul.f32 %v4462_v57, %v4064_v59  ;;  %v4492_v46 = vadd.f32 -1.0, %v4305_v43  ;;  %v4304_v57 = vld [vmem:[%s5967_s7 + $0x8] sm:$0xff] }
0x2bf9   :  { %v4306_v58 = vcvt.s32.f32 %v4304_v57 }
0x2bfa   :  { %v4080_v3 = vadd.f32 %v4463_v61, %v4072_v62  ;;  %v4309_v45 = vmul.f32 1e+09, %v4492_v46 }
0x2bfb   :  { %v4493_v59 = vadd.f32 -1.0, %v4306_v58 }
0x2bfc   :  { %v4081_v4 = vpack.c.bf16 %v4080_v3, %v4079_v0 }
0x2bfd   :  { %v4310_v60 = vmul.f32 1e+09, %v4493_v59 }
0x2bfe   :  { %4962 = vmatmul.mubr.msk.bf16.vlgmr.msra.gmra.mxu1 %vm178_vm2, %v4081_v4 }
0x2cbe   :  { %v4144_v14 = vpop.f32.mrf.mxu1 }
0x2cbf   :  { %v4145_v51 = vadd.f32 %v4469_v13, %v4144_v14  ;;  %v4491_v14 = vld [vmem:[%s5952_s18 + $0x1] ss:$0 sm:$0xff]  ;;  %s4347_s18 = sshll.u32 %s5140_s17, 4  ;;  %s4348_s18 = int_to_ptr.vmem [resolvable:$true] %s4347_s18 }
0x2cc0   :  { %v4963_v16 = vpop.f32.mrf.mxu1  ;;  %s5103_s1 = scalar_lea.vmem %s4348_s18, 32  ;;  %p5108_p1 = scmp.lt.s32.totalorder %s4348_s18, %s4348_s18 }
0x2cc1   :  { %v4151_v18 = vmul.f32 %v4145_v51, %v4145_v51  ;;  %p5104_p0 = scmp.ne.s32.totalorder %s4348_s18, %s5103_s1  ;;  %p5109_p2 = scmp.lt.s32.totalorder %s5103_s1, %s5103_s1 }
0x2cc2   :  { %v4147_v20 = vpop.f32.mrf.mxu1 }
0x2cc3   :  { %v4153_v54 = vmul.f32 %v4151_v18, %v4145_v51  ;;  %v4148_v22 = vadd.f32 %v4469_v13, %v4147_v20  ;;  %p5110_p3 = por %p5109_p2, %p5108_p1 }
0x2cc4   :  { %v4964_v23 = vpop.f32.mrf.mxu1 }
0x2cc5   :  { %v4155_v19 = vmul.f32 0.044715, %v4153_v54  ;;  %v4152_v25 = vmul.f32 %v4148_v22, %v4148_v22  ;;  %p5111_p4 = pnand %p5110_p3, %p5104_p0 }
0x2cc7   :  { %v4157_v49 = vadd.f32 %v4155_v19, %v4145_v51  ;;  %v4154_v12 = vmul.f32 %v4152_v25, %v4148_v22 }
0x2cc9   :  { %v4159_v17 = vmul.f32 0.7978846, %v4157_v49  ;;  %v4156_v40 = vmul.f32 0.044715, %v4154_v12 }
0x2ccb   :  { %5095 = vtanh.f32 %v4159_v17  ;;  %v4158_v63 = vadd.f32 %v4156_v40, %v4148_v22 }
0x2ccd   :  { %v4160_v1 = vmul.f32 0.7978846, %v4158_v63 }
0x2ccf   :  { %5097 = vtanh.f32 %v4160_v1 }
0x2cd8   :  { %v5096_v26 = vpop.eup %5095 }
0x2cd9   :  { %v4163_v27 = vadd.f32 1.0, %v5096_v26 }
0x2cdb   :  { %v4165_v21 = vmul.f32 0.5, %v4163_v27 }
0x2cdc   :  { %v5098_v28 = vpop.eup %5097 }
0x2cdd   :  { %v4164_v30 = vadd.f32 1.0, %v5098_v28  ;;  %v4167_v33 = vmul.f32 %v4165_v21, %v4145_v51 }
0x2cdf   :  { %v4166_v32 = vmul.f32 0.5, %v4164_v30 }
0x2ce1   :  { %v4168_v34 = vmul.f32 %v4166_v32, %v4148_v22 }
0x2ce3   :  { %v4169_v35 = vpack.c.bf16 %v4168_v34, %v4167_v33 }
0x2ce5   :  { %4974 = vmatmul.mubr.msk.bf16.vlgmr.msra.gmra.mxu0 %vm2171_vm6, %v4169_v35 }
0x2da5   :  { %v4248_v36 = vpop.f32.mrf.mxu0 }
0x2da6   :  { %v4249_v6 = vadd.f32 %v4482_v31, %v4248_v36 }
0x2da7   :  { %v4975_v44 = vpop.f32.mrf.mxu0 }
0x2da8   :  { %v4255_v37 = vadd.f32 %v4249_v6, %v4079_v0 }
0x2da9   :  { %v4251_v38 = vpop.f32.mrf.mxu0 }
0x2daa   :  { %v4252_v48 = vadd.f32 %v4482_v31, %v4251_v38  ;;  %v4261_v39 = vsel %vm178_vm2, %v4255_v37, 0.0 }
0x2dab   :  { %4262 = vadd.xlane.f32.xlu1 %v4261_v39  ;;  %v4976_v41 = vpop.f32.mrf.mxu0 }
0x2dac   :  { %v4256_v15 = vadd.f32 %v4252_v48, %v4080_v3 }
0x2dae   :  { %v4264_v9 = vsel %vm178_vm2, %v4256_v15, 0.0 }
0x2daf   :  { %4265 = vadd.xlane.f32.xlu1 %v4264_v9 }
0x2dc0   :  { %4313 = vperm.xlu1 %4994, %v4309_v45  }
0x2e34   :  { %v4263_v2 = vpop.xlane.xlu1 %4262 }
0x2e35   :  { %v4267_v11 = vmul.f32 0.03125, %v4263_v2 }
0x2e37   :  { %v4269_v24 = vsub.f32 %v4255_v37, %v4267_v11 }
0x2e38   :  { %v4266_v47 = vpop.xlane.xlu1 %4265 }
0x2e39   :  { %v4268_v50 = vmul.f32 0.03125, %v4266_v47  ;;  %v4271_v29 = vmul.f32 %v4269_v24, %v4269_v24 }
0x2e3b   :  { %v4270_v52 = vsub.f32 %v4256_v15, %v4268_v50  ;;  %v4273_v53 = vsel %vm178_vm2, %v4271_v29, 0.0 }
0x2e3c   :  { %4274 = vadd.xlane.f32.xlu0 %v4273_v53  ;;  %v4314_v61 = vpop.permute.xlu1 %4313 }
0x2e3d   :  { %v4272_v55 = vmul.f32 %v4270_v52, %v4270_v52 }
0x2e3f   :  { %v4276_v56 = vsel %vm178_vm2, %v4272_v55, 0.0 }
0x2e40   :  { %4277 = vadd.xlane.f32.xlu1 %v4276_v56 }
0x2e51   :  { %4318 = vperm.xlu1 %4994, %v4310_v60  }
0x2ec5   :  { %v4275_v62 = vpop.xlane.xlu0 %4274 }
0x2ec6   :  { %v4279_v0 = vmul.f32 0.03125, %v4275_v62 }
0x2ec8   :  { %v4281_v3 = vadd.f32 1e-12, %v4279_v0 }
0x2ec9   :  { %v4278_v4 = vpop.xlane.xlu1 %4277 }
0x2eca   :  { %5099 = vrsqrt.f32 %v4281_v3  ;;  %v4280_v5 = vmul.f32 0.03125, %v4278_v4 }
0x2ecc   :  { %v4282_v7 = vadd.f32 1e-12, %v4280_v5 }
0x2ecd   :  { %v4319_v49 = vpop.permute.xlu1 %4318 }
0x2ece   :  { %5101 = vrsqrt.f32 %v4282_v7 }
0x2ed7   :  { %v5100_v8 = vpop.eup %5099 }
0x2ed8   :  { %v4285_v13 = vmul.f32 %v5100_v8, %v4269_v24 }
0x2eda   :  { %v4293_v51 = vmul.f32 %v4490_v10, %v4285_v13 }
0x2edb   :  { %v5102_v16 = vpop.eup %5101 }
0x2edc   :  { %v4286_v18 = vmul.f32 %v5102_v16, %v4270_v52  ;;  %v4301_v20 = vadd.f32 %v4491_v14, %v4293_v51 }
0x2ede   :  { %v4294_v54 = vmul.f32 %v4490_v10, %v4286_v18  ;;  %v4321_v22 = vadd.f32 %v4314_v61, %v4301_v20 }
0x2ee0   :  { %v4302_v23 = vadd.f32 %v4491_v14, %v4294_v54  ;;  %v4323_v19 = vsel %vm178_vm2, %v4321_v22, -inf }
0x2ee1   :  { %v4324_v25 = vrot.slane %v4323_v19, 4 }
0x2ee2   :  { %v4322_v12 = vadd.f32 %v4319_v49, %v4302_v23 }
0x2ee3   :  { %v4325_v17 = vmax.f32 %v4323_v19, %v4324_v25 }
0x2ee4   :  { %v4330_v40 = vsel %vm178_vm2, %v4322_v12, -inf }
0x2ee5   :  { %v4331_v63 = vrot.slane %v4330_v40, 4  ;;  %v4326_v1 = vrot.slane %v4325_v17, 2 }
0x2ee7   :  { %v4332_v26 = vmax.f32 %v4330_v40, %v4331_v63  ;;  %v4327_v27 = vmax.f32 %v4325_v17, %v4326_v1 }
0x2ee9   :  { %v4333_v28 = vrot.slane %v4332_v26, 2  ;;  %v4328_v30 = vrot.slane %v4327_v27, 1 }
0x2eeb   :  { %v4334_v21 = vmax.f32 %v4332_v26, %v4333_v28  ;;  %v4329_v33 = vmax.f32 %v4327_v27, %v4328_v30 }
0x2eed   :  { %v4335_v32 = vrot.slane %v4334_v21, 1 }
0x2eef   :  { %v4336_v34 = vmax.f32 %v4334_v21, %v4335_v32 }
0x2ef1   :  { %v4338_v35 = vsel %vm4337_vm7, %v4329_v33, %v4336_v34 }
0x2ef2   :  { %4340 = vst.msk [vmem:[#allocation2] sm:$0x3] %vm4339_vm8, %v4338_v35 }
0x2ef3   :  { %5114 = shalt.err (!%p5111_p4)
}
0x2ef4   :  { %4350 = dma.vmem_to_hbm [thread:$0]  %s4348_s18, 32, %s5953_s19, [#allocation3]  }
0x2ef5   :  { %5123 = dma.done.wait [#allocation3], 32  }
0x2ef6   :  { %5124 = vsyncadd [#allocation3], 4294967264 }
0x2ef7   :  { %4354 = vsyncpa [#allocation3], 1 }

</bundles_post_ra>
